<compile_context>
chip_gen: v6e
topology: v6e:2x2x1
jax: 0.10.0
libtpu: 0.0.40
codegen_flags: <defaults>
</compile_context>

<pallas_src>
import jax
import jax.numpy as jnp
from jax import lax
from jax.experimental import pallas as pl
from jax.experimental.pallas import tpu as pltpu


_VMEM_SPEC = pl.BlockSpec(memory_space=pltpu.MemorySpace.VMEM)


# ----------------------------------------------------------------------------
# Fused Pallas kernel (whole model, single invocation, no grid)
# ----------------------------------------------------------------------------
def _make_fused_kernel(num_layers, T, Bp, H, V):
    """Build the fused kernel for a fixed (static) model configuration.

    Gate/column layout everywhere is direction-blocked PyTorch order:
        [ i_f f_f g_f o_f | i_b f_b g_b o_b ]   (each block H wide, 4H = 128)
    """
    H4, H8 = 4 * H, 8 * H
    TB = T * Bp
    bf16 = jnp.bfloat16
    f32 = jnp.float32

    def kernel(*refs):
        # in : ids_col (TB,1) i32, emb (V,E),
        #      per layer: w_ih_cat (in,8H), w_hh_blk (2H,8H) block-diag, b_cat (1,8H)
        #      fc_w (2H,L), fc_b (1,L)
        # out: logits (Bp, L)
        ids_ref, emb_ref = refs[0], refs[1]
        layer_refs = [refs[2 + 3 * l: 2 + 3 * (l + 1)] for l in range(num_layers)]
        fc_w_ref = refs[2 + 3 * num_layers]
        fc_b_ref = refs[3 + 3 * num_layers]
        out_ref = refs[4 + 3 * num_layers]

        # ---- embedding gather as a one-hot MXU matmul (stays in VMEM) ------
        ids = ids_ref[...]                                       # (TB, 1) int32
        iota = lax.broadcasted_iota(jnp.int32, (TB, V), 1)
        onehot = jnp.where(iota == ids, 1.0, 0.0).astype(bf16)   # (TB, V)
        x = jnp.dot(onehot, emb_ref[...].astype(bf16),
                    preferred_element_type=f32)                  # (TB, E) f32

        yf = yb = None          # (TB, H) bf16 hiddens of previous layer
        h_f_last = h_b_last = None

        for l in range(num_layers):
            w_ih_ref, w_hh_ref, b_ref = layer_refs[l]
            w_ih = w_ih_ref[...].astype(bf16)       # (in, 8H)
            w_hh = w_hh_ref[...].astype(bf16)       # (2H, 8H) block-diagonal
            bias = b_ref[...]                       # (1, 8H) f32
            last_layer = (l == num_layers - 1)

            # Hoisted input projection for BOTH directions (off the serial
            # recurrence path).
            if l == 0:
                pre = jnp.dot(x.astype(bf16), w_ih,
                              preferred_element_type=f32) + bias          # (TB, 8H)
            else:
                # Split the (2H, 8H) weight at H (sublane-aligned row slice)
                # instead of concatenating yf/yb along lanes.
                pre = (jnp.dot(yf, w_ih[0:H, :], preferred_element_type=f32)
                       + jnp.dot(yb, w_ih[H:2 * H, :], preferred_element_type=f32)
                       + bias)                                             # (TB, 8H)

            hc = jnp.zeros((Bp, 2 * H), f32)        # [h_fwd | h_bwd]
            c_f = jnp.zeros((Bp, H), f32)
            c_b = jnp.zeros((Bp, H), f32)
            blocks = []                             # per-step hc snapshots

            for s in range(T):                      # fully unrolled (T static)
                tb = T - 1 - s
                # [fwd pre-activations of time s | bwd pre-activations of time tb]
                pre_step = jnp.concatenate(
                    [pre[s * Bp:(s + 1) * Bp, 0:H4],
                     pre[tb * Bp:(tb + 1) * Bp, H4:H8]], axis=1)           # (Bp, 8H)
                # ONE fused MXU push for both directions (block-diag W_hh).
                gates = pre_step + jnp.dot(hc.astype(bf16), w_hh,
                                           preferred_element_type=f32)     # (Bp, 8H)
                # Whole-vreg nonlinearities, then H-wide slices.
                sig = jax.nn.sigmoid(gates)
                tan = jnp.tanh(gates)
                c_f = sig[:, H:2 * H] * c_f + sig[:, 0:H] * tan[:, 2 * H:3 * H]
                c_b = sig[:, 5 * H:6 * H] * c_b + sig[:, 4 * H:5 * H] * tan[:, 6 * H:7 * H]
                o_cat = jnp.concatenate([sig[:, 3 * H:4 * H],
                                         sig[:, 7 * H:8 * H]], axis=1)     # (Bp, 2H)
                hc = o_cat * jnp.tanh(jnp.concatenate([c_f, c_b], axis=1)) # (Bp, 2H)

                if not last_layer:
                    blocks.append(hc)
                elif s == 0:
                    # Model reads only output[:, -1, :]; its backward half is
                    # the bwd hidden after processing x[T-1] from the zero
                    # state, i.e. after this first fused step.  (The bwd state
                    # keeps evolving in later steps but, thanks to the
                    # block-diagonal W_hh, never affects the fwd columns.)
                    h_b_last = hc[:, H:2 * H]

            if not last_layer:
                # Re-assemble time-ordered fwd / bwd hidden sequences for the
                # next layer's hoisted projection (row concats are (8,·)
                # tile-aligned; bwd order fixed by reversing the block list).
                yf = jnp.concatenate(blocks, axis=0)[:, 0:H].astype(bf16)        # (TB, H)
                yb = jnp.concatenate(blocks[::-1], axis=0)[:, H:2 * H].astype(bf16)
            else:
                h_f_last = hc[:, 0:H]

        # ---- FC + sigmoid ---------------------------------------------------
        h_last = jnp.concatenate([h_f_last, h_b_last], axis=1).astype(bf16)  # (Bp, 2H)
        logit = (jnp.dot(h_last, fc_w_ref[...].astype(bf16),
                         preferred_element_type=f32) + fc_b_ref[...])
        out_ref[...] = jax.nn.sigmoid(logit)

    return kernel


# ----------------------------------------------------------------------------
# Wrappers
# ----------------------------------------------------------------------------
def fused_forward(ids_col, params, *, T, Bp):
    emb = params["embedding"]
    V, _ = emb.shape
    lstm = params["lstm"]
    H = lstm[0]["w_hh_blk"].shape[0] // 2
    L = params["fc_w"].shape[1]
    num_layers = len(lstm)

    args = [ids_col, emb]
    for lp in lstm:
        args += [lp["w_ih_cat"], lp["w_hh_blk"], lp["b_cat"]]
    args += [params["fc_w"], params["fc_b"]]

    kernel = _make_fused_kernel(num_layers, T, Bp, H, V)
    return pl.pallas_call(
        kernel,
        out_shape=jax.ShapeDtypeStruct((Bp, L), jnp.float32),
        in_specs=[_VMEM_SPEC] * len(args),
        out_specs=_VMEM_SPEC,
    )(*args)


@jax.jit
def model_forward(token_ids, params):
    """Forward pass matching the PyTorch Model.forward semantics (eval mode)."""
    B, T = token_ids.shape
    V = params["embedding"].shape[0]
    Bp = max(8, -(-B // 8) * 8)                      # pad batch to sublane tile
    ids = token_ids.astype(jnp.int32)
    if Bp > B:
        # Padded rows use padding_idx (zero embedding); independent per-row
        # recurrence, results dropped below.
        ids = jnp.pad(ids, ((0, Bp - B), (0, 0)), constant_values=V - 1)
    ids_col = ids.T.reshape(T * Bp, 1)               # row index = t*Bp + b (time-major)
    # TODO(synk): inter-layer dropout skipped (inference / eval mode).
    out = fused_forward(ids_col, params, T=T, Bp=Bp)
    return out[:B]


# ----------------------------------------------------------------------------
# Pure-JAX reference (for correctness check only)
# ----------------------------------------------------------------------------
@jax.jit
def reference_forward(token_ids, params):
    H = params["lstm"][0]["w_hh_blk"].shape[0] // 2
    emb = jnp.take(params["embedding"], token_ids, axis=0)          # (B, T, E)
    x = jnp.transpose(emb, (1, 0, 2)).astype(jnp.float32)           # (T, B, E)

    def run_dir(x_tbi, w_ih, w_hh, b):
        Bb = x_tbi.shape[1]

        def step(carry, x_t):
            h, c = carry
            g = (jnp.dot(x_t, w_ih, precision="highest")
                 + jnp.dot(h, w_hh, precision="highest") + b)
            i = jax.nn.sigmoid(g[:, 0 * H:1 * H])
            f = jax.nn.sigmoid(g[:, 1 * H:2 * H])
            gg = jnp.tanh(g[:, 2 * H:3 * H])
            o = jax.nn.sigmoid(g[:, 3 * H:4 * H])
            c = f * c + i * gg
            h = o * jnp.tanh(c)
            return (h, c), h

        init = (jnp.zeros((Bb, H), jnp.float32), jnp.zeros((Bb, H), jnp.float32))
        _, ys = lax.scan(step, init, x_tbi)
        return ys                                                    # (T, B, H)

    for lp in params["lstm"]:
        w_ih_cat, b_cat = lp["w_ih_cat"], lp["b_cat"]
        w_hh_f = lp["w_hh_blk"][0:H, 0:4 * H]
        w_hh_b = lp["w_hh_blk"][H:2 * H, 4 * H:8 * H]
        yf = run_dir(x, w_ih_cat[:, :4 * H], w_hh_f, b_cat[:, :4 * H])
        yb = run_dir(x[::-1], w_ih_cat[:, 4 * H:], w_hh_b, b_cat[:, 4 * H:])[::-1]
        x = jnp.concatenate([yf, yb], axis=-1)
    last = x[-1]
    return jax.nn.sigmoid(
        jnp.dot(last, params["fc_w"], precision="highest") + params["fc_b"])


# ----------------------------------------------------------------------------
# Deterministic parameter construction
# ----------------------------------------------------------------------------
def init_params(key, vocab_size, embed_dim, hidden_size, num_layers, label_num):
    keys = jax.random.split(key, 3 + num_layers)
    params = {}
    H = hidden_size

    # nn.Embedding: N(0,1); padding_idx row (vocab_size - 1) zeroed.
    emb = jax.random.normal(keys[0], (vocab_size, embed_dim), jnp.float32)
    emb = emb.at[vocab_size - 1].set(0.0)
    params["embedding"] = emb

    bound = 1.0 / float(H) ** 0.5
    lstm_layers = []
    for layer in range(num_layers):
        in_dim = embed_dim if layer == 0 else 2 * H
        lk = jax.random.split(keys[1 + layer], 8)

        def u(k, shape):
            return jax.random.uniform(k, shape, jnp.float32, -bound, bound)

        # Stored transposed vs PyTorch: (in, 4H) / (H, 4H); bias = b_ih + b_hh.
        w_ih_f = u(lk[0], (in_dim, 4 * H))
        w_hh_f = u(lk[1], (H, 4 * H))
        b_f = u(lk[2], (1, 4 * H)) + u(lk[3], (1, 4 * H))
        w_ih_b = u(lk[4], (in_dim, 4 * H))
        w_hh_b = u(lk[5], (H, 4 * H))
        b_b = u(lk[6], (1, 4 * H)) + u(lk[7], (1, 4 * H))

        # Block-diagonal recurrent weight: [h_f | h_b] @ w_hh_blk
        #   = [h_f @ w_hh_f (cols 0:4H) | h_b @ w_hh_b (cols 4H:8H)].
        w_hh_blk = jnp.zeros((2 * H, 8 * H), jnp.float32)
        w_hh_blk = w_hh_blk.at[0:H, 0:4 * H].set(w_hh_f)
        w_hh_blk = w_hh_blk.at[H:2 * H, 4 * H:8 * H].set(w_hh_b)

        lstm_layers.append({
            "w_ih_cat": jnp.concatenate([w_ih_f, w_ih_b], axis=1),   # (in, 8H)
            "w_hh_blk": w_hh_blk,                                    # (2H, 8H)
            "b_cat": jnp.concatenate([b_f, b_b], axis=1),            # (1, 8H)
        })
    params["lstm"] = tuple(lstm_layers)

    fc_bound = 1.0 / float(2 * H) ** 0.5
    params["fc_w"] = jax.random.uniform(
        keys[-2], (2 * H, label_num), jnp.float32, -fc_bound, fc_bound)
    params["fc_b"] = jax.random.uniform(
        keys[-1], (1, label_num), jnp.float32, -fc_bound, fc_bound)
    return params


# ----------------------------------------------------------------------------
# Main
# ----------------------------------------------------------------------------
if __name__ == "__main__":
    import numpy as np

    VOCAB_SIZE = 32
    EMBED_DIM = 16
    HIDDEN_SIZE = 32
    NUM_LAYERS = 2
    LABEL_NUM = 4
    BATCH = 2
    SEQ_LEN = 8

    key = jax.random.PRNGKey(0)
    pkey, dkey = jax.random.split(key)

    params = init_params(pkey, VOCAB_SIZE, EMBED_DIM, HIDDEN_SIZE,
                         NUM_LAYERS, LABEL_NUM)
    token_ids = jax.random.randint(dkey, (BATCH, SEQ_LEN), 0, VOCAB_SIZE,
                                   dtype=jnp.int32)

    logits = model_forward(token_ids, params)
    logits = jax.block_until_ready(logits)

    assert logits.shape == (BATCH, LABEL_NUM)
    assert logits.dtype == jnp.float32

    # Correctness check against a pure-JAX f32 "highest"-precision reference.
    # The kernel deliberately uses bfloat16 MXU operands (f32 accumulation),
    # so the tolerance below accounts for bf16 rounding.
    ref = jax.block_until_ready(reference_forward(token_ids, params))
    max_err = float(np.max(np.abs(np.asarray(logits) - np.asarray(ref))))
    assert max_err < 3e-2, f"max abs error vs reference: {max_err}"

    print("KERNEL_OK")
</pallas_src>

<mosaic_0001>
module attributes {stable_mosaic.version = 11 : i64} {
  func.func @kernel(%arg0: memref<64x1xi32, #tpu.memory_space<vmem>>, %arg1: memref<32x16xf32, #tpu.memory_space<vmem>>, %arg2: memref<16x256xf32, #tpu.memory_space<vmem>>, %arg3: memref<64x256xf32, #tpu.memory_space<vmem>>, %arg4: memref<1x256xf32, #tpu.memory_space<vmem>>, %arg5: memref<64x256xf32, #tpu.memory_space<vmem>>, %arg6: memref<64x256xf32, #tpu.memory_space<vmem>>, %arg7: memref<1x256xf32, #tpu.memory_space<vmem>>, %arg8: memref<64x4xf32, #tpu.memory_space<vmem>>, %arg9: memref<1x4xf32, #tpu.memory_space<vmem>>, %arg10: memref<8x4xf32, #tpu.memory_space<vmem>>) attributes {dimension_semantics = [], scalar_prefetch = 0 : i64, scratch_operands = 0 : i64, tpu.core_type = #tpu.core_type<tc>} {
    %c0 = arith.constant 0 : index
    %c0_0 = arith.constant 0 : index
    %0 = vector.load %arg0[%c0, %c0_0] : memref<64x1xi32, #tpu.memory_space<vmem>>, vector<64x1xi32>
    %1 = tpu.iota {dimensions = array<i32: 1>} : vector<64x32xi32>
    %2 = vector.broadcast %0 : vector<64x1xi32> to vector<64x32xi32>
    %3 = arith.cmpi eq, %1, %2 : vector<64x32xi32>
    %cst = arith.constant 1.000000e+00 : f32
    %cst_1 = arith.constant 0.000000e+00 : f32
    %4 = vector.broadcast %cst : f32 to vector<64x32xf32>
    %5 = vector.broadcast %cst_1 : f32 to vector<64x32xf32>
    %6 = arith.select %3, %4, %5 : vector<64x32xi1>, vector<64x32xf32>
    %7 = arith.truncf %6 : vector<64x32xf32> to vector<64x32xbf16>
    %c0_2 = arith.constant 0 : index
    %c0_3 = arith.constant 0 : index
    %8 = vector.load %arg1[%c0_2, %c0_3] : memref<32x16xf32, #tpu.memory_space<vmem>>, vector<32x16xf32>
    %9 = arith.truncf %8 : vector<32x16xf32> to vector<32x16xbf16>
    %cst_4 = arith.constant dense<0.000000e+00> : vector<64x16xf32>
    %10 = tpu.matmul %7, %9, %cst_4 {dimension_numbers = #tpu.dot_dimension_numbers<[1], [0], [0], [1], [0, 0, 1, 1], [], []>} : vector<64x32xbf16>, vector<32x16xbf16>, vector<64x16xf32> -> vector<64x16xf32>
    %c0_5 = arith.constant 0 : index
    %c0_6 = arith.constant 0 : index
    %11 = vector.load %arg2[%c0_5, %c0_6] : memref<16x256xf32, #tpu.memory_space<vmem>>, vector<16x256xf32>
    %12 = arith.truncf %11 : vector<16x256xf32> to vector<16x256xbf16>
    %c0_7 = arith.constant 0 : index
    %c0_8 = arith.constant 0 : index
    %13 = vector.load %arg3[%c0_7, %c0_8] : memref<64x256xf32, #tpu.memory_space<vmem>>, vector<64x256xf32>
    %14 = arith.truncf %13 : vector<64x256xf32> to vector<64x256xbf16>
    %c0_9 = arith.constant 0 : index
    %c0_10 = arith.constant 0 : index
    %15 = vector.load %arg4[%c0_9, %c0_10] : memref<1x256xf32, #tpu.memory_space<vmem>>, vector<1x256xf32>
    %16 = arith.truncf %10 : vector<64x16xf32> to vector<64x16xbf16>
    %cst_11 = arith.constant dense<0.000000e+00> : vector<64x256xf32>
    %17 = tpu.matmul %16, %12, %cst_11 {dimension_numbers = #tpu.dot_dimension_numbers<[1], [0], [0], [1], [0, 0, 1, 1], [], []>} : vector<64x16xbf16>, vector<16x256xbf16>, vector<64x256xf32> -> vector<64x256xf32>
    %18 = vector.broadcast %15 : vector<1x256xf32> to vector<64x256xf32>
    %19 = arith.addf %17, %18 : vector<64x256xf32>
    %cst_12 = arith.constant 0.000000e+00 : f32
    %20 = vector.broadcast %cst_12 : f32 to vector<8x64xf32>
    %cst_13 = arith.constant 0.000000e+00 : f32
    %21 = vector.broadcast %cst_13 : f32 to vector<8x32xf32>
    %cst_14 = arith.constant 0.000000e+00 : f32
    %22 = vector.broadcast %cst_14 : f32 to vector<8x32xf32>
    %23 = vector.extract_strided_slice %19 {offsets = [0, 0], sizes = [8, 128], strides = [1, 1]} : vector<64x256xf32> to vector<8x128xf32>
    %24 = vector.extract_strided_slice %19 {offsets = [56, 128], sizes = [8, 128], strides = [1, 1]} : vector<64x256xf32> to vector<8x128xf32>
    %25 = tpu.concatenate %23, %24 in 1 : vector<8x128xf32>, vector<8x128xf32> -> vector<8x256xf32>
    %26 = arith.truncf %20 : vector<8x64xf32> to vector<8x64xbf16>
    %cst_15 = arith.constant dense<0.000000e+00> : vector<8x256xf32>
    %27 = tpu.matmul %26, %14, %cst_15 {dimension_numbers = #tpu.dot_dimension_numbers<[1], [0], [0], [1], [0, 0, 1, 1], [], []>} : vector<8x64xbf16>, vector<64x256xbf16>, vector<8x256xf32> -> vector<8x256xf32>
    %28 = arith.addf %25, %27 : vector<8x256xf32>
    %29 = arith.negf %28 : vector<8x256xf32>
    %30 = math.exp %29 : vector<8x256xf32>
    %cst_16 = arith.constant 1.000000e+00 : f32
    %31 = vector.broadcast %cst_16 : f32 to vector<8x256xf32>
    %32 = arith.addf %31, %30 : vector<8x256xf32>
    %33 = arith.divf %31, %32 : vector<8x256xf32>
    %34 = math.tanh %28 : vector<8x256xf32>
    %35 = vector.extract_strided_slice %33 {offsets = [0, 32], sizes = [8, 32], strides = [1, 1]} : vector<8x256xf32> to vector<8x32xf32>
    %36 = arith.mulf %35, %21 : vector<8x32xf32>
    %37 = vector.extract_strided_slice %33 {offsets = [0, 0], sizes = [8, 32], strides = [1, 1]} : vector<8x256xf32> to vector<8x32xf32>
    %38 = vector.extract_strided_slice %34 {offsets = [0, 64], sizes = [8, 32], strides = [1, 1]} : vector<8x256xf32> to vector<8x32xf32>
    %39 = arith.mulf %37, %38 : vector<8x32xf32>
    %40 = arith.addf %36, %39 : vector<8x32xf32>
    %41 = vector.extract_strided_slice %33 {offsets = [0, 160], sizes = [8, 32], strides = [1, 1]} : vector<8x256xf32> to vector<8x32xf32>
    %42 = arith.mulf %41, %22 : vector<8x32xf32>
    %43 = vector.extract_strided_slice %33 {offsets = [0, 128], sizes = [8, 32], strides = [1, 1]} : vector<8x256xf32> to vector<8x32xf32>
    %44 = vector.extract_strided_slice %34 {offsets = [0, 192], sizes = [8, 32], strides = [1, 1]} : vector<8x256xf32> to vector<8x32xf32>
    %45 = arith.mulf %43, %44 : vector<8x32xf32>
    %46 = arith.addf %42, %45 : vector<8x32xf32>
    %47 = vector.extract_strided_slice %33 {offsets = [0, 96], sizes = [8, 32], strides = [1, 1]} : vector<8x256xf32> to vector<8x32xf32>
    %48 = vector.extract_strided_slice %33 {offsets = [0, 224], sizes = [8, 32], strides = [1, 1]} : vector<8x256xf32> to vector<8x32xf32>
    %49 = tpu.concatenate %47, %48 in 1 : vector<8x32xf32>, vector<8x32xf32> -> vector<8x64xf32>
    %50 = tpu.concatenate %40, %46 in 1 : vector<8x32xf32>, vector<8x32xf32> -> vector<8x64xf32>
    %51 = math.tanh %50 : vector<8x64xf32>
    %52 = arith.mulf %49, %51 : vector<8x64xf32>
    %53 = vector.extract_strided_slice %19 {offsets = [8, 0], sizes = [8, 128], strides = [1, 1]} : vector<64x256xf32> to vector<8x128xf32>
    %54 = vector.extract_strided_slice %19 {offsets = [48, 128], sizes = [8, 128], strides = [1, 1]} : vector<64x256xf32> to vector<8x128xf32>
    %55 = tpu.concatenate %53, %54 in 1 : vector<8x128xf32>, vector<8x128xf32> -> vector<8x256xf32>
    %56 = arith.truncf %52 : vector<8x64xf32> to vector<8x64xbf16>
    %cst_17 = arith.constant dense<0.000000e+00> : vector<8x256xf32>
    %57 = tpu.matmul %56, %14, %cst_17 {dimension_numbers = #tpu.dot_dimension_numbers<[1], [0], [0], [1], [0, 0, 1, 1], [], []>} : vector<8x64xbf16>, vector<64x256xbf16>, vector<8x256xf32> -> vector<8x256xf32>
    %58 = arith.addf %55, %57 : vector<8x256xf32>
    %59 = arith.negf %58 : vector<8x256xf32>
    %60 = math.exp %59 : vector<8x256xf32>
    %cst_18 = arith.constant 1.000000e+00 : f32
    %61 = vector.broadcast %cst_18 : f32 to vector<8x256xf32>
    %62 = arith.addf %61, %60 : vector<8x256xf32>
    %63 = arith.divf %61, %62 : vector<8x256xf32>
    %64 = math.tanh %58 : vector<8x256xf32>
    %65 = vector.extract_strided_slice %63 {offsets = [0, 32], sizes = [8, 32], strides = [1, 1]} : vector<8x256xf32> to vector<8x32xf32>
    %66 = arith.mulf %65, %40 : vector<8x32xf32>
    %67 = vector.extract_strided_slice %63 {offsets = [0, 0], sizes = [8, 32], strides = [1, 1]} : vector<8x256xf32> to vector<8x32xf32>
    %68 = vector.extract_strided_slice %64 {offsets = [0, 64], sizes = [8, 32], strides = [1, 1]} : vector<8x256xf32> to vector<8x32xf32>
    %69 = arith.mulf %67, %68 : vector<8x32xf32>
    %70 = arith.addf %66, %69 : vector<8x32xf32>
    %71 = vector.extract_strided_slice %63 {offsets = [0, 160], sizes = [8, 32], strides = [1, 1]} : vector<8x256xf32> to vector<8x32xf32>
    %72 = arith.mulf %71, %46 : vector<8x32xf32>
    %73 = vector.extract_strided_slice %63 {offsets = [0, 128], sizes = [8, 32], strides = [1, 1]} : vector<8x256xf32> to vector<8x32xf32>
    %74 = vector.extract_strided_slice %64 {offsets = [0, 192], sizes = [8, 32], strides = [1, 1]} : vector<8x256xf32> to vector<8x32xf32>
    %75 = arith.mulf %73, %74 : vector<8x32xf32>
    %76 = arith.addf %72, %75 : vector<8x32xf32>
    %77 = vector.extract_strided_slice %63 {offsets = [0, 96], sizes = [8, 32], strides = [1, 1]} : vector<8x256xf32> to vector<8x32xf32>
    %78 = vector.extract_strided_slice %63 {offsets = [0, 224], sizes = [8, 32], strides = [1, 1]} : vector<8x256xf32> to vector<8x32xf32>
    %79 = tpu.concatenate %77, %78 in 1 : vector<8x32xf32>, vector<8x32xf32> -> vector<8x64xf32>
    %80 = tpu.concatenate %70, %76 in 1 : vector<8x32xf32>, vector<8x32xf32> -> vector<8x64xf32>
    %81 = math.tanh %80 : vector<8x64xf32>
    %82 = arith.mulf %79, %81 : vector<8x64xf32>
    %83 = vector.extract_strided_slice %19 {offsets = [16, 0], sizes = [8, 128], strides = [1, 1]} : vector<64x256xf32> to vector<8x128xf32>
    %84 = vector.extract_strided_slice %19 {offsets = [40, 128], sizes = [8, 128], strides = [1, 1]} : vector<64x256xf32> to vector<8x128xf32>
    %85 = tpu.concatenate %83, %84 in 1 : vector<8x128xf32>, vector<8x128xf32> -> vector<8x256xf32>
    %86 = arith.truncf %82 : vector<8x64xf32> to vector<8x64xbf16>
    %cst_19 = arith.constant dense<0.000000e+00> : vector<8x256xf32>
    %87 = tpu.matmul %86, %14, %cst_19 {dimension_numbers = #tpu.dot_dimension_numbers<[1], [0], [0], [1], [0, 0, 1, 1], [], []>} : vector<8x64xbf16>, vector<64x256xbf16>, vector<8x256xf32> -> vector<8x256xf32>
    %88 = arith.addf %85, %87 : vector<8x256xf32>
    %89 = arith.negf %88 : vector<8x256xf32>
    %90 = math.exp %89 : vector<8x256xf32>
    %cst_20 = arith.constant 1.000000e+00 : f32
    %91 = vector.broadcast %cst_20 : f32 to vector<8x256xf32>
    %92 = arith.addf %91, %90 : vector<8x256xf32>
    %93 = arith.divf %91, %92 : vector<8x256xf32>
    %94 = math.tanh %88 : vector<8x256xf32>
    %95 = vector.extract_strided_slice %93 {offsets = [0, 32], sizes = [8, 32], strides = [1, 1]} : vector<8x256xf32> to vector<8x32xf32>
    %96 = arith.mulf %95, %70 : vector<8x32xf32>
    %97 = vector.extract_strided_slice %93 {offsets = [0, 0], sizes = [8, 32], strides = [1, 1]} : vector<8x256xf32> to vector<8x32xf32>
    %98 = vector.extract_strided_slice %94 {offsets = [0, 64], sizes = [8, 32], strides = [1, 1]} : vector<8x256xf32> to vector<8x32xf32>
    %99 = arith.mulf %97, %98 : vector<8x32xf32>
    %100 = arith.addf %96, %99 : vector<8x32xf32>
    %101 = vector.extract_strided_slice %93 {offsets = [0, 160], sizes = [8, 32], strides = [1, 1]} : vector<8x256xf32> to vector<8x32xf32>
    %102 = arith.mulf %101, %76 : vector<8x32xf32>
    %103 = vector.extract_strided_slice %93 {offsets = [0, 128], sizes = [8, 32], strides = [1, 1]} : vector<8x256xf32> to vector<8x32xf32>
    %104 = vector.extract_strided_slice %94 {offsets = [0, 192], sizes = [8, 32], strides = [1, 1]} : vector<8x256xf32> to vector<8x32xf32>
    %105 = arith.mulf %103, %104 : vector<8x32xf32>
    %106 = arith.addf %102, %105 : vector<8x32xf32>
    %107 = vector.extract_strided_slice %93 {offsets = [0, 96], sizes = [8, 32], strides = [1, 1]} : vector<8x256xf32> to vector<8x32xf32>
    %108 = vector.extract_strided_slice %93 {offsets = [0, 224], sizes = [8, 32], strides = [1, 1]} : vector<8x256xf32> to vector<8x32xf32>
    %109 = tpu.concatenate %107, %108 in 1 : vector<8x32xf32>, vector<8x32xf32> -> vector<8x64xf32>
    %110 = tpu.concatenate %100, %106 in 1 : vector<8x32xf32>, vector<8x32xf32> -> vector<8x64xf32>
    %111 = math.tanh %110 : vector<8x64xf32>
    %112 = arith.mulf %109, %111 : vector<8x64xf32>
    %113 = vector.extract_strided_slice %19 {offsets = [24, 0], sizes = [8, 128], strides = [1, 1]} : vector<64x256xf32> to vector<8x128xf32>
    %114 = vector.extract_strided_slice %19 {offsets = [32, 128], sizes = [8, 128], strides = [1, 1]} : vector<64x256xf32> to vector<8x128xf32>
    %115 = tpu.concatenate %113, %114 in 1 : vector<8x128xf32>, vector<8x128xf32> -> vector<8x256xf32>
    %116 = arith.truncf %112 : vector<8x64xf32> to vector<8x64xbf16>
    %cst_21 = arith.constant dense<0.000000e+00> : vector<8x256xf32>
    %117 = tpu.matmul %116, %14, %cst_21 {dimension_numbers = #tpu.dot_dimension_numbers<[1], [0], [0], [1], [0, 0, 1, 1], [], []>} : vector<8x64xbf16>, vector<64x256xbf16>, vector<8x256xf32> -> vector<8x256xf32>
    %118 = arith.addf %115, %117 : vector<8x256xf32>
    %119 = arith.negf %118 : vector<8x256xf32>
    %120 = math.exp %119 : vector<8x256xf32>
    %cst_22 = arith.constant 1.000000e+00 : f32
    %121 = vector.broadcast %cst_22 : f32 to vector<8x256xf32>
    %122 = arith.addf %121, %120 : vector<8x256xf32>
    %123 = arith.divf %121, %122 : vector<8x256xf32>
    %124 = math.tanh %118 : vector<8x256xf32>
    %125 = vector.extract_strided_slice %123 {offsets = [0, 32], sizes = [8, 32], strides = [1, 1]} : vector<8x256xf32> to vector<8x32xf32>
    %126 = arith.mulf %125, %100 : vector<8x32xf32>
    %127 = vector.extract_strided_slice %123 {offsets = [0, 0], sizes = [8, 32], strides = [1, 1]} : vector<8x256xf32> to vector<8x32xf32>
    %128 = vector.extract_strided_slice %124 {offsets = [0, 64], sizes = [8, 32], strides = [1, 1]} : vector<8x256xf32> to vector<8x32xf32>
    %129 = arith.mulf %127, %128 : vector<8x32xf32>
    %130 = arith.addf %126, %129 : vector<8x32xf32>
    %131 = vector.extract_strided_slice %123 {offsets = [0, 160], sizes = [8, 32], strides = [1, 1]} : vector<8x256xf32> to vector<8x32xf32>
    %132 = arith.mulf %131, %106 : vector<8x32xf32>
    %133 = vector.extract_strided_slice %123 {offsets = [0, 128], sizes = [8, 32], strides = [1, 1]} : vector<8x256xf32> to vector<8x32xf32>
    %134 = vector.extract_strided_slice %124 {offsets = [0, 192], sizes = [8, 32], strides = [1, 1]} : vector<8x256xf32> to vector<8x32xf32>
    %135 = arith.mulf %133, %134 : vector<8x32xf32>
    %136 = arith.addf %132, %135 : vector<8x32xf32>
    %137 = vector.extract_strided_slice %123 {offsets = [0, 96], sizes = [8, 32], strides = [1, 1]} : vector<8x256xf32> to vector<8x32xf32>
    %138 = vector.extract_strided_slice %123 {offsets = [0, 224], sizes = [8, 32], strides = [1, 1]} : vector<8x256xf32> to vector<8x32xf32>
    %139 = tpu.concatenate %137, %138 in 1 : vector<8x32xf32>, vector<8x32xf32> -> vector<8x64xf32>
    %140 = tpu.concatenate %130, %136 in 1 : vector<8x32xf32>, vector<8x32xf32> -> vector<8x64xf32>
    %141 = math.tanh %140 : vector<8x64xf32>
    %142 = arith.mulf %139, %141 : vector<8x64xf32>
    %143 = vector.extract_strided_slice %19 {offsets = [32, 0], sizes = [8, 128], strides = [1, 1]} : vector<64x256xf32> to vector<8x128xf32>
    %144 = vector.extract_strided_slice %19 {offsets = [24, 128], sizes = [8, 128], strides = [1, 1]} : vector<64x256xf32> to vector<8x128xf32>
    %145 = tpu.concatenate %143, %144 in 1 : vector<8x128xf32>, vector<8x128xf32> -> vector<8x256xf32>
    %146 = arith.truncf %142 : vector<8x64xf32> to vector<8x64xbf16>
    %cst_23 = arith.constant dense<0.000000e+00> : vector<8x256xf32>
    %147 = tpu.matmul %146, %14, %cst_23 {dimension_numbers = #tpu.dot_dimension_numbers<[1], [0], [0], [1], [0, 0, 1, 1], [], []>} : vector<8x64xbf16>, vector<64x256xbf16>, vector<8x256xf32> -> vector<8x256xf32>
    %148 = arith.addf %145, %147 : vector<8x256xf32>
    %149 = arith.negf %148 : vector<8x256xf32>
    %150 = math.exp %149 : vector<8x256xf32>
    %cst_24 = arith.constant 1.000000e+00 : f32
    %151 = vector.broadcast %cst_24 : f32 to vector<8x256xf32>
    %152 = arith.addf %151, %150 : vector<8x256xf32>
    %153 = arith.divf %151, %152 : vector<8x256xf32>
    %154 = math.tanh %148 : vector<8x256xf32>
    %155 = vector.extract_strided_slice %153 {offsets = [0, 32], sizes = [8, 32], strides = [1, 1]} : vector<8x256xf32> to vector<8x32xf32>
    %156 = arith.mulf %155, %130 : vector<8x32xf32>
    %157 = vector.extract_strided_slice %153 {offsets = [0, 0], sizes = [8, 32], strides = [1, 1]} : vector<8x256xf32> to vector<8x32xf32>
    %158 = vector.extract_strided_slice %154 {offsets = [0, 64], sizes = [8, 32], strides = [1, 1]} : vector<8x256xf32> to vector<8x32xf32>
    %159 = arith.mulf %157, %158 : vector<8x32xf32>
    %160 = arith.addf %156, %159 : vector<8x32xf32>
    %161 = vector.extract_strided_slice %153 {offsets = [0, 160], sizes = [8, 32], strides = [1, 1]} : vector<8x256xf32> to vector<8x32xf32>
    %162 = arith.mulf %161, %136 : vector<8x32xf32>
    %163 = vector.extract_strided_slice %153 {offsets = [0, 128], sizes = [8, 32], strides = [1, 1]} : vector<8x256xf32> to vector<8x32xf32>
    %164 = vector.extract_strided_slice %154 {offsets = [0, 192], sizes = [8, 32], strides = [1, 1]} : vector<8x256xf32> to vector<8x32xf32>
    %165 = arith.mulf %163, %164 : vector<8x32xf32>
    %166 = arith.addf %162, %165 : vector<8x32xf32>
    %167 = vector.extract_strided_slice %153 {offsets = [0, 96], sizes = [8, 32], strides = [1, 1]} : vector<8x256xf32> to vector<8x32xf32>
    %168 = vector.extract_strided_slice %153 {offsets = [0, 224], sizes = [8, 32], strides = [1, 1]} : vector<8x256xf32> to vector<8x32xf32>
    %169 = tpu.concatenate %167, %168 in 1 : vector<8x32xf32>, vector<8x32xf32> -> vector<8x64xf32>
    %170 = tpu.concatenate %160, %166 in 1 : vector<8x32xf32>, vector<8x32xf32> -> vector<8x64xf32>
    %171 = math.tanh %170 : vector<8x64xf32>
    %172 = arith.mulf %169, %171 : vector<8x64xf32>
    %173 = vector.extract_strided_slice %19 {offsets = [40, 0], sizes = [8, 128], strides = [1, 1]} : vector<64x256xf32> to vector<8x128xf32>
    %174 = vector.extract_strided_slice %19 {offsets = [16, 128], sizes = [8, 128], strides = [1, 1]} : vector<64x256xf32> to vector<8x128xf32>
    %175 = tpu.concatenate %173, %174 in 1 : vector<8x128xf32>, vector<8x128xf32> -> vector<8x256xf32>
    %176 = arith.truncf %172 : vector<8x64xf32> to vector<8x64xbf16>
    %cst_25 = arith.constant dense<0.000000e+00> : vector<8x256xf32>
    %177 = tpu.matmul %176, %14, %cst_25 {dimension_numbers = #tpu.dot_dimension_numbers<[1], [0], [0], [1], [0, 0, 1, 1], [], []>} : vector<8x64xbf16>, vector<64x256xbf16>, vector<8x256xf32> -> vector<8x256xf32>
    %178 = arith.addf %175, %177 : vector<8x256xf32>
    %179 = arith.negf %178 : vector<8x256xf32>
    %180 = math.exp %179 : vector<8x256xf32>
    %cst_26 = arith.constant 1.000000e+00 : f32
    %181 = vector.broadcast %cst_26 : f32 to vector<8x256xf32>
    %182 = arith.addf %181, %180 : vector<8x256xf32>
    %183 = arith.divf %181, %182 : vector<8x256xf32>
    %184 = math.tanh %178 : vector<8x256xf32>
    %185 = vector.extract_strided_slice %183 {offsets = [0, 32], sizes = [8, 32], strides = [1, 1]} : vector<8x256xf32> to vector<8x32xf32>
    %186 = arith.mulf %185, %160 : vector<8x32xf32>
    %187 = vector.extract_strided_slice %183 {offsets = [0, 0], sizes = [8, 32], strides = [1, 1]} : vector<8x256xf32> to vector<8x32xf32>
    %188 = vector.extract_strided_slice %184 {offsets = [0, 64], sizes = [8, 32], strides = [1, 1]} : vector<8x256xf32> to vector<8x32xf32>
    %189 = arith.mulf %187, %188 : vector<8x32xf32>
    %190 = arith.addf %186, %189 : vector<8x32xf32>
    %191 = vector.extract_strided_slice %183 {offsets = [0, 160], sizes = [8, 32], strides = [1, 1]} : vector<8x256xf32> to vector<8x32xf32>
    %192 = arith.mulf %191, %166 : vector<8x32xf32>
    %193 = vector.extract_strided_slice %183 {offsets = [0, 128], sizes = [8, 32], strides = [1, 1]} : vector<8x256xf32> to vector<8x32xf32>
    %194 = vector.extract_strided_slice %184 {offsets = [0, 192], sizes = [8, 32], strides = [1, 1]} : vector<8x256xf32> to vector<8x32xf32>
    %195 = arith.mulf %193, %194 : vector<8x32xf32>
    %196 = arith.addf %192, %195 : vector<8x32xf32>
    %197 = vector.extract_strided_slice %183 {offsets = [0, 96], sizes = [8, 32], strides = [1, 1]} : vector<8x256xf32> to vector<8x32xf32>
    %198 = vector.extract_strided_slice %183 {offsets = [0, 224], sizes = [8, 32], strides = [1, 1]} : vector<8x256xf32> to vector<8x32xf32>
    %199 = tpu.concatenate %197, %198 in 1 : vector<8x32xf32>, vector<8x32xf32> -> vector<8x64xf32>
    %200 = tpu.concatenate %190, %196 in 1 : vector<8x32xf32>, vector<8x32xf32> -> vector<8x64xf32>
    %201 = math.tanh %200 : vector<8x64xf32>
    %202 = arith.mulf %199, %201 : vector<8x64xf32>
    %203 = vector.extract_strided_slice %19 {offsets = [48, 0], sizes = [8, 128], strides = [1, 1]} : vector<64x256xf32> to vector<8x128xf32>
    %204 = vector.extract_strided_slice %19 {offsets = [8, 128], sizes = [8, 128], strides = [1, 1]} : vector<64x256xf32> to vector<8x128xf32>
    %205 = tpu.concatenate %203, %204 in 1 : vector<8x128xf32>, vector<8x128xf32> -> vector<8x256xf32>
    %206 = arith.truncf %202 : vector<8x64xf32> to vector<8x64xbf16>
    %cst_27 = arith.constant dense<0.000000e+00> : vector<8x256xf32>
    %207 = tpu.matmul %206, %14, %cst_27 {dimension_numbers = #tpu.dot_dimension_numbers<[1], [0], [0], [1], [0, 0, 1, 1], [], []>} : vector<8x64xbf16>, vector<64x256xbf16>, vector<8x256xf32> -> vector<8x256xf32>
    %208 = arith.addf %205, %207 : vector<8x256xf32>
    %209 = arith.negf %208 : vector<8x256xf32>
    %210 = math.exp %209 : vector<8x256xf32>
    %cst_28 = arith.constant 1.000000e+00 : f32
    %211 = vector.broadcast %cst_28 : f32 to vector<8x256xf32>
    %212 = arith.addf %211, %210 : vector<8x256xf32>
    %213 = arith.divf %211, %212 : vector<8x256xf32>
    %214 = math.tanh %208 : vector<8x256xf32>
    %215 = vector.extract_strided_slice %213 {offsets = [0, 32], sizes = [8, 32], strides = [1, 1]} : vector<8x256xf32> to vector<8x32xf32>
    %216 = arith.mulf %215, %190 : vector<8x32xf32>
    %217 = vector.extract_strided_slice %213 {offsets = [0, 0], sizes = [8, 32], strides = [1, 1]} : vector<8x256xf32> to vector<8x32xf32>
    %218 = vector.extract_strided_slice %214 {offsets = [0, 64], sizes = [8, 32], strides = [1, 1]} : vector<8x256xf32> to vector<8x32xf32>
    %219 = arith.mulf %217, %218 : vector<8x32xf32>
    %220 = arith.addf %216, %219 : vector<8x32xf32>
    %221 = vector.extract_strided_slice %213 {offsets = [0, 160], sizes = [8, 32], strides = [1, 1]} : vector<8x256xf32> to vector<8x32xf32>
    %222 = arith.mulf %221, %196 : vector<8x32xf32>
    %223 = vector.extract_strided_slice %213 {offsets = [0, 128], sizes = [8, 32], strides = [1, 1]} : vector<8x256xf32> to vector<8x32xf32>
    %224 = vector.extract_strided_slice %214 {offsets = [0, 192], sizes = [8, 32], strides = [1, 1]} : vector<8x256xf32> to vector<8x32xf32>
    %225 = arith.mulf %223, %224 : vector<8x32xf32>
    %226 = arith.addf %222, %225 : vector<8x32xf32>
    %227 = vector.extract_strided_slice %213 {offsets = [0, 96], sizes = [8, 32], strides = [1, 1]} : vector<8x256xf32> to vector<8x32xf32>
    %228 = vector.extract_strided_slice %213 {offsets = [0, 224], sizes = [8, 32], strides = [1, 1]} : vector<8x256xf32> to vector<8x32xf32>
    %229 = tpu.concatenate %227, %228 in 1 : vector<8x32xf32>, vector<8x32xf32> -> vector<8x64xf32>
    %230 = tpu.concatenate %220, %226 in 1 : vector<8x32xf32>, vector<8x32xf32> -> vector<8x64xf32>
    %231 = math.tanh %230 : vector<8x64xf32>
    %232 = arith.mulf %229, %231 : vector<8x64xf32>
    %233 = vector.extract_strided_slice %19 {offsets = [56, 0], sizes = [8, 128], strides = [1, 1]} : vector<64x256xf32> to vector<8x128xf32>
    %234 = vector.extract_strided_slice %19 {offsets = [0, 128], sizes = [8, 128], strides = [1, 1]} : vector<64x256xf32> to vector<8x128xf32>
    %235 = tpu.concatenate %233, %234 in 1 : vector<8x128xf32>, vector<8x128xf32> -> vector<8x256xf32>
    %236 = arith.truncf %232 : vector<8x64xf32> to vector<8x64xbf16>
    %cst_29 = arith.constant dense<0.000000e+00> : vector<8x256xf32>
    %237 = tpu.matmul %236, %14, %cst_29 {dimension_numbers = #tpu.dot_dimension_numbers<[1], [0], [0], [1], [0, 0, 1, 1], [], []>} : vector<8x64xbf16>, vector<64x256xbf16>, vector<8x256xf32> -> vector<8x256xf32>
    %238 = arith.addf %235, %237 : vector<8x256xf32>
    %239 = arith.negf %238 : vector<8x256xf32>
    %240 = math.exp %239 : vector<8x256xf32>
    %cst_30 = arith.constant 1.000000e+00 : f32
    %241 = vector.broadcast %cst_30 : f32 to vector<8x256xf32>
    %242 = arith.addf %241, %240 : vector<8x256xf32>
    %243 = arith.divf %241, %242 : vector<8x256xf32>
    %244 = math.tanh %238 : vector<8x256xf32>
    %245 = vector.extract_strided_slice %243 {offsets = [0, 32], sizes = [8, 32], strides = [1, 1]} : vector<8x256xf32> to vector<8x32xf32>
    %246 = arith.mulf %245, %220 : vector<8x32xf32>
    %247 = vector.extract_strided_slice %243 {offsets = [0, 0], sizes = [8, 32], strides = [1, 1]} : vector<8x256xf32> to vector<8x32xf32>
    %248 = vector.extract_strided_slice %244 {offsets = [0, 64], sizes = [8, 32], strides = [1, 1]} : vector<8x256xf32> to vector<8x32xf32>
    %249 = arith.mulf %247, %248 : vector<8x32xf32>
    %250 = arith.addf %246, %249 : vector<8x32xf32>
    %251 = vector.extract_strided_slice %243 {offsets = [0, 160], sizes = [8, 32], strides = [1, 1]} : vector<8x256xf32> to vector<8x32xf32>
    %252 = arith.mulf %251, %226 : vector<8x32xf32>
    %253 = vector.extract_strided_slice %243 {offsets = [0, 128], sizes = [8, 32], strides = [1, 1]} : vector<8x256xf32> to vector<8x32xf32>
    %254 = vector.extract_strided_slice %244 {offsets = [0, 192], sizes = [8, 32], strides = [1, 1]} : vector<8x256xf32> to vector<8x32xf32>
    %255 = arith.mulf %253, %254 : vector<8x32xf32>
    %256 = arith.addf %252, %255 : vector<8x32xf32>
    %257 = vector.extract_strided_slice %243 {offsets = [0, 96], sizes = [8, 32], strides = [1, 1]} : vector<8x256xf32> to vector<8x32xf32>
    %258 = vector.extract_strided_slice %243 {offsets = [0, 224], sizes = [8, 32], strides = [1, 1]} : vector<8x256xf32> to vector<8x32xf32>
    %259 = tpu.concatenate %257, %258 in 1 : vector<8x32xf32>, vector<8x32xf32> -> vector<8x64xf32>
    %260 = tpu.concatenate %250, %256 in 1 : vector<8x32xf32>, vector<8x32xf32> -> vector<8x64xf32>
    %261 = math.tanh %260 : vector<8x64xf32>
    %262 = arith.mulf %259, %261 : vector<8x64xf32>
    %263 = tpu.concatenate %52, %82, %112, %142, %172, %202, %232, %262 in 0 : vector<8x64xf32>, vector<8x64xf32>, vector<8x64xf32>, vector<8x64xf32>, vector<8x64xf32>, vector<8x64xf32>, vector<8x64xf32>, vector<8x64xf32> -> vector<64x64xf32>
    %264 = vector.extract_strided_slice %263 {offsets = [0, 0], sizes = [64, 32], strides = [1, 1]} : vector<64x64xf32> to vector<64x32xf32>
    %265 = arith.truncf %264 : vector<64x32xf32> to vector<64x32xbf16>
    %266 = tpu.concatenate %262, %232, %202, %172, %142, %112, %82, %52 in 0 : vector<8x64xf32>, vector<8x64xf32>, vector<8x64xf32>, vector<8x64xf32>, vector<8x64xf32>, vector<8x64xf32>, vector<8x64xf32>, vector<8x64xf32> -> vector<64x64xf32>
    %267 = vector.extract_strided_slice %266 {offsets = [0, 32], sizes = [64, 32], strides = [1, 1]} : vector<64x64xf32> to vector<64x32xf32>
    %268 = arith.truncf %267 : vector<64x32xf32> to vector<64x32xbf16>
    %c0_31 = arith.constant 0 : index
    %c0_32 = arith.constant 0 : index
    %269 = vector.load %arg5[%c0_31, %c0_32] : memref<64x256xf32, #tpu.memory_space<vmem>>, vector<64x256xf32>
    %270 = arith.truncf %269 : vector<64x256xf32> to vector<64x256xbf16>
    %c0_33 = arith.constant 0 : index
    %c0_34 = arith.constant 0 : index
    %271 = vector.load %arg6[%c0_33, %c0_34] : memref<64x256xf32, #tpu.memory_space<vmem>>, vector<64x256xf32>
    %272 = arith.truncf %271 : vector<64x256xf32> to vector<64x256xbf16>
    %c0_35 = arith.constant 0 : index
    %c0_36 = arith.constant 0 : index
    %273 = vector.load %arg7[%c0_35, %c0_36] : memref<1x256xf32, #tpu.memory_space<vmem>>, vector<1x256xf32>
    %274 = vector.extract_strided_slice %270 {offsets = [0, 0], sizes = [32, 256], strides = [1, 1]} : vector<64x256xbf16> to vector<32x256xbf16>
    %cst_37 = arith.constant dense<0.000000e+00> : vector<64x256xf32>
    %275 = tpu.matmul %265, %274, %cst_37 {dimension_numbers = #tpu.dot_dimension_numbers<[1], [0], [0], [1], [0, 0, 1, 1], [], []>} : vector<64x32xbf16>, vector<32x256xbf16>, vector<64x256xf32> -> vector<64x256xf32>
    %276 = vector.extract_strided_slice %270 {offsets = [32, 0], sizes = [32, 256], strides = [1, 1]} : vector<64x256xbf16> to vector<32x256xbf16>
    %cst_38 = arith.constant dense<0.000000e+00> : vector<64x256xf32>
    %277 = tpu.matmul %268, %276, %cst_38 {dimension_numbers = #tpu.dot_dimension_numbers<[1], [0], [0], [1], [0, 0, 1, 1], [], []>} : vector<64x32xbf16>, vector<32x256xbf16>, vector<64x256xf32> -> vector<64x256xf32>
    %278 = arith.addf %275, %277 : vector<64x256xf32>
    %279 = vector.broadcast %273 : vector<1x256xf32> to vector<64x256xf32>
    %280 = arith.addf %278, %279 : vector<64x256xf32>
    %cst_39 = arith.constant 0.000000e+00 : f32
    %281 = vector.broadcast %cst_39 : f32 to vector<8x64xf32>
    %cst_40 = arith.constant 0.000000e+00 : f32
    %282 = vector.broadcast %cst_40 : f32 to vector<8x32xf32>
    %cst_41 = arith.constant 0.000000e+00 : f32
    %283 = vector.broadcast %cst_41 : f32 to vector<8x32xf32>
    %284 = vector.extract_strided_slice %280 {offsets = [0, 0], sizes = [8, 128], strides = [1, 1]} : vector<64x256xf32> to vector<8x128xf32>
    %285 = vector.extract_strided_slice %280 {offsets = [56, 128], sizes = [8, 128], strides = [1, 1]} : vector<64x256xf32> to vector<8x128xf32>
    %286 = tpu.concatenate %284, %285 in 1 : vector<8x128xf32>, vector<8x128xf32> -> vector<8x256xf32>
    %287 = arith.truncf %281 : vector<8x64xf32> to vector<8x64xbf16>
    %cst_42 = arith.constant dense<0.000000e+00> : vector<8x256xf32>
    %288 = tpu.matmul %287, %272, %cst_42 {dimension_numbers = #tpu.dot_dimension_numbers<[1], [0], [0], [1], [0, 0, 1, 1], [], []>} : vector<8x64xbf16>, vector<64x256xbf16>, vector<8x256xf32> -> vector<8x256xf32>
    %289 = arith.addf %286, %288 : vector<8x256xf32>
    %290 = arith.negf %289 : vector<8x256xf32>
    %291 = math.exp %290 : vector<8x256xf32>
    %cst_43 = arith.constant 1.000000e+00 : f32
    %292 = vector.broadcast %cst_43 : f32 to vector<8x256xf32>
    %293 = arith.addf %292, %291 : vector<8x256xf32>
    %294 = arith.divf %292, %293 : vector<8x256xf32>
    %295 = math.tanh %289 : vector<8x256xf32>
    %296 = vector.extract_strided_slice %294 {offsets = [0, 32], sizes = [8, 32], strides = [1, 1]} : vector<8x256xf32> to vector<8x32xf32>
    %297 = arith.mulf %296, %282 : vector<8x32xf32>
    %298 = vector.extract_strided_slice %294 {offsets = [0, 0], sizes = [8, 32], strides = [1, 1]} : vector<8x256xf32> to vector<8x32xf32>
    %299 = vector.extract_strided_slice %295 {offsets = [0, 64], sizes = [8, 32], strides = [1, 1]} : vector<8x256xf32> to vector<8x32xf32>
    %300 = arith.mulf %298, %299 : vector<8x32xf32>
    %301 = arith.addf %297, %300 : vector<8x32xf32>
    %302 = vector.extract_strided_slice %294 {offsets = [0, 160], sizes = [8, 32], strides = [1, 1]} : vector<8x256xf32> to vector<8x32xf32>
    %303 = arith.mulf %302, %283 : vector<8x32xf32>
    %304 = vector.extract_strided_slice %294 {offsets = [0, 128], sizes = [8, 32], strides = [1, 1]} : vector<8x256xf32> to vector<8x32xf32>
    %305 = vector.extract_strided_slice %295 {offsets = [0, 192], sizes = [8, 32], strides = [1, 1]} : vector<8x256xf32> to vector<8x32xf32>
    %306 = arith.mulf %304, %305 : vector<8x32xf32>
    %307 = arith.addf %303, %306 : vector<8x32xf32>
    %308 = vector.extract_strided_slice %294 {offsets = [0, 96], sizes = [8, 32], strides = [1, 1]} : vector<8x256xf32> to vector<8x32xf32>
    %309 = vector.extract_strided_slice %294 {offsets = [0, 224], sizes = [8, 32], strides = [1, 1]} : vector<8x256xf32> to vector<8x32xf32>
    %310 = tpu.concatenate %308, %309 in 1 : vector<8x32xf32>, vector<8x32xf32> -> vector<8x64xf32>
    %311 = tpu.concatenate %301, %307 in 1 : vector<8x32xf32>, vector<8x32xf32> -> vector<8x64xf32>
    %312 = math.tanh %311 : vector<8x64xf32>
    %313 = arith.mulf %310, %312 : vector<8x64xf32>
    %314 = vector.extract_strided_slice %313 {offsets = [0, 32], sizes = [8, 32], strides = [1, 1]} : vector<8x64xf32> to vector<8x32xf32>
    %315 = vector.extract_strided_slice %280 {offsets = [8, 0], sizes = [8, 128], strides = [1, 1]} : vector<64x256xf32> to vector<8x128xf32>
    %316 = vector.extract_strided_slice %280 {offsets = [48, 128], sizes = [8, 128], strides = [1, 1]} : vector<64x256xf32> to vector<8x128xf32>
    %317 = tpu.concatenate %315, %316 in 1 : vector<8x128xf32>, vector<8x128xf32> -> vector<8x256xf32>
    %318 = arith.truncf %313 : vector<8x64xf32> to vector<8x64xbf16>
    %cst_44 = arith.constant dense<0.000000e+00> : vector<8x256xf32>
    %319 = tpu.matmul %318, %272, %cst_44 {dimension_numbers = #tpu.dot_dimension_numbers<[1], [0], [0], [1], [0, 0, 1, 1], [], []>} : vector<8x64xbf16>, vector<64x256xbf16>, vector<8x256xf32> -> vector<8x256xf32>
    %320 = arith.addf %317, %319 : vector<8x256xf32>
    %321 = arith.negf %320 : vector<8x256xf32>
    %322 = math.exp %321 : vector<8x256xf32>
    %cst_45 = arith.constant 1.000000e+00 : f32
    %323 = vector.broadcast %cst_45 : f32 to vector<8x256xf32>
    %324 = arith.addf %323, %322 : vector<8x256xf32>
    %325 = arith.divf %323, %324 : vector<8x256xf32>
    %326 = math.tanh %320 : vector<8x256xf32>
    %327 = vector.extract_strided_slice %325 {offsets = [0, 32], sizes = [8, 32], strides = [1, 1]} : vector<8x256xf32> to vector<8x32xf32>
    %328 = arith.mulf %327, %301 : vector<8x32xf32>
    %329 = vector.extract_strided_slice %325 {offsets = [0, 0], sizes = [8, 32], strides = [1, 1]} : vector<8x256xf32> to vector<8x32xf32>
    %330 = vector.extract_strided_slice %326 {offsets = [0, 64], sizes = [8, 32], strides = [1, 1]} : vector<8x256xf32> to vector<8x32xf32>
    %331 = arith.mulf %329, %330 : vector<8x32xf32>
    %332 = arith.addf %328, %331 : vector<8x32xf32>
    %333 = vector.extract_strided_slice %325 {offsets = [0, 160], sizes = [8, 32], strides = [1, 1]} : vector<8x256xf32> to vector<8x32xf32>
    %334 = arith.mulf %333, %307 : vector<8x32xf32>
    %335 = vector.extract_strided_slice %325 {offsets = [0, 128], sizes = [8, 32], strides = [1, 1]} : vector<8x256xf32> to vector<8x32xf32>
    %336 = vector.extract_strided_slice %326 {offsets = [0, 192], sizes = [8, 32], strides = [1, 1]} : vector<8x256xf32> to vector<8x32xf32>
    %337 = arith.mulf %335, %336 : vector<8x32xf32>
    %338 = arith.addf %334, %337 : vector<8x32xf32>
    %339 = vector.extract_strided_slice %325 {offsets = [0, 96], sizes = [8, 32], strides = [1, 1]} : vector<8x256xf32> to vector<8x32xf32>
    %340 = vector.extract_strided_slice %325 {offsets = [0, 224], sizes = [8, 32], strides = [1, 1]} : vector<8x256xf32> to vector<8x32xf32>
    %341 = tpu.concatenate %339, %340 in 1 : vector<8x32xf32>, vector<8x32xf32> -> vector<8x64xf32>
    %342 = tpu.concatenate %332, %338 in 1 : vector<8x32xf32>, vector<8x32xf32> -> vector<8x64xf32>
    %343 = math.tanh %342 : vector<8x64xf32>
    %344 = arith.mulf %341, %343 : vector<8x64xf32>
    %345 = vector.extract_strided_slice %280 {offsets = [16, 0], sizes = [8, 128], strides = [1, 1]} : vector<64x256xf32> to vector<8x128xf32>
    %346 = vector.extract_strided_slice %280 {offsets = [40, 128], sizes = [8, 128], strides = [1, 1]} : vector<64x256xf32> to vector<8x128xf32>
    %347 = tpu.concatenate %345, %346 in 1 : vector<8x128xf32>, vector<8x128xf32> -> vector<8x256xf32>
    %348 = arith.truncf %344 : vector<8x64xf32> to vector<8x64xbf16>
    %cst_46 = arith.constant dense<0.000000e+00> : vector<8x256xf32>
    %349 = tpu.matmul %348, %272, %cst_46 {dimension_numbers = #tpu.dot_dimension_numbers<[1], [0], [0], [1], [0, 0, 1, 1], [], []>} : vector<8x64xbf16>, vector<64x256xbf16>, vector<8x256xf32> -> vector<8x256xf32>
    %350 = arith.addf %347, %349 : vector<8x256xf32>
    %351 = arith.negf %350 : vector<8x256xf32>
    %352 = math.exp %351 : vector<8x256xf32>
    %cst_47 = arith.constant 1.000000e+00 : f32
    %353 = vector.broadcast %cst_47 : f32 to vector<8x256xf32>
    %354 = arith.addf %353, %352 : vector<8x256xf32>
    %355 = arith.divf %353, %354 : vector<8x256xf32>
    %356 = math.tanh %350 : vector<8x256xf32>
    %357 = vector.extract_strided_slice %355 {offsets = [0, 32], sizes = [8, 32], strides = [1, 1]} : vector<8x256xf32> to vector<8x32xf32>
    %358 = arith.mulf %357, %332 : vector<8x32xf32>
    %359 = vector.extract_strided_slice %355 {offsets = [0, 0], sizes = [8, 32], strides = [1, 1]} : vector<8x256xf32> to vector<8x32xf32>
    %360 = vector.extract_strided_slice %356 {offsets = [0, 64], sizes = [8, 32], strides = [1, 1]} : vector<8x256xf32> to vector<8x32xf32>
    %361 = arith.mulf %359, %360 : vector<8x32xf32>
    %362 = arith.addf %358, %361 : vector<8x32xf32>
    %363 = vector.extract_strided_slice %355 {offsets = [0, 160], sizes = [8, 32], strides = [1, 1]} : vector<8x256xf32> to vector<8x32xf32>
    %364 = arith.mulf %363, %338 : vector<8x32xf32>
    %365 = vector.extract_strided_slice %355 {offsets = [0, 128], sizes = [8, 32], strides = [1, 1]} : vector<8x256xf32> to vector<8x32xf32>
    %366 = vector.extract_strided_slice %356 {offsets = [0, 192], sizes = [8, 32], strides = [1, 1]} : vector<8x256xf32> to vector<8x32xf32>
    %367 = arith.mulf %365, %366 : vector<8x32xf32>
    %368 = arith.addf %364, %367 : vector<8x32xf32>
    %369 = vector.extract_strided_slice %355 {offsets = [0, 96], sizes = [8, 32], strides = [1, 1]} : vector<8x256xf32> to vector<8x32xf32>
    %370 = vector.extract_strided_slice %355 {offsets = [0, 224], sizes = [8, 32], strides = [1, 1]} : vector<8x256xf32> to vector<8x32xf32>
    %371 = tpu.concatenate %369, %370 in 1 : vector<8x32xf32>, vector<8x32xf32> -> vector<8x64xf32>
    %372 = tpu.concatenate %362, %368 in 1 : vector<8x32xf32>, vector<8x32xf32> -> vector<8x64xf32>
    %373 = math.tanh %372 : vector<8x64xf32>
    %374 = arith.mulf %371, %373 : vector<8x64xf32>
    %375 = vector.extract_strided_slice %280 {offsets = [24, 0], sizes = [8, 128], strides = [1, 1]} : vector<64x256xf32> to vector<8x128xf32>
    %376 = vector.extract_strided_slice %280 {offsets = [32, 128], sizes = [8, 128], strides = [1, 1]} : vector<64x256xf32> to vector<8x128xf32>
    %377 = tpu.concatenate %375, %376 in 1 : vector<8x128xf32>, vector<8x128xf32> -> vector<8x256xf32>
    %378 = arith.truncf %374 : vector<8x64xf32> to vector<8x64xbf16>
    %cst_48 = arith.constant dense<0.000000e+00> : vector<8x256xf32>
    %379 = tpu.matmul %378, %272, %cst_48 {dimension_numbers = #tpu.dot_dimension_numbers<[1], [0], [0], [1], [0, 0, 1, 1], [], []>} : vector<8x64xbf16>, vector<64x256xbf16>, vector<8x256xf32> -> vector<8x256xf32>
    %380 = arith.addf %377, %379 : vector<8x256xf32>
    %381 = arith.negf %380 : vector<8x256xf32>
    %382 = math.exp %381 : vector<8x256xf32>
    %cst_49 = arith.constant 1.000000e+00 : f32
    %383 = vector.broadcast %cst_49 : f32 to vector<8x256xf32>
    %384 = arith.addf %383, %382 : vector<8x256xf32>
    %385 = arith.divf %383, %384 : vector<8x256xf32>
    %386 = math.tanh %380 : vector<8x256xf32>
    %387 = vector.extract_strided_slice %385 {offsets = [0, 32], sizes = [8, 32], strides = [1, 1]} : vector<8x256xf32> to vector<8x32xf32>
    %388 = arith.mulf %387, %362 : vector<8x32xf32>
    %389 = vector.extract_strided_slice %385 {offsets = [0, 0], sizes = [8, 32], strides = [1, 1]} : vector<8x256xf32> to vector<8x32xf32>
    %390 = vector.extract_strided_slice %386 {offsets = [0, 64], sizes = [8, 32], strides = [1, 1]} : vector<8x256xf32> to vector<8x32xf32>
    %391 = arith.mulf %389, %390 : vector<8x32xf32>
    %392 = arith.addf %388, %391 : vector<8x32xf32>
    %393 = vector.extract_strided_slice %385 {offsets = [0, 160], sizes = [8, 32], strides = [1, 1]} : vector<8x256xf32> to vector<8x32xf32>
    %394 = arith.mulf %393, %368 : vector<8x32xf32>
    %395 = vector.extract_strided_slice %385 {offsets = [0, 128], sizes = [8, 32], strides = [1, 1]} : vector<8x256xf32> to vector<8x32xf32>
    %396 = vector.extract_strided_slice %386 {offsets = [0, 192], sizes = [8, 32], strides = [1, 1]} : vector<8x256xf32> to vector<8x32xf32>
    %397 = arith.mulf %395, %396 : vector<8x32xf32>
    %398 = arith.addf %394, %397 : vector<8x32xf32>
    %399 = vector.extract_strided_slice %385 {offsets = [0, 96], sizes = [8, 32], strides = [1, 1]} : vector<8x256xf32> to vector<8x32xf32>
    %400 = vector.extract_strided_slice %385 {offsets = [0, 224], sizes = [8, 32], strides = [1, 1]} : vector<8x256xf32> to vector<8x32xf32>
    %401 = tpu.concatenate %399, %400 in 1 : vector<8x32xf32>, vector<8x32xf32> -> vector<8x64xf32>
    %402 = tpu.concatenate %392, %398 in 1 : vector<8x32xf32>, vector<8x32xf32> -> vector<8x64xf32>
    %403 = math.tanh %402 : vector<8x64xf32>
    %404 = arith.mulf %401, %403 : vector<8x64xf32>
    %405 = vector.extract_strided_slice %280 {offsets = [32, 0], sizes = [8, 128], strides = [1, 1]} : vector<64x256xf32> to vector<8x128xf32>
    %406 = vector.extract_strided_slice %280 {offsets = [24, 128], sizes = [8, 128], strides = [1, 1]} : vector<64x256xf32> to vector<8x128xf32>
    %407 = tpu.concatenate %405, %406 in 1 : vector<8x128xf32>, vector<8x128xf32> -> vector<8x256xf32>
    %408 = arith.truncf %404 : vector<8x64xf32> to vector<8x64xbf16>
    %cst_50 = arith.constant dense<0.000000e+00> : vector<8x256xf32>
    %409 = tpu.matmul %408, %272, %cst_50 {dimension_numbers = #tpu.dot_dimension_numbers<[1], [0], [0], [1], [0, 0, 1, 1], [], []>} : vector<8x64xbf16>, vector<64x256xbf16>, vector<8x256xf32> -> vector<8x256xf32>
    %410 = arith.addf %407, %409 : vector<8x256xf32>
    %411 = arith.negf %410 : vector<8x256xf32>
    %412 = math.exp %411 : vector<8x256xf32>
    %cst_51 = arith.constant 1.000000e+00 : f32
    %413 = vector.broadcast %cst_51 : f32 to vector<8x256xf32>
    %414 = arith.addf %413, %412 : vector<8x256xf32>
    %415 = arith.divf %413, %414 : vector<8x256xf32>
    %416 = math.tanh %410 : vector<8x256xf32>
    %417 = vector.extract_strided_slice %415 {offsets = [0, 32], sizes = [8, 32], strides = [1, 1]} : vector<8x256xf32> to vector<8x32xf32>
    %418 = arith.mulf %417, %392 : vector<8x32xf32>
    %419 = vector.extract_strided_slice %415 {offsets = [0, 0], sizes = [8, 32], strides = [1, 1]} : vector<8x256xf32> to vector<8x32xf32>
    %420 = vector.extract_strided_slice %416 {offsets = [0, 64], sizes = [8, 32], strides = [1, 1]} : vector<8x256xf32> to vector<8x32xf32>
    %421 = arith.mulf %419, %420 : vector<8x32xf32>
    %422 = arith.addf %418, %421 : vector<8x32xf32>
    %423 = vector.extract_strided_slice %415 {offsets = [0, 160], sizes = [8, 32], strides = [1, 1]} : vector<8x256xf32> to vector<8x32xf32>
    %424 = arith.mulf %423, %398 : vector<8x32xf32>
    %425 = vector.extract_strided_slice %415 {offsets = [0, 128], sizes = [8, 32], strides = [1, 1]} : vector<8x256xf32> to vector<8x32xf32>
    %426 = vector.extract_strided_slice %416 {offsets = [0, 192], sizes = [8, 32], strides = [1, 1]} : vector<8x256xf32> to vector<8x32xf32>
    %427 = arith.mulf %425, %426 : vector<8x32xf32>
    %428 = arith.addf %424, %427 : vector<8x32xf32>
    %429 = vector.extract_strided_slice %415 {offsets = [0, 96], sizes = [8, 32], strides = [1, 1]} : vector<8x256xf32> to vector<8x32xf32>
    %430 = vector.extract_strided_slice %415 {offsets = [0, 224], sizes = [8, 32], strides = [1, 1]} : vector<8x256xf32> to vector<8x32xf32>
    %431 = tpu.concatenate %429, %430 in 1 : vector<8x32xf32>, vector<8x32xf32> -> vector<8x64xf32>
    %432 = tpu.concatenate %422, %428 in 1 : vector<8x32xf32>, vector<8x32xf32> -> vector<8x64xf32>
    %433 = math.tanh %432 : vector<8x64xf32>
    %434 = arith.mulf %431, %433 : vector<8x64xf32>
    %435 = vector.extract_strided_slice %280 {offsets = [40, 0], sizes = [8, 128], strides = [1, 1]} : vector<64x256xf32> to vector<8x128xf32>
    %436 = vector.extract_strided_slice %280 {offsets = [16, 128], sizes = [8, 128], strides = [1, 1]} : vector<64x256xf32> to vector<8x128xf32>
    %437 = tpu.concatenate %435, %436 in 1 : vector<8x128xf32>, vector<8x128xf32> -> vector<8x256xf32>
    %438 = arith.truncf %434 : vector<8x64xf32> to vector<8x64xbf16>
    %cst_52 = arith.constant dense<0.000000e+00> : vector<8x256xf32>
    %439 = tpu.matmul %438, %272, %cst_52 {dimension_numbers = #tpu.dot_dimension_numbers<[1], [0], [0], [1], [0, 0, 1, 1], [], []>} : vector<8x64xbf16>, vector<64x256xbf16>, vector<8x256xf32> -> vector<8x256xf32>
    %440 = arith.addf %437, %439 : vector<8x256xf32>
    %441 = arith.negf %440 : vector<8x256xf32>
    %442 = math.exp %441 : vector<8x256xf32>
    %cst_53 = arith.constant 1.000000e+00 : f32
    %443 = vector.broadcast %cst_53 : f32 to vector<8x256xf32>
    %444 = arith.addf %443, %442 : vector<8x256xf32>
    %445 = arith.divf %443, %444 : vector<8x256xf32>
    %446 = math.tanh %440 : vector<8x256xf32>
    %447 = vector.extract_strided_slice %445 {offsets = [0, 32], sizes = [8, 32], strides = [1, 1]} : vector<8x256xf32> to vector<8x32xf32>
    %448 = arith.mulf %447, %422 : vector<8x32xf32>
    %449 = vector.extract_strided_slice %445 {offsets = [0, 0], sizes = [8, 32], strides = [1, 1]} : vector<8x256xf32> to vector<8x32xf32>
    %450 = vector.extract_strided_slice %446 {offsets = [0, 64], sizes = [8, 32], strides = [1, 1]} : vector<8x256xf32> to vector<8x32xf32>
    %451 = arith.mulf %449, %450 : vector<8x32xf32>
    %452 = arith.addf %448, %451 : vector<8x32xf32>
    %453 = vector.extract_strided_slice %445 {offsets = [0, 160], sizes = [8, 32], strides = [1, 1]} : vector<8x256xf32> to vector<8x32xf32>
    %454 = arith.mulf %453, %428 : vector<8x32xf32>
    %455 = vector.extract_strided_slice %445 {offsets = [0, 128], sizes = [8, 32], strides = [1, 1]} : vector<8x256xf32> to vector<8x32xf32>
    %456 = vector.extract_strided_slice %446 {offsets = [0, 192], sizes = [8, 32], strides = [1, 1]} : vector<8x256xf32> to vector<8x32xf32>
    %457 = arith.mulf %455, %456 : vector<8x32xf32>
    %458 = arith.addf %454, %457 : vector<8x32xf32>
    %459 = vector.extract_strided_slice %445 {offsets = [0, 96], sizes = [8, 32], strides = [1, 1]} : vector<8x256xf32> to vector<8x32xf32>
    %460 = vector.extract_strided_slice %445 {offsets = [0, 224], sizes = [8, 32], strides = [1, 1]} : vector<8x256xf32> to vector<8x32xf32>
    %461 = tpu.concatenate %459, %460 in 1 : vector<8x32xf32>, vector<8x32xf32> -> vector<8x64xf32>
    %462 = tpu.concatenate %452, %458 in 1 : vector<8x32xf32>, vector<8x32xf32> -> vector<8x64xf32>
    %463 = math.tanh %462 : vector<8x64xf32>
    %464 = arith.mulf %461, %463 : vector<8x64xf32>
    %465 = vector.extract_strided_slice %280 {offsets = [48, 0], sizes = [8, 128], strides = [1, 1]} : vector<64x256xf32> to vector<8x128xf32>
    %466 = vector.extract_strided_slice %280 {offsets = [8, 128], sizes = [8, 128], strides = [1, 1]} : vector<64x256xf32> to vector<8x128xf32>
    %467 = tpu.concatenate %465, %466 in 1 : vector<8x128xf32>, vector<8x128xf32> -> vector<8x256xf32>
    %468 = arith.truncf %464 : vector<8x64xf32> to vector<8x64xbf16>
    %cst_54 = arith.constant dense<0.000000e+00> : vector<8x256xf32>
    %469 = tpu.matmul %468, %272, %cst_54 {dimension_numbers = #tpu.dot_dimension_numbers<[1], [0], [0], [1], [0, 0, 1, 1], [], []>} : vector<8x64xbf16>, vector<64x256xbf16>, vector<8x256xf32> -> vector<8x256xf32>
    %470 = arith.addf %467, %469 : vector<8x256xf32>
    %471 = arith.negf %470 : vector<8x256xf32>
    %472 = math.exp %471 : vector<8x256xf32>
    %cst_55 = arith.constant 1.000000e+00 : f32
    %473 = vector.broadcast %cst_55 : f32 to vector<8x256xf32>
    %474 = arith.addf %473, %472 : vector<8x256xf32>
    %475 = arith.divf %473, %474 : vector<8x256xf32>
    %476 = math.tanh %470 : vector<8x256xf32>
    %477 = vector.extract_strided_slice %475 {offsets = [0, 32], sizes = [8, 32], strides = [1, 1]} : vector<8x256xf32> to vector<8x32xf32>
    %478 = arith.mulf %477, %452 : vector<8x32xf32>
    %479 = vector.extract_strided_slice %475 {offsets = [0, 0], sizes = [8, 32], strides = [1, 1]} : vector<8x256xf32> to vector<8x32xf32>
    %480 = vector.extract_strided_slice %476 {offsets = [0, 64], sizes = [8, 32], strides = [1, 1]} : vector<8x256xf32> to vector<8x32xf32>
    %481 = arith.mulf %479, %480 : vector<8x32xf32>
    %482 = arith.addf %478, %481 : vector<8x32xf32>
    %483 = vector.extract_strided_slice %475 {offsets = [0, 160], sizes = [8, 32], strides = [1, 1]} : vector<8x256xf32> to vector<8x32xf32>
    %484 = arith.mulf %483, %458 : vector<8x32xf32>
    %485 = vector.extract_strided_slice %475 {offsets = [0, 128], sizes = [8, 32], strides = [1, 1]} : vector<8x256xf32> to vector<8x32xf32>
    %486 = vector.extract_strided_slice %476 {offsets = [0, 192], sizes = [8, 32], strides = [1, 1]} : vector<8x256xf32> to vector<8x32xf32>
    %487 = arith.mulf %485, %486 : vector<8x32xf32>
    %488 = arith.addf %484, %487 : vector<8x32xf32>
    %489 = vector.extract_strided_slice %475 {offsets = [0, 96], sizes = [8, 32], strides = [1, 1]} : vector<8x256xf32> to vector<8x32xf32>
    %490 = vector.extract_strided_slice %475 {offsets = [0, 224], sizes = [8, 32], strides = [1, 1]} : vector<8x256xf32> to vector<8x32xf32>
    %491 = tpu.concatenate %489, %490 in 1 : vector<8x32xf32>, vector<8x32xf32> -> vector<8x64xf32>
    %492 = tpu.concatenate %482, %488 in 1 : vector<8x32xf32>, vector<8x32xf32> -> vector<8x64xf32>
    %493 = math.tanh %492 : vector<8x64xf32>
    %494 = arith.mulf %491, %493 : vector<8x64xf32>
    %495 = vector.extract_strided_slice %280 {offsets = [56, 0], sizes = [8, 128], strides = [1, 1]} : vector<64x256xf32> to vector<8x128xf32>
    %496 = vector.extract_strided_slice %280 {offsets = [0, 128], sizes = [8, 128], strides = [1, 1]} : vector<64x256xf32> to vector<8x128xf32>
    %497 = tpu.concatenate %495, %496 in 1 : vector<8x128xf32>, vector<8x128xf32> -> vector<8x256xf32>
    %498 = arith.truncf %494 : vector<8x64xf32> to vector<8x64xbf16>
    %cst_56 = arith.constant dense<0.000000e+00> : vector<8x256xf32>
    %499 = tpu.matmul %498, %272, %cst_56 {dimension_numbers = #tpu.dot_dimension_numbers<[1], [0], [0], [1], [0, 0, 1, 1], [], []>} : vector<8x64xbf16>, vector<64x256xbf16>, vector<8x256xf32> -> vector<8x256xf32>
    %500 = arith.addf %497, %499 : vector<8x256xf32>
    %501 = arith.negf %500 : vector<8x256xf32>
    %502 = math.exp %501 : vector<8x256xf32>
    %cst_57 = arith.constant 1.000000e+00 : f32
    %503 = vector.broadcast %cst_57 : f32 to vector<8x256xf32>
    %504 = arith.addf %503, %502 : vector<8x256xf32>
    %505 = arith.divf %503, %504 : vector<8x256xf32>
    %506 = math.tanh %500 : vector<8x256xf32>
    %507 = vector.extract_strided_slice %505 {offsets = [0, 32], sizes = [8, 32], strides = [1, 1]} : vector<8x256xf32> to vector<8x32xf32>
    %508 = arith.mulf %507, %482 : vector<8x32xf32>
    %509 = vector.extract_strided_slice %505 {offsets = [0, 0], sizes = [8, 32], strides = [1, 1]} : vector<8x256xf32> to vector<8x32xf32>
    %510 = vector.extract_strided_slice %506 {offsets = [0, 64], sizes = [8, 32], strides = [1, 1]} : vector<8x256xf32> to vector<8x32xf32>
    %511 = arith.mulf %509, %510 : vector<8x32xf32>
    %512 = arith.addf %508, %511 : vector<8x32xf32>
    %513 = vector.extract_strided_slice %505 {offsets = [0, 160], sizes = [8, 32], strides = [1, 1]} : vector<8x256xf32> to vector<8x32xf32>
    %514 = arith.mulf %513, %488 : vector<8x32xf32>
    %515 = vector.extract_strided_slice %505 {offsets = [0, 128], sizes = [8, 32], strides = [1, 1]} : vector<8x256xf32> to vector<8x32xf32>
    %516 = vector.extract_strided_slice %506 {offsets = [0, 192], sizes = [8, 32], strides = [1, 1]} : vector<8x256xf32> to vector<8x32xf32>
    %517 = arith.mulf %515, %516 : vector<8x32xf32>
    %518 = arith.addf %514, %517 : vector<8x32xf32>
    %519 = vector.extract_strided_slice %505 {offsets = [0, 96], sizes = [8, 32], strides = [1, 1]} : vector<8x256xf32> to vector<8x32xf32>
    %520 = vector.extract_strided_slice %505 {offsets = [0, 224], sizes = [8, 32], strides = [1, 1]} : vector<8x256xf32> to vector<8x32xf32>
    %521 = tpu.concatenate %519, %520 in 1 : vector<8x32xf32>, vector<8x32xf32> -> vector<8x64xf32>
    %522 = tpu.concatenate %512, %518 in 1 : vector<8x32xf32>, vector<8x32xf32> -> vector<8x64xf32>
    %523 = math.tanh %522 : vector<8x64xf32>
    %524 = arith.mulf %521, %523 : vector<8x64xf32>
    %525 = vector.extract_strided_slice %524 {offsets = [0, 0], sizes = [8, 32], strides = [1, 1]} : vector<8x64xf32> to vector<8x32xf32>
    %526 = tpu.concatenate %525, %314 in 1 : vector<8x32xf32>, vector<8x32xf32> -> vector<8x64xf32>
    %527 = arith.truncf %526 : vector<8x64xf32> to vector<8x64xbf16>
    %c0_58 = arith.constant 0 : index
    %c0_59 = arith.constant 0 : index
    %528 = vector.load %arg8[%c0_58, %c0_59] : memref<64x4xf32, #tpu.memory_space<vmem>>, vector<64x4xf32>
    %529 = arith.truncf %528 : vector<64x4xf32> to vector<64x4xbf16>
    %cst_60 = arith.constant dense<0.000000e+00> : vector<8x4xf32>
    %530 = tpu.matmul %527, %529, %cst_60 {dimension_numbers = #tpu.dot_dimension_numbers<[1], [0], [0], [1], [0, 0, 1, 1], [], []>} : vector<8x64xbf16>, vector<64x4xbf16>, vector<8x4xf32> -> vector<8x4xf32>
    %c0_61 = arith.constant 0 : index
    %c0_62 = arith.constant 0 : index
    %531 = vector.load %arg9[%c0_61, %c0_62] : memref<1x4xf32, #tpu.memory_space<vmem>>, vector<1x4xf32>
    %532 = vector.broadcast %531 : vector<1x4xf32> to vector<8x4xf32>
    %533 = arith.addf %530, %532 : vector<8x4xf32>
    %534 = arith.negf %533 : vector<8x4xf32>
    %535 = math.exp %534 : vector<8x4xf32>
    %cst_63 = arith.constant 1.000000e+00 : f32
    %536 = vector.broadcast %cst_63 : f32 to vector<8x4xf32>
    %537 = arith.addf %536, %535 : vector<8x4xf32>
    %538 = arith.divf %536, %537 : vector<8x4xf32>
    %c0_64 = arith.constant 0 : index
    %c0_65 = arith.constant 0 : index
    %539 = vector.load %arg10[%c0_64, %c0_65] : memref<8x4xf32, #tpu.memory_space<vmem>>, vector<8x4xf32>
    tpu.vector_store %arg10[%c0_64, %c0_65], %538 {strides = array<i32>} : memref<8x4xf32, #tpu.memory_space<vmem>>, vector<8x4xf32>,
    return
  }
}

</mosaic_0001>

<bundles_post_ra>
// kernel: model_forward.1
= control target key start
LH: loop header
LB: loop body
LE: loop exit
PB: predicated region body
PF: predicated region fallthrough
CT: control target
= control target key end

     0   :  { %15 = vsyncpa [#allocation3], 0  ;;  %s3384_s0 = inlined_call_operand.vmem [shape: s32[64,1], index: 0, kind: input, shape index: {}]   ;;  %s3385_s1 = inlined_call_operand.vmem [shape: f32[32,16], index: 1, kind: input, shape index: {}]   ;;  %s3386_s2 = inlined_call_operand.vmem [shape: f32[16,256], index: 2, kind: input, shape index: {}]   ;;  %s3387_s3 = inlined_call_operand.vmem [shape: f32[64,256], index: 3, kind: input, shape index: {}]   ;;  %s3388_s4 = inlined_call_operand.vmem [shape: f32[1,256], index: 4, kind: input, shape index: {}]   ;;  %s3389_s5 = inlined_call_operand.hbm [shape: f32[64,256], index: 5, kind: input, shape index: {}]   ;;  %s3390_s6 = inlined_call_operand.hbm [shape: f32[64,256], index: 6, kind: input, shape index: {}]   ;;  %s3391_s7 = inlined_call_operand.vmem [shape: f32[1,256], index: 7, kind: input, shape index: {}]   ;;  %s3392_s8 = inlined_call_operand.vmem [shape: f32[64,4], index: 8, kind: input, shape index: {}]   ;;  %s3393_s9 = inlined_call_operand.vmem [shape: f32[1,4], index: 9, kind: input, shape index: {}]   ;;  %s3394_s10 = inlined_call_operand.vmem [shape: f32[8,4], index: 10, kind: output, shape index: {}]  }
   0x1   :  { %16 = vsyncpa [#allocation5], 0  ;;  %s2642_s13 = smov [#allocation2]  }
   0x2   :  { %s32_s14 = sshll.u32 %s2642_s13, 4  ;;  %s33_s14 = int_to_ptr.vmem [resolvable:$true] %s32_s14 }
   0x3   :  { %s2606_s15 = scalar_lea.vmem %s33_s14, 2048  ;;  %p2611_p1 = scmp.lt.s32.totalorder %s33_s14, %s33_s14 }
   0x4   :  { %p2607_p0 = scmp.ne.s32.totalorder %s33_s14, %s2606_s15  ;;  %p2612_p2 = scmp.lt.s32.totalorder %s2606_s15, %s2606_s15 }
   0x6   :  { %p2613_p3 = por %p2612_p2, %p2611_p1 }
   0x8   :  { %p2614_p4 = pnand %p2613_p3, %p2607_p0 }
   0xa   :  { %2617 = shalt.err (!%p2614_p4)
}
   0xb   :  { %s2643_s16 = smov 256   ;;  %s2644_s17 = smov 16  }
   0xc   :  { %38 = dma.hbm_to_vmem [thread:$0]  %s3389_s5, 2048, %s33_s14, [#allocation3], %s2643_s16, %s2643_s16, %s2644_s17  }
   0xd   :  { %s2645_s20 = smov [#allocation4]  }
   0xe   :  { %s44_s21 = sshll.u32 %s2645_s20, 4  ;;  %s45_s21 = int_to_ptr.vmem [resolvable:$true] %s44_s21 }
   0xf   :  { %s2626_s22 = scalar_lea.vmem %s45_s21, 2048  ;;  %p2631_p6 = scmp.lt.s32.totalorder %s45_s21, %s45_s21 }
  0x10   :  { %p2627_p5 = scmp.ne.s32.totalorder %s45_s21, %s2626_s22  ;;  %p2632_p7 = scmp.lt.s32.totalorder %s2626_s22, %s2626_s22 }
  0x12   :  { %p2633_p8 = por %p2632_p7, %p2631_p6 }
  0x14   :  { %p2634_p9 = pnand %p2633_p8, %p2627_p5 }
  0x16   :  { %2637 = shalt.err (!%p2634_p9)
}
  0x17   :  { %50 = dma.hbm_to_vmem [thread:$0]  %s3390_s6, 2048, %s45_s21, [#allocation5], %s2643_s16, %s2643_s16, %s2644_s17  }
  0x18   :  { %2638 = dma.done.wait [#allocation3], 2048  }
  0x19   :  { %2639 = vsyncadd [#allocation3], 4294965248 }
  0x1a   :  { %2640 = dma.done.wait [#allocation5], 2048  }
  0x1b   :  { %2641 = vsyncadd [#allocation5], 4294965248  ;;  %v2646_v0 = vmov 0   ;;  %v66_v1 = vld [vmem:[%s3384_s0 + $0x10] sm:$0xff]  ;;  %v64_v2 = vld [vmem:[%s3384_s0] sm:$0xff]  ;;  %v72_v18 = vlaneseq  ;;  %vm124_vm4 = vcmask 261120  }
  0x1c   :  { %2369 = vset.pattern.permute.xlu1 %v2646_v0  ;;  %2368 = vset.pattern.permute.xlu0 %v2646_v0  ;;  %v67_v3 = vld [vmem:[%s3384_s0 + $0x18] sm:$0xff]  ;;  %v65_v4 = vld [vmem:[%s3384_s0 + $0x8] sm:$0xff]  ;;  %v120_v5 = vld [vmem:[%s3385_s1 + $0x10] sm:$0xff]  ;;  %v2647_v28 = vmov 0.0   ;;  %vm248_vm9 = vcmask 130048   ;;  %s2649_s19 = smov 32  }
  0x1d   :  { %293 = vmatprep.mubr.bf16.mxu1 %v2646_v0  ;;  %81 = vperm.xlu1 %2369, %v66_v1   ;;  %v121_v6 = vld [vmem:[%s3385_s1 + $0x18] sm:$0xff]  ;;  %v118_v7 = vld [vmem:[%s3385_s1] sm:$0xff]  ;;  %v119_v8 = vld [vmem:[%s3385_s1 + $0x8] sm:$0xff]  ;;  %v73_v19 = vand.u32 127, %v72_v18  ;;  %s2650_s20 = smov 96   ;;  %vm334_vm10 = vcmask 523264  }
  0x1e   :  { %75 = vperm.xlu0 %2368, %v64_v2   ;;  %v123_v9 = vpack.c.bf16 %v121_v6, %v120_v5  ;;  %v122_v10 = vpack.c.bf16 %v119_v8, %v118_v7  ;;  %v69_v11 = vld [vmem:[%s3384_s0 + $0x28] sm:$0xff]  ;;  %v68_v12 = vld [vmem:[%s3384_s0 + $0x20] sm:$0xff]  ;;  %v71_v13 = vld [vmem:[%s3384_s0 + $0x38] sm:$0xff]  ;;  %vm2651_vm11 = vmmov 0   ;;  %vm2250_vm12 = vcmask 31744  }
  0x1f   :  { %v70_v14 = vld [vmem:[%s3384_s0 + $0x30] sm:$0xff]  ;;  %v221_v15 = vld [vmem:[%s3387_s3 + $0x68] sm:$0xff]  ;;  %v223_v16 = vld [vmem:[%s3387_s3 + $0x78] sm:$0xff] }
  0x20   :  { %2334 = vmatprep.subr.bf16.mxu0 %v123_v9  ;;  %v2758_v17 = vpack.c.bf16 %v223_v16, %v221_v15  ;;  %v220_v24 = vld [vmem:[%s3387_s3 + $0x60] sm:$0xff]  ;;  %v222_v25 = vld [vmem:[%s3387_s3 + $0x70] sm:$0xff]  ;;  %v217_v26 = vld [vmem:[%s3387_s3 + $0x48] sm:$0xff] }
  0x21   :  { %84 = vperm.xlu1 %2369, %v67_v3   ;;  %2335 = vmatpush3.bf16.msra.mxu0 %v123_v9  ;;  %v219_v27 = vld [vmem:[%s3387_s3 + $0x58] sm:$0xff]  ;;  %v2778_v35 = vpack.c.bf16 %v222_v25, %v220_v24  ;;  %v216_v39 = vld [vmem:[%s3387_s3 + $0x40] sm:$0xff]  ;;  %v218_v40 = vld [vmem:[%s3387_s3 + $0x50] sm:$0xff] }
  0x22   :  { %78 = vperm.xlu0 %2368, %v65_v4   ;;  %2336 = vmatprep.subr.bf16.mxu0 %v122_v10  ;;  %v2780_v38 = vpack.c.bf16 %v219_v27, %v217_v26  ;;  %v213_v41 = vld [vmem:[%s3387_s3 + $0x28] sm:$0xff]  ;;  %v215_v42 = vld [vmem:[%s3387_s3 + $0x38] sm:$0xff]  ;;  %v2799_v46 = vpack.c.bf16 %v218_v40, %v216_v39  ;;  %v212_v50 = vld [vmem:[%s3387_s3 + $0x20] sm:$0xff] }
  0x23   :  { %v2802_v49 = vpack.c.bf16 %v215_v42, %v213_v41  ;;  %v214_v51 = vld [vmem:[%s3387_s3 + $0x30] sm:$0xff]  ;;  %v209_v56 = vld [vmem:[%s3387_s3 + $0x8] sm:$0xff]  ;;  %v211_v57 = vld [vmem:[%s3387_s3 + $0x18] sm:$0xff] }
  0x24   :  { %v2814_v55 = vpack.c.bf16 %v214_v51, %v212_v50  ;;  %v2826_v58 = vpack.c.bf16 %v211_v57, %v209_v56  ;;  %v208_v59 = vld [vmem:[%s3387_s3] sm:$0xff]  ;;  %v210_v60 = vld [vmem:[%s3387_s3 + $0x10] sm:$0xff]  ;;  %v203_v62 = vld [vmem:[%s3386_s2 + $0x8] sm:$0xff] }
  0x25   :  { %90 = vperm.xlu1 %2369, %v69_v11   ;;  %2337 = vmatpush3.bf16.msra.mxu0 %v122_v10  ;;  %v2834_v61 = vpack.c.bf16 %v210_v60, %v208_v59  ;;  %v205_v63 = vld [vmem:[%s3386_s2 + $0x18] sm:$0xff]  ;;  %v202_v2 = vld [vmem:[%s3386_s2] sm:$0xff]  ;;  %v204_v3 = vld [vmem:[%s3386_s2 + $0x10] sm:$0xff] }
  0x26   :  { %87 = vperm.xlu0 %2368, %v68_v12   ;;  %346 = vmatprep.subr.bf16.mxu0 %v2758_v17  ;;  %v207_v1 = vpack.c.bf16 %v205_v63, %v203_v62  ;;  %v206_v4 = vpack.c.bf16 %v204_v3, %v202_v2  ;;  %v232_v25 = vld [vmem:[%s3388_s4] sm:$0x3]  ;;  %s2648_s4 = smov 64  }
  0x28   :  { %275 = vmatprep.subr.bf16.mxu1 %v207_v1 }
  0x29   :  { %96 = vperm.xlu1 %2369, %v71_v13   ;;  %276 = vmatpush1.bf16.msra.mxu1 %v206_v4 }
  0x2a   :  { %93 = vperm.xlu0 %2368, %v70_v14   ;;  %445 = vmatprep.subr.bf16.mxu1 %v2758_v17 }
  0x98   :  { %v82_v20 = vpop.permute.xlu1 %81 }
  0x99   :  { %v76_v21 = vpop.permute.xlu0 %75  ;;  %vm100_vm0 = vcmp.eq.s32.totalorder %v73_v19, %v82_v20 }
  0x9a   :  { %vm98_vm1 = vcmp.eq.s32.totalorder %v73_v19, %v76_v21  ;;  %v108_v29 = vsel %vm100_vm0, 1.0, %v2647_v28 }
  0x9b   :  { %v106_v31 = vsel %vm98_vm1, 1.0, %v2647_v28 }
  0x9c   :  { %v85_v22 = vpop.permute.xlu1 %84 }
  0x9d   :  { %v79_v23 = vpop.permute.xlu0 %78  ;;  %vm101_vm2 = vcmp.eq.s32.totalorder %v73_v19, %v85_v22 }
  0x9e   :  { %vm99_vm3 = vcmp.eq.s32.totalorder %v73_v19, %v79_v23  ;;  %v109_v30 = vsel %vm101_vm2, 1.0, %v2647_v28  ;;  %v2879_v23 = vshrl.u32 %v72_v18, 7 }
  0x9f   :  { %v107_v32 = vsel %vm99_vm3, 1.0, %v2647_v28  ;;  %v115_v33 = vpack.c.bf16 %v109_v30, %v108_v29 }
  0xa0   :  { %v114_v34 = vpack.c.bf16 %v107_v32, %v106_v31  ;;  %v91_v36 = vpop.permute.xlu1 %90  ;;  %v240_v24 = vsub.s32 0, %v2879_v23  ;;  %v244_v26 = vsub.s32 1, %v2879_v23 }
  0xa1   :  { %v88_v37 = vpop.permute.xlu0 %87  ;;  %vm103_vm5 = vcmp.eq.s32.totalorder %v73_v19, %v91_v36 }
  0xa2   :  { %vm102_vm6 = vcmp.eq.s32.totalorder %v73_v19, %v88_v37  ;;  %2338 = vmatprep.mubr.msk.bf16.mxu0 %vm124_vm4, %v114_v34  ;;  %v111_v43 = vsel %vm103_vm5, 1.0, %v2647_v28  ;;  %v241_v27 = vrot.slane %v232_v25, %v240_v24  ;;  %v245_v29 = vrot.slane %v232_v25, %v244_v26 }
  0xa3   :  { %v110_v44 = vsel %vm102_vm6, 1.0, %v2647_v28  ;;  %2339 = vmatmul.mubr.msk.bf16.vlgmr.msra.gmra.mxu0 %vm124_vm4, %v115_v33 }
  0xa4   :  { %v116_v45 = vpack.c.bf16 %v111_v43, %v110_v44  ;;  %347 = vmatpush1.bf16.msra.mxu0 %v2778_v35  ;;  %v97_v47 = vpop.permute.xlu1 %96 }
  0xa5   :  { %v94_v48 = vpop.permute.xlu0 %93  ;;  %348 = vmatprep.subr.bf16.mxu0 %v2780_v38  ;;  %vm105_vm7 = vcmp.eq.s32.totalorder %v73_v19, %v97_v47 }
  0xa6   :  { %vm104_vm8 = vcmp.eq.s32.totalorder %v73_v19, %v94_v48  ;;  %2342 = vmatprep.mubr.msk.bf16.mxu0 %vm124_vm4, %v116_v45  ;;  %v113_v52 = vsel %vm105_vm7, 1.0, %v2647_v28 }
  0xa7   :  { %v112_v53 = vsel %vm104_vm8, 1.0, %v2647_v28 }
  0xa8   :  { %v117_v54 = vpack.c.bf16 %v113_v52, %v112_v53  ;;  %349 = vmatpush1.bf16.msra.mxu0 %v2799_v46 }
  0xa9   :  { %350 = vmatprep.subr.bf16.mxu0 %v2802_v49 }
  0xab   :  { %2343 = vmatmul.mubr.msk.bf16.gmra.mxu0 %vm124_vm4, %v117_v54 }
  0xac   :  { %351 = vmatpush1.bf16.msra.mxu0 %v2814_v55  ;;  %370 = vmatprep.mubr.bf16.mxu0 %v2646_v0 }
  0xad   :  { %352 = vmatprep.subr.bf16.mxu0 %v2826_v58 }
  0xb0   :  { %353 = vmatpush1.bf16.msra.mxu0 %v2834_v61 }
  0xb1   :  { %544 = vmatprep.subr.bf16.mxu0 %v2758_v17 }
  0xb3   :  { %371 = vmatmul.mubr.bf16.vlgmr.msra.gmra.mxu0 %v2646_v0 }
  0xb4   :  { %545 = vmatpush1.bf16.msra.mxu0 %v2778_v35  ;;  %568 = vmatprep.mubr.bf16.mxu0 %v2646_v0 }
  0xb5   :  { %546 = vmatprep.subr.bf16.mxu0 %v2780_v38 }
  0xb8   :  { %547 = vmatpush1.bf16.msra.mxu0 %v2799_v46 }
  0xb9   :  { %548 = vmatprep.subr.bf16.mxu0 %v2802_v49 }
  0xbc   :  { %549 = vmatpush1.bf16.msra.mxu0 %v2814_v55 }
  0xbd   :  { %550 = vmatprep.subr.bf16.mxu0 %v2826_v58 }
  0xc0   :  { %551 = vmatpush1.bf16.msra.mxu0 %v2834_v61 }
  0xc1   :  { %742 = vmatprep.subr.bf16.mxu0 %v2758_v17 }
 0x163   :  { %v2340_v5 = vpop.f32.mrf.mxu0 }
 0x165   :  { %v171_v6 = vpop.f32.mrf.mxu0 }
 0x167   :  { %v2341_v7 = vpop.f32.mrf.mxu0 }
 0x168   :  { %v234_v12 = vpack.c.bf16 %v2341_v7, %v2340_v5 }
 0x169   :  { %v174_v8 = vpop.f32.mrf.mxu0 }
 0x16a   :  { %v233_v9 = vpack.c.bf16 %v174_v8, %v171_v6 }
 0x16b   :  { %v2344_v10 = vpop.f32.mrf.mxu0 }
 0x16c   :  { %2262 = vmatmul.mubr.msk.bf16.vlgmr.msra.gmra.mxu1 %vm248_vm9, %v233_v9 }
 0x16d   :  { %303 = vmatprep.mubr.bf16.mxu1 %v2646_v0  ;;  %446 = vmatpush1.bf16.msra.mxu1 %v2778_v35  ;;  %v187_v11 = vpop.f32.mrf.mxu0 }
 0x16e   :  { %447 = vmatprep.subr.bf16.mxu1 %v2780_v38 }
 0x16f   :  { %v2345_v13 = vpop.f32.mrf.mxu0 }
 0x170   :  { %v236_v16 = vpack.c.bf16 %v2345_v13, %v2344_v10 }
 0x171   :  { %448 = vmatpush1.bf16.msra.mxu1 %v2799_v46  ;;  %v190_v14 = vpop.f32.mrf.mxu0 }
 0x172   :  { %449 = vmatprep.subr.bf16.mxu1 %v2802_v49  ;;  %v235_v15 = vpack.c.bf16 %v190_v14, %v187_v11 }
 0x173   :  { %v372_v19 = vpop.f32.mrf.mxu0 }
 0x174   :  { %2263 = vmatmul.mubr.msk.bf16.gmra.mxu1 %vm248_vm9, %v234_v12 }
 0x175   :  { %313 = vmatprep.mubr.bf16.mxu1 %v2646_v0  ;;  %450 = vmatpush1.bf16.msra.mxu1 %v2814_v55  ;;  %v374_v20 = vpop.f32.mrf.mxu0 }
 0x176   :  { %451 = vmatprep.subr.bf16.mxu1 %v2826_v58 }
 0x177   :  { %v376_v21 = vpop.f32.mrf.mxu0 }
 0x179   :  { %452 = vmatpush1.bf16.msra.mxu1 %v2834_v61  ;;  %v377_v22 = vpop.f32.mrf.mxu0 }
 0x17a   :  { %643 = vmatprep.subr.bf16.mxu1 %v2758_v17 }
 0x17c   :  { %2264 = vmatmul.mubr.msk.bf16.gmra.mxu1 %vm248_vm9, %v235_v15 }
 0x17d   :  { %323 = vmatprep.mubr.bf16.mxu1 %v2646_v0 }
 0x184   :  { %2265 = vmatmul.mubr.msk.bf16.gmra.mxu1 %vm248_vm9, %v236_v16 }
 0x185   :  { %469 = vmatprep.mubr.bf16.mxu1 %v2646_v0 }
 0x22c   :  { %v295_v30 = vpop.f32.mrf.mxu1 }
 0x22d   :  { %v296_v31 = vadd.f32 %v295_v30, %v241_v27 }
 0x22e   :  { %v297_v32 = vpop.f32.mrf.mxu1 }
 0x22f   :  { %v379_v33 = vadd.f32 %v372_v19, %v296_v31  ;;  %v2890_v18 = vadd.f32 %v297_v32, %v245_v29 }
 0x230   :  { %v299_v34 = vpop.f32.mrf.mxu1 }
 0x231   :  { %2370 = vtanh.f32 %v379_v33  ;;  %v2892_v36 = vadd.f32 %v299_v34, %v241_v27  ;;  %v2266_v9 = vmul.f32 -1.442695, %v379_v33 }
 0x232   :  { %v301_v37 = vpop.f32.mrf.mxu1 }
 0x233   :  { %v2894_v39 = vadd.f32 %v301_v37, %v245_v29 }
 0x234   :  { %v305_v40 = vpop.f32.mrf.mxu1 }
 0x235   :  { %v2896_v41 = vadd.f32 %v305_v40, %v241_v27 }
 0x236   :  { %v307_v42 = vpop.f32.mrf.mxu1 }
 0x237   :  { %v2898_v43 = vadd.f32 %v307_v42, %v245_v29 }
 0x238   :  { %v309_v44 = vpop.f32.mrf.mxu1 }
 0x239   :  { %v2900_v45 = vadd.f32 %v309_v44, %v241_v27 }
 0x23a   :  { %v311_v47 = vpop.f32.mrf.mxu1 }
 0x23b   :  { %v2902_v48 = vadd.f32 %v311_v47, %v245_v29 }
 0x23c   :  { %v315_v50 = vpop.f32.mrf.mxu1 }
 0x23d   :  { %v2904_v51 = vadd.f32 %v315_v50, %v241_v27 }
 0x23e   :  { %v2371_v52 = vpop.eup %2370  ;;  %v317_v53 = vpop.f32.mrf.mxu1 }
 0x23f   :  { %v2906_v54 = vadd.f32 %v317_v53, %v245_v29  ;;  %397 = vrot.lane.b32.xlu0 %v2371_v52, %s2648_s4 }
 0x240   :  { %v319_v56 = vpop.f32.mrf.mxu1 }
 0x241   :  { %v2909_v57 = vadd.f32 %v319_v56, %v241_v27 }
 0x242   :  { %v321_v59 = vpop.f32.mrf.mxu1 }
 0x243   :  { %v2911_v60 = vadd.f32 %v321_v59, %v245_v29 }
 0x244   :  { %v325_v62 = vpop.f32.mrf.mxu1 }
 0x245   :  { %v2913_v63 = vadd.f32 %v325_v62, %v241_v27 }
 0x246   :  { %v327_v1 = vpop.f32.mrf.mxu1 }
 0x247   :  { %v328_v2 = vadd.f32 %v327_v1, %v245_v29 }
 0x248   :  { %v329_v3 = vpop.f32.mrf.mxu1 }
 0x249   :  { %v2915_v4 = vadd.f32 %v329_v3, %v241_v27 }
 0x24a   :  { %v331_v5 = vpop.f32.mrf.mxu1 }
 0x24b   :  { %v332_v6 = vadd.f32 %v331_v5, %v245_v29 }
 0x24d   :  { %v380_v7 = vadd.f32 %v374_v20, %v332_v6 }
 0x24f   :  { %2372 = vtanh.f32 %v380_v7  ;;  %v2267_v12 = vmul.f32 -1.442695, %v380_v7 }
 0x250   :  { %2374 = vpow2.f32 %v2266_v9 }
 0x25c   :  { %v2373_v8 = vpop.eup %2372 }
 0x25d   :  { %408 = vrot.lane.b32.xlu1 %v2373_v8, %s2648_s4  ;;  %v2375_v10 = vpop.eup %2374 }
 0x25e   :  { %v387_v11 = vadd.f32 1.0, %v2375_v10 }
 0x260   :  { %2376 = vrcp.f32 %v387_v11 }
 0x261   :  { %2378 = vpow2.f32 %v2267_v12 }
 0x26d   :  { %v2377_v13 = vpop.eup %2376 }
 0x26e   :  { %v2379_v16 = vpop.eup %2378  ;;  %v395_v25 = vmul.f32 0.0, %v2377_v13 }
 0x26f   :  { %v388_v19 = vadd.f32 1.0, %v2379_v16 }
 0x271   :  { %2380 = vrcp.f32 %v388_v19 }
 0x27e   :  { %v2381_v20 = vpop.eup %2380 }
 0x27f   :  { %v406_v31 = vmul.f32 0.0, %v2381_v20 }
 0x2b1   :  { %v398_v14 = vpop.permute.xlu0 %397 }
 0x2b2   :  { %v400_v15 = vmul.f32 %v2377_v13, %v398_v14 }
 0x2b4   :  { %402 = vrot.lane.b32.xlu0 %v400_v15, %s2649_s19 }
 0x2cf   :  { %v409_v21 = vpop.permute.xlu1 %408 }
 0x2d0   :  { %v411_v22 = vmul.f32 %v2381_v20, %v409_v21 }
 0x2d2   :  { %413 = vrot.lane.b32.xlu1 %v411_v22, %s2649_s19 }
 0x2d6   :  { %418 = vrot.lane.b32.xlu1 %v2377_v13, %s2649_s19 }
 0x326   :  { %v403_v27 = vpop.permute.xlu0 %402 }
 0x327   :  { %v405_v29 = vadd.f32 %v403_v27, %v395_v25 }
 0x329   :  { %427 = vrot.lane.b32.xlu0 %v405_v29, %s2650_s20 }
 0x32d   :  { %422 = vrot.lane.b32.xlu0 %v2381_v20, %s2648_s4 }
 0x344   :  { %v414_v30 = vpop.permute.xlu1 %413 }
 0x345   :  { %v416_v32 = vadd.f32 %v414_v30, %v406_v31 }
 0x348   :  { %v419_v40 = vpop.permute.xlu1 %418 }
 0x39b   :  { %v428_v33 = vpop.permute.xlu0 %427 }
 0x39c   :  { %v430_v34 = vsel %vm124_vm4, %v428_v33, %v416_v32 }
 0x39d   :  { %2382 = vtanh.f32 %v430_v34 }
 0x39f   :  { %v423_v37 = vpop.permute.xlu0 %422 }
 0x3a0   :  { %v425_v44 = vsel %vm124_vm4, %v419_v40, %v423_v37 }
 0x3aa   :  { %v2383_v42 = vpop.eup %2382 }
 0x3ab   :  { %v2925_v47 = vmul.f32 %v2383_v42, %v425_v44 }
 0x3ad   :  { %v433_v50 = vpack.c.bf16 %v2925_v47, %v2925_v47 }
 0x3af   :  { %2268 = vmatmul.mubr.msk.bf16.vlgmr.msra.gmra.mxu1 %vm334_vm10, %v433_v50 }
 0x3b0   :  { %644 = vmatpush1.bf16.msra.mxu1 %v2778_v35  ;;  %667 = vmatprep.mubr.bf16.mxu1 %v2646_v0 }
 0x3b1   :  { %645 = vmatprep.subr.bf16.mxu1 %v2780_v38 }
 0x3b4   :  { %646 = vmatpush1.bf16.msra.mxu1 %v2799_v46 }
 0x3b5   :  { %647 = vmatprep.subr.bf16.mxu1 %v2802_v49 }
 0x3b8   :  { %648 = vmatpush1.bf16.msra.mxu1 %v2814_v55 }
 0x3b9   :  { %649 = vmatprep.subr.bf16.mxu1 %v2826_v58 }
 0x3bc   :  { %650 = vmatpush1.bf16.msra.mxu1 %v2834_v61 }
 0x3bd   :  { %841 = vmatprep.subr.bf16.mxu1 %v2758_v17 }
 0x46f   :  { %v471_v52 = vpop.f32.mrf.mxu1 }
 0x470   :  { %v478_v53 = vadd.f32 %v471_v52, %v2892_v36 }
 0x471   :  { %v473_v56 = vpop.f32.mrf.mxu1 }
 0x472   :  { %2384 = vtanh.f32 %v478_v53  ;;  %v479_v59 = vadd.f32 %v473_v56, %v328_v2  ;;  %v2269_v6 = vmul.f32 -1.442695, %v478_v53 }
 0x473   :  { %v475_v62 = vpop.f32.mrf.mxu1 }
 0x474   :  { %2386 = vtanh.f32 %v479_v59  ;;  %v2270_v7 = vmul.f32 -1.442695, %v479_v59 }
 0x475   :  { %v476_v1 = vpop.f32.mrf.mxu1  ;;  %2388 = vpow2.f32 %v2269_v6 }
 0x476   :  { %2390 = vpow2.f32 %v2270_v7 }
 0x47f   :  { %v2385_v3 = vpop.eup %2384 }
 0x480   :  { %496 = vrot.lane.b32.xlu1 %v2385_v3, %s2648_s4 }
 0x481   :  { %v2387_v5 = vpop.eup %2386 }
 0x482   :  { %507 = vrot.lane.b32.xlu0 %v2387_v5, %s2648_s4  ;;  %v2389_v8 = vpop.eup %2388 }
 0x483   :  { %v2391_v9 = vpop.eup %2390  ;;  %v486_v10 = vadd.f32 1.0, %v2389_v8 }
 0x484   :  { %v487_v36 = vadd.f32 1.0, %v2391_v9 }
 0x485   :  { %2392 = vrcp.f32 %v486_v10 }
 0x486   :  { %2394 = vrcp.f32 %v487_v36 }
 0x492   :  { %v2393_v2 = vpop.eup %2392 }
 0x493   :  { %v2395_v13 = vpop.eup %2394  ;;  %v494_v16 = vmul.f32 %v2393_v2, %v405_v29 }
 0x494   :  { %v505_v22 = vmul.f32 %v2395_v13, %v416_v32 }
 0x4f2   :  { %v497_v11 = vpop.permute.xlu1 %496 }
 0x4f3   :  { %v499_v12 = vmul.f32 %v2393_v2, %v497_v11 }
 0x4f4   :  { %v508_v14 = vpop.permute.xlu0 %507 }
 0x4f5   :  { %501 = vrot.lane.b32.xlu1 %v499_v12, %s2649_s19  ;;  %v510_v15 = vmul.f32 %v2395_v13, %v508_v14 }
 0x4f7   :  { %512 = vrot.lane.b32.xlu0 %v510_v15, %s2649_s19 }
 0x4fb   :  { %517 = vrot.lane.b32.xlu0 %v2393_v2, %s2649_s19 }
 0x567   :  { %v502_v19 = vpop.permute.xlu1 %501 }
 0x568   :  { %v504_v20 = vadd.f32 %v502_v19, %v494_v16 }
 0x569   :  { %v513_v21 = vpop.permute.xlu0 %512 }
 0x56a   :  { %526 = vrot.lane.b32.xlu1 %v504_v20, %s2650_s20  ;;  %v515_v25 = vadd.f32 %v513_v21, %v505_v22 }
 0x56d   :  { %v518_v33 = vpop.permute.xlu0 %517 }
 0x56e   :  { %521 = vrot.lane.b32.xlu1 %v2395_v13, %s2648_s4 }
 0x5dc   :  { %v527_v27 = vpop.permute.xlu1 %526 }
 0x5dd   :  { %v529_v30 = vsel %vm124_vm4, %v527_v27, %v515_v25 }
 0x5de   :  { %2396 = vtanh.f32 %v529_v30 }
 0x5e0   :  { %v522_v31 = vpop.permute.xlu1 %521 }
 0x5e1   :  { %v524_v37 = vsel %vm124_vm4, %v518_v33, %v522_v31 }
 0x5eb   :  { %v2397_v34 = vpop.eup %2396 }
 0x5ec   :  { %v2949_v40 = vmul.f32 %v2397_v34, %v524_v37 }
 0x5ee   :  { %v532_v29 = vpack.c.bf16 %v2949_v40, %v2949_v40 }
 0x5f0   :  { %2271 = vmatmul.mubr.msk.bf16.vlgmr.msra.gmra.mxu0 %vm334_vm10, %v532_v29 }
 0x5f1   :  { %743 = vmatpush1.bf16.msra.mxu0 %v2778_v35  ;;  %766 = vmatprep.mubr.bf16.mxu0 %v2646_v0 }
 0x5f2   :  { %744 = vmatprep.subr.bf16.mxu0 %v2780_v38 }
 0x5f5   :  { %745 = vmatpush1.bf16.msra.mxu0 %v2799_v46 }
 0x5f6   :  { %746 = vmatprep.subr.bf16.mxu0 %v2802_v49 }
 0x5f9   :  { %747 = vmatpush1.bf16.msra.mxu0 %v2814_v55 }
 0x5fa   :  { %748 = vmatprep.subr.bf16.mxu0 %v2826_v58 }
 0x5fd   :  { %749 = vmatpush1.bf16.msra.mxu0 %v2834_v61 }
 0x5fe   :  { %940 = vmatprep.subr.bf16.mxu0 %v2758_v17 }
 0x6b0   :  { %v570_v32 = vpop.f32.mrf.mxu0 }
 0x6b1   :  { %v577_v42 = vadd.f32 %v570_v32, %v2896_v41 }
 0x6b2   :  { %v572_v44 = vpop.f32.mrf.mxu0 }
 0x6b3   :  { %2398 = vtanh.f32 %v577_v42  ;;  %v578_v50 = vadd.f32 %v572_v44, %v2911_v60  ;;  %v2272_v62 = vmul.f32 -1.442695, %v577_v42 }
 0x6b4   :  { %v574_v52 = vpop.f32.mrf.mxu0 }
 0x6b5   :  { %2400 = vtanh.f32 %v578_v50  ;;  %v2273_v1 = vmul.f32 -1.442695, %v578_v50 }
 0x6b6   :  { %v575_v53 = vpop.f32.mrf.mxu0  ;;  %2402 = vpow2.f32 %v2272_v62 }
 0x6b7   :  { %2404 = vpow2.f32 %v2273_v1 }
 0x6c0   :  { %v2399_v56 = vpop.eup %2398 }
 0x6c1   :  { %595 = vrot.lane.b32.xlu0 %v2399_v56, %s2648_s4 }
 0x6c2   :  { %v2401_v59 = vpop.eup %2400 }
 0x6c3   :  { %606 = vrot.lane.b32.xlu1 %v2401_v59, %s2648_s4  ;;  %v2403_v3 = vpop.eup %2402 }
 0x6c4   :  { %v2405_v5 = vpop.eup %2404  ;;  %v585_v41 = vadd.f32 1.0, %v2403_v3 }
 0x6c5   :  { %v586_v6 = vadd.f32 1.0, %v2405_v5 }
 0x6c6   :  { %2406 = vrcp.f32 %v585_v41 }
 0x6c7   :  { %2408 = vrcp.f32 %v586_v6 }
 0x6d3   :  { %v2407_v60 = vpop.eup %2406 }
 0x6d4   :  { %v2409_v9 = vpop.eup %2408  ;;  %v593_v2 = vmul.f32 %v2407_v60, %v504_v20 }
 0x6d5   :  { %v604_v14 = vmul.f32 %v2409_v9, %v515_v25 }
 0x733   :  { %v596_v7 = vpop.permute.xlu0 %595 }
 0x734   :  { %v598_v8 = vmul.f32 %v2407_v60, %v596_v7 }
 0x735   :  { %v607_v10 = vpop.permute.xlu1 %606 }
 0x736   :  { %600 = vrot.lane.b32.xlu0 %v598_v8, %s2649_s19  ;;  %v609_v36 = vmul.f32 %v2409_v9, %v607_v10 }
 0x738   :  { %611 = vrot.lane.b32.xlu1 %v609_v36, %s2649_s19 }
 0x73c   :  { %616 = vrot.lane.b32.xlu1 %v2407_v60, %s2649_s19 }
 0x7a8   :  { %v601_v11 = vpop.permute.xlu0 %600 }
 0x7a9   :  { %v603_v12 = vadd.f32 %v601_v11, %v593_v2 }
 0x7aa   :  { %v612_v13 = vpop.permute.xlu1 %611 }
 0x7ab   :  { %625 = vrot.lane.b32.xlu0 %v603_v12, %s2650_s20  ;;  %v614_v15 = vadd.f32 %v612_v13, %v604_v14 }
 0x7ae   :  { %v617_v22 = vpop.permute.xlu1 %616 }
 0x7af   :  { %620 = vrot.lane.b32.xlu0 %v2409_v9, %s2648_s4 }
 0x81d   :  { %v626_v16 = vpop.permute.xlu0 %625 }
 0x81e   :  { %v628_v19 = vsel %vm124_vm4, %v626_v16, %v614_v15 }
 0x81f   :  { %2410 = vtanh.f32 %v628_v19 }
 0x821   :  { %v621_v21 = vpop.permute.xlu0 %620 }
 0x822   :  { %v623_v30 = vsel %vm124_vm4, %v617_v22, %v621_v21 }
 0x82c   :  { %v2411_v27 = vpop.eup %2410 }
 0x82d   :  { %v2974_v31 = vmul.f32 %v2411_v27, %v623_v30 }
 0x82f   :  { %v631_v20 = vpack.c.bf16 %v2974_v31, %v2974_v31 }
 0x831   :  { %2274 = vmatmul.mubr.msk.bf16.vlgmr.msra.gmra.mxu1 %vm334_vm10, %v631_v20 }
 0x832   :  { %842 = vmatpush1.bf16.msra.mxu1 %v2778_v35  ;;  %865 = vmatprep.mubr.bf16.mxu1 %v2646_v0 }
 0x833   :  { %843 = vmatprep.subr.bf16.mxu1 %v2780_v38 }
 0x836   :  { %844 = vmatpush1.bf16.msra.mxu1 %v2799_v46 }
 0x837   :  { %845 = vmatprep.subr.bf16.mxu1 %v2802_v49 }
 0x83a   :  { %846 = vmatpush1.bf16.msra.mxu1 %v2814_v55 }
 0x83b   :  { %847 = vmatprep.subr.bf16.mxu1 %v2826_v58 }
 0x83e   :  { %848 = vmatpush1.bf16.msra.mxu1 %v2834_v61 }
 0x83f   :  { %1039 = vmatprep.subr.bf16.mxu1 %v2758_v17 }
 0x8f1   :  { %v669_v25 = vpop.f32.mrf.mxu1 }
 0x8f2   :  { %v676_v33 = vadd.f32 %v669_v25, %v2900_v45 }
 0x8f3   :  { %v671_v34 = vpop.f32.mrf.mxu1 }
 0x8f4   :  { %2412 = vtanh.f32 %v676_v33  ;;  %v677_v37 = vadd.f32 %v671_v34, %v2906_v54  ;;  %v2275_v50 = vmul.f32 -1.442695, %v676_v33 }
 0x8f5   :  { %v673_v29 = vpop.f32.mrf.mxu1 }
 0x8f6   :  { %2414 = vtanh.f32 %v677_v37  ;;  %v2276_v52 = vmul.f32 -1.442695, %v677_v37 }
 0x8f7   :  { %v674_v32 = vpop.f32.mrf.mxu1  ;;  %2416 = vpow2.f32 %v2275_v50 }
 0x8f8   :  { %2418 = vpow2.f32 %v2276_v52 }
 0x901   :  { %v2413_v42 = vpop.eup %2412 }
 0x902   :  { %694 = vrot.lane.b32.xlu1 %v2413_v42, %s2648_s4 }
 0x903   :  { %v2415_v44 = vpop.eup %2414 }
 0x904   :  { %705 = vrot.lane.b32.xlu0 %v2415_v44, %s2648_s4  ;;  %v2417_v17 = vpop.eup %2416 }
 0x905   :  { %v2419_v53 = vpop.eup %2418  ;;  %v684_v45 = vadd.f32 1.0, %v2417_v17 }
 0x906   :  { %v685_v56 = vadd.f32 1.0, %v2419_v53 }
 0x907   :  { %2420 = vrcp.f32 %v684_v45 }
 0x908   :  { %2422 = vrcp.f32 %v685_v56 }
 0x914   :  { %v2421_v54 = vpop.eup %2420 }
 0x915   :  { %v2423_v1 = vpop.eup %2422  ;;  %v692_v41 = vmul.f32 %v2421_v54, %v603_v12 }
 0x916   :  { %v703_v8 = vmul.f32 %v2423_v1, %v614_v15 }
 0x974   :  { %v695_v59 = vpop.permute.xlu1 %694 }
 0x975   :  { %v697_v62 = vmul.f32 %v2421_v54, %v695_v59 }
 0x976   :  { %v706_v3 = vpop.permute.xlu0 %705 }
 0x977   :  { %699 = vrot.lane.b32.xlu1 %v697_v62, %s2649_s19  ;;  %v708_v5 = vmul.f32 %v2423_v1, %v706_v3 }
 0x979   :  { %710 = vrot.lane.b32.xlu0 %v708_v5, %s2649_s19 }
 0x97d   :  { %715 = vrot.lane.b32.xlu0 %v2421_v54, %s2649_s19 }
 0x9e9   :  { %v700_v6 = vpop.permute.xlu1 %699 }
 0x9ea   :  { %v702_v60 = vadd.f32 %v700_v6, %v692_v41 }
 0x9eb   :  { %v711_v7 = vpop.permute.xlu0 %710 }
 0x9ec   :  { %724 = vrot.lane.b32.xlu1 %v702_v60, %s2650_s20  ;;  %v713_v9 = vadd.f32 %v711_v7, %v703_v8 }
 0x9ef   :  { %v716_v11 = vpop.permute.xlu0 %715 }
 0x9f0   :  { %719 = vrot.lane.b32.xlu1 %v2423_v1, %s2648_s4 }
 0xa5e   :  { %v725_v10 = vpop.permute.xlu1 %724 }
 0xa5f   :  { %v727_v36 = vsel %vm124_vm4, %v725_v10, %v713_v9 }
 0xa60   :  { %2424 = vtanh.f32 %v727_v36 }
 0xa62   :  { %v720_v2 = vpop.permute.xlu1 %719 }
 0xa63   :  { %v722_v14 = vsel %vm124_vm4, %v716_v11, %v720_v2 }
 0xa6d   :  { %v2425_v13 = vpop.eup %2424 }
 0xa6e   :  { %v2999_v16 = vmul.f32 %v2425_v13, %v722_v14 }
 0xa70   :  { %v730_v12 = vpack.c.bf16 %v2999_v16, %v2999_v16 }
 0xa72   :  { %2277 = vmatmul.mubr.msk.bf16.vlgmr.msra.gmra.mxu0 %vm334_vm10, %v730_v12 }
 0xa73   :  { %941 = vmatpush1.bf16.msra.mxu0 %v2778_v35  ;;  %964 = vmatprep.mubr.bf16.mxu0 %v2646_v0 }
 0xa74   :  { %942 = vmatprep.subr.bf16.mxu0 %v2780_v38 }
 0xa77   :  { %943 = vmatpush1.bf16.msra.mxu0 %v2799_v46 }
 0xa78   :  { %944 = vmatprep.subr.bf16.mxu0 %v2802_v49 }
 0xa7b   :  { %945 = vmatpush1.bf16.msra.mxu0 %v2814_v55 }
 0xa7c   :  { %946 = vmatprep.subr.bf16.mxu0 %v2826_v58 }
 0xa7f   :  { %947 = vmatpush1.bf16.msra.mxu0 %v2834_v61 }
 0xb32   :  { %v768_v15 = vpop.f32.mrf.mxu0 }
 0xb33   :  { %v775_v19 = vadd.f32 %v768_v15, %v2904_v51 }
 0xb34   :  { %v770_v21 = vpop.f32.mrf.mxu0 }
 0xb35   :  { %2426 = vtanh.f32 %v775_v19  ;;  %v776_v22 = vadd.f32 %v770_v21, %v2902_v48  ;;  %v2278_v33 = vmul.f32 -1.442695, %v775_v19 }
 0xb36   :  { %v772_v27 = vpop.f32.mrf.mxu0 }
 0xb37   :  { %2428 = vtanh.f32 %v776_v22  ;;  %v2279_v34 = vmul.f32 -1.442695, %v776_v22 }
 0xb38   :  { %v773_v30 = vpop.f32.mrf.mxu0  ;;  %2430 = vpow2.f32 %v2278_v33 }
 0xb39   :  { %2432 = vpow2.f32 %v2279_v34 }
 0xb42   :  { %v2427_v20 = vpop.eup %2426 }
 0xb43   :  { %793 = vrot.lane.b32.xlu0 %v2427_v20, %s2648_s4 }
 0xb44   :  { %v2429_v25 = vpop.eup %2428 }
 0xb45   :  { %804 = vrot.lane.b32.xlu1 %v2429_v25, %s2648_s4  ;;  %v2431_v37 = vpop.eup %2430 }
 0xb46   :  { %v2433_v29 = vpop.eup %2432  ;;  %v783_v51 = vadd.f32 1.0, %v2431_v37 }
 0xb47   :  { %v784_v32 = vadd.f32 1.0, %v2433_v29 }
 0xb48   :  { %2434 = vrcp.f32 %v783_v51 }
 0xb49   :  { %2436 = vrcp.f32 %v784_v32 }
 0xb55   :  { %v2435_v48 = vpop.eup %2434 }
 0xb56   :  { %v2437_v50 = vpop.eup %2436  ;;  %v791_v53 = vmul.f32 %v2435_v48, %v702_v60 }
 0xb57   :  { %v802_v59 = vmul.f32 %v2437_v50, %v713_v9 }
 0xbb5   :  { %v794_v42 = vpop.permute.xlu0 %793 }
 0xbb6   :  { %v796_v44 = vmul.f32 %v2435_v48, %v794_v42 }
 0xbb7   :  { %v805_v52 = vpop.permute.xlu1 %804 }
 0xbb8   :  { %798 = vrot.lane.b32.xlu0 %v796_v44, %s2649_s19  ;;  %v807_v17 = vmul.f32 %v2437_v50, %v805_v52 }
 0xbba   :  { %809 = vrot.lane.b32.xlu1 %v807_v17, %s2649_s19 }
 0xbbe   :  { %814 = vrot.lane.b32.xlu1 %v2435_v48, %s2649_s19 }
 0xc2a   :  { %v799_v45 = vpop.permute.xlu0 %798 }
 0xc2b   :  { %v801_v56 = vadd.f32 %v799_v45, %v791_v53 }
 0xc2c   :  { %v810_v54 = vpop.permute.xlu1 %809 }
 0xc2d   :  { %823 = vrot.lane.b32.xlu0 %v801_v56, %s2650_s20  ;;  %v812_v62 = vadd.f32 %v810_v54, %v802_v59 }
 0xc30   :  { %v815_v41 = vpop.permute.xlu1 %814 }
 0xc31   :  { %818 = vrot.lane.b32.xlu0 %v2437_v50, %s2648_s4 }
 0xc9f   :  { %v824_v1 = vpop.permute.xlu0 %823 }
 0xca0   :  { %v826_v3 = vsel %vm124_vm4, %v824_v1, %v812_v62 }
 0xca1   :  { %2438 = vtanh.f32 %v826_v3 }
 0xca3   :  { %v819_v5 = vpop.permute.xlu0 %818 }
 0xca4   :  { %v821_v7 = vsel %vm124_vm4, %v815_v41, %v819_v5 }
 0xcae   :  { %v2439_v6 = vpop.eup %2438 }
 0xcaf   :  { %v3023_v8 = vmul.f32 %v2439_v6, %v821_v7 }
 0xcb1   :  { %v829_v60 = vpack.c.bf16 %v3023_v8, %v3023_v8 }
 0xcb3   :  { %2280 = vmatmul.mubr.msk.bf16.vlgmr.msra.gmra.mxu1 %vm334_vm10, %v829_v60 }
 0xcb4   :  { %1040 = vmatpush1.bf16.msra.mxu1 %v2778_v35  ;;  %1063 = vmatprep.mubr.bf16.mxu1 %v2646_v0 }
 0xcb5   :  { %1041 = vmatprep.subr.bf16.mxu1 %v2780_v38 }
 0xcb8   :  { %1042 = vmatpush1.bf16.msra.mxu1 %v2799_v46 }
 0xcb9   :  { %1043 = vmatprep.subr.bf16.mxu1 %v2802_v49 }
 0xcbc   :  { %1044 = vmatpush1.bf16.msra.mxu1 %v2814_v55 }
 0xcbd   :  { %1045 = vmatprep.subr.bf16.mxu1 %v2826_v58 }
 0xcc0   :  { %1046 = vmatpush1.bf16.msra.mxu1 %v2834_v61 }
 0xd73   :  { %v867_v9 = vpop.f32.mrf.mxu1 }
 0xd74   :  { %v874_v10 = vadd.f32 %v867_v9, %v2909_v57 }
 0xd75   :  { %v869_v36 = vpop.f32.mrf.mxu1 }
 0xd76   :  { %2440 = vtanh.f32 %v874_v10  ;;  %v875_v35 = vadd.f32 %v869_v36, %v2898_v43  ;;  %v2281_v49 = vmul.f32 -1.442695, %v874_v10 }
 0xd77   :  { %v871_v2 = vpop.f32.mrf.mxu1 }
 0xd78   :  { %2442 = vtanh.f32 %v875_v35  ;;  %v2282_v55 = vmul.f32 -1.442695, %v875_v35 }
 0xd79   :  { %v872_v38 = vpop.f32.mrf.mxu1  ;;  %2444 = vpow2.f32 %v2281_v49 }
 0xd7a   :  { %2446 = vpow2.f32 %v2282_v55  ;;  %v1139_v38 = vld [vmem:[#allocation2 + $0x28] sm:$0xff] }
 0xd83   :  { %v2441_v11 = vpop.eup %2440 }
 0xd84   :  { %892 = vrot.lane.b32.xlu1 %v2441_v11, %s2648_s4  ;;  %v1141_v11 = vld [vmem:[#allocation2 + $0x38] sm:$0xff] }
 0xd85   :  { %v2443_v46 = vpop.eup %2442 }
 0xd86   :  { %903 = vrot.lane.b32.xlu0 %v2443_v46, %s2648_s4  ;;  %v2445_v58 = vpop.eup %2444  ;;  %v1153_v46 = vpack.c.bf16 %v1141_v11, %v1139_v38  ;;  %v1149_v38 = vld [vmem:[#allocation2 + $0x78] sm:$0xff]  ;;  %v1146_v11 = vld [vmem:[#allocation2 + $0x60] sm:$0xff] }
 0xd87   :  { %v2447_v61 = vpop.eup %2446  ;;  %v882_v57 = vadd.f32 1.0, %v2445_v58 }
 0xd88   :  { %v883_v13 = vadd.f32 1.0, %v2447_v61  ;;  %1304 = vmatprep.subr.bf16.mxu1 %v1153_v46 }
 0xd89   :  { %2448 = vrcp.f32 %v882_v57 }
 0xd8a   :  { %2450 = vrcp.f32 %v883_v13 }
 0xd96   :  { %v2449_v43 = vpop.eup %2448 }
 0xd97   :  { %v2451_v15 = vpop.eup %2450  ;;  %v890_v22 = vmul.f32 %v2449_v43, %v801_v56 }
 0xd98   :  { %v901_v25 = vmul.f32 %v2451_v15, %v812_v62 }
 0xdf6   :  { %v893_v14 = vpop.permute.xlu1 %892 }
 0xdf7   :  { %v895_v12 = vmul.f32 %v2449_v43, %v893_v14  ;;  %v1138_v14 = vld [vmem:[#allocation2 + $0x20] sm:$0xff] }
 0xdf8   :  { %v904_v19 = vpop.permute.xlu0 %903 }
 0xdf9   :  { %897 = vrot.lane.b32.xlu1 %v895_v12, %s2649_s19  ;;  %v906_v21 = vmul.f32 %v2451_v15, %v904_v19  ;;  %v1140_v12 = vld [vmem:[#allocation2 + $0x30] sm:$0xff] }
 0xdfb   :  { %908 = vrot.lane.b32.xlu0 %v906_v21, %s2649_s19  ;;  %v1135_v21 = vld [vmem:[#allocation2 + $0x8] sm:$0xff] }
 0xdff   :  { %913 = vrot.lane.b32.xlu0 %v2449_v43, %s2649_s19 }
 0xe6b   :  { %v898_v27 = vpop.permute.xlu1 %897 }
 0xe6c   :  { %v900_v30 = vadd.f32 %v898_v27, %v890_v22  ;;  %v1137_v22 = vld [vmem:[#allocation2 + $0x18] sm:$0xff] }
 0xe6d   :  { %v909_v20 = vpop.permute.xlu0 %908 }
 0xe6e   :  { %922 = vrot.lane.b32.xlu1 %v900_v30, %s2650_s20  ;;  %v911_v33 = vadd.f32 %v909_v20, %v901_v25  ;;  %v1151_v25 = vpack.c.bf16 %v1137_v22, %v1135_v21  ;;  %v1170_v22 = vld [vmem:[#allocation4 + $0x60] sm:$0xff] }
 0xe71   :  { %v914_v51 = vpop.permute.xlu0 %913 }
 0xe72   :  { %917 = vrot.lane.b32.xlu1 %v2451_v15, %s2648_s4 }
 0xee0   :  { %v923_v34 = vpop.permute.xlu1 %922 }
 0xee1   :  { %v925_v37 = vsel %vm124_vm4, %v923_v34, %v911_v33  ;;  %v1136_v34 = vld [vmem:[#allocation2 + $0x10] sm:$0xff] }
 0xee2   :  { %2452 = vtanh.f32 %v925_v37 }
 0xee4   :  { %v918_v29 = vpop.permute.xlu1 %917 }
 0xee5   :  { %v920_v48 = vsel %vm124_vm4, %v914_v51, %v918_v29  ;;  %v1126_v29 = vpack.c.bf16 %v2949_v40, %v2925_v47  ;;  %v1127_v51 = vpack.c.bf16 %v2999_v16, %v2974_v31 }
 0xeef   :  { %v2453_v32 = vpop.eup %2452 }
 0xef0   :  { %v3047_v42 = vmul.f32 %v2453_v32, %v920_v48 }
 0xef2   :  { %v928_v44 = vpack.c.bf16 %v3047_v42, %v3047_v42  ;;  %v1128_v32 = vpack.c.bf16 %v3047_v42, %v3023_v8 }
 0xef4   :  { %2283 = vmatmul.mubr.msk.bf16.vlgmr.msra.gmra.mxu0 %vm334_vm10, %v928_v44 }
 0xef5   :  { %1239 = vmatprep.mubr.bf16.mxu0 %v2646_v0 }
 0xfb4   :  { %v966_v50 = vpop.f32.mrf.mxu0 }
 0xfb5   :  { %v973_v52 = vadd.f32 %v966_v50, %v2913_v63 }
 0xfb6   :  { %v968_v17 = vpop.f32.mrf.mxu0 }
 0xfb7   :  { %2454 = vtanh.f32 %v973_v52  ;;  %v974_v53 = vadd.f32 %v968_v17, %v2894_v39  ;;  %v2284_v62 = vmul.f32 -1.442695, %v973_v52 }
 0xfb8   :  { %v970_v45 = vpop.f32.mrf.mxu0 }
 0xfb9   :  { %2456 = vtanh.f32 %v974_v53  ;;  %v2285_v1 = vmul.f32 -1.442695, %v974_v53 }
 0xfba   :  { %v971_v56 = vpop.f32.mrf.mxu0  ;;  %2458 = vpow2.f32 %v2284_v62 }
 0xfbb   :  { %2460 = vpow2.f32 %v2285_v1 }
 0xfc4   :  { %v2455_v54 = vpop.eup %2454 }
 0xfc5   :  { %991 = vrot.lane.b32.xlu0 %v2455_v54, %s2648_s4 }
 0xfc6   :  { %v2457_v59 = vpop.eup %2456 }
 0xfc7   :  { %1002 = vrot.lane.b32.xlu1 %v2457_v59, %s2648_s4  ;;  %v2459_v3 = vpop.eup %2458 }
 0xfc8   :  { %v2461_v5 = vpop.eup %2460  ;;  %v981_v63 = vadd.f32 1.0, %v2459_v3 }
 0xfc9   :  { %v982_v41 = vadd.f32 1.0, %v2461_v5 }
 0xfca   :  { %2462 = vrcp.f32 %v981_v63 }
 0xfcb   :  { %2464 = vrcp.f32 %v982_v41 }
 0xfd7   :  { %v2463_v39 = vpop.eup %2462 }
 0xfd8   :  { %v2465_v60 = vpop.eup %2464  ;;  %v989_v36 = vmul.f32 %v2463_v39, %v900_v30  ;;  %v1152_v30 = vpack.c.bf16 %v1140_v12, %v1138_v14  ;;  %v1171_v14 = vld [vmem:[#allocation4 + $0x68] sm:$0xff] }
 0xfd9   :  { %v1000_v55 = vmul.f32 %v2465_v60, %v911_v33  ;;  %v1134_v33 = vld [vmem:[#allocation2] sm:$0xff] }
 0xfda   :  { %v1150_v37 = vpack.c.bf16 %v1136_v34, %v1134_v33  ;;  %v1169_v33 = vld [vmem:[#allocation4 + $0x58] sm:$0xff] }
0x1037   :  { %v992_v6 = vpop.permute.xlu0 %991 }
0x1038   :  { %v994_v7 = vmul.f32 %v2463_v39, %v992_v6 }
0x1039   :  { %v1003_v9 = vpop.permute.xlu1 %1002 }
0x103a   :  { %996 = vrot.lane.b32.xlu0 %v994_v7, %s2649_s19  ;;  %v1005_v10 = vmul.f32 %v2465_v60, %v1003_v9 }
0x103c   :  { %1007 = vrot.lane.b32.xlu1 %v1005_v10, %s2649_s19  ;;  %v1131_v10 = vpack.c.bf16 %v3023_v8, %v3047_v42  ;;  %v1173_v8 = vld [vmem:[#allocation4 + $0x78] sm:$0xff] }
0x103d   :  { %v3104_v12 = vpack.c.bf16 %v1173_v8, %v1171_v14 }
0x1040   :  { %1012 = vrot.lane.b32.xlu1 %v2463_v39, %s2649_s19 }
0x10ac   :  { %v997_v35 = vpop.permute.xlu0 %996 }
0x10ad   :  { %v3060_v2 = vadd.f32 %v997_v35, %v989_v36  ;;  %v1133_v36 = vpack.c.bf16 %v2925_v47, %v2949_v40  ;;  %v1147_v35 = vld [vmem:[#allocation2 + $0x68] sm:$0xff] }
0x10ae   :  { %v1008_v49 = vpop.permute.xlu1 %1007  ;;  %v1157_v46 = vpack.c.bf16 %v1149_v38, %v1147_v35 }
0x10af   :  { %1021 = vrot.lane.b32.xlu0 %v3060_v2, %s2650_s20  ;;  %v3065_v58 = vadd.f32 %v1008_v49, %v1000_v55  ;;  %v1148_v49 = vld [vmem:[#allocation2 + $0x70] sm:$0xff]  ;;  %v1145_v55 = vld [vmem:[#allocation2 + $0x58] sm:$0xff] }
0x10b0   :  { %1219 = vmatprep.subr.bf16.mxu0 %v1157_v46  ;;  %v1182_v46 = vld [vmem:[%s3391_s7] sm:$0x3] }
0x10b2   :  { %v1013_v43 = vpop.permute.xlu1 %1012 }
0x10b3   :  { %1016 = vrot.lane.b32.xlu0 %v2465_v60, %s2648_s4 }
0x1121   :  { %v1022_v61 = vpop.permute.xlu0 %1021 }
0x1122   :  { %v1024_v57 = vsel %vm124_vm4, %v1022_v61, %v3065_v58  ;;  %v1156_v61 = vpack.c.bf16 %v1148_v49, %v1146_v11  ;;  %v1373_v49 = vrot.slane %v1182_v46, %v244_v26 }
0x1123   :  { %2466 = vtanh.f32 %v1024_v57 }
0x1124   :  { %1220 = vmatpush1.bf16.msra.mxu0 %v1156_v61 }
0x1125   :  { %v1017_v13 = vpop.permute.xlu0 %1016 }
0x1126   :  { %v1019_v19 = vsel %vm124_vm4, %v1013_v43, %v1017_v13  ;;  %v1142_v13 = vld [vmem:[#allocation2 + $0x40] sm:$0xff]  ;;  %v1144_v43 = vld [vmem:[#allocation2 + $0x50] sm:$0xff] }
0x1127   :  { %v1154_v42 = vpack.c.bf16 %v1144_v43, %v1142_v13  ;;  %v1369_v43 = vrot.slane %v1182_v46, %v240_v24 }
0x1130   :  { %v2467_v15 = vpop.eup %2466 }
0x1131   :  { %v3070_v27 = vmul.f32 %v2467_v15, %v1019_v19 }
0x1133   :  { %v1027_v20 = vpack.c.bf16 %v3070_v27, %v3070_v27 }
0x1135   :  { %2286 = vmatmul.mubr.msk.bf16.vlgmr.msra.gmra.mxu1 %vm334_vm10, %v1027_v20 }
0x1136   :  { %1305 = vmatpush1.bf16.msra.mxu1 %v1152_v30  ;;  %1324 = vmatprep.mubr.bf16.mxu1 %v2646_v0  ;;  %v1172_v30 = vld [vmem:[#allocation4 + $0x70] sm:$0xff] }
0x1137   :  { %1306 = vmatprep.subr.bf16.mxu1 %v1151_v25  ;;  %v3110_v20 = vpack.c.bf16 %v1172_v30, %v1170_v22  ;;  %v1167_v25 = vld [vmem:[#allocation4 + $0x48] sm:$0xff] }
0x1138   :  { %v3113_v34 = vpack.c.bf16 %v1169_v33, %v1167_v25 }
0x113a   :  { %1307 = vmatpush1.bf16.msra.mxu1 %v1150_v37 }
0x113b   :  { %1499 = vmatprep.subr.bf16.mxu1 %v3104_v12 }
0x113d   :  { %2293 = vmatmul.mubr.msk.bf16.vlgmr.msra.gmra.mxu1 %vm124_vm4, %v1126_v29 }
0x113e   :  { %1334 = vmatprep.mubr.bf16.mxu1 %v2646_v0  ;;  %1500 = vmatpush1.bf16.msra.mxu1 %v3110_v20 }
0x113f   :  { %1501 = vmatprep.subr.bf16.mxu1 %v3113_v34 }
0x1145   :  { %2294 = vmatmul.mubr.msk.bf16.gmra.mxu1 %vm124_vm4, %v1127_v51 }
0x1146   :  { %1344 = vmatprep.mubr.bf16.mxu1 %v2646_v0 }
0x114d   :  { %2295 = vmatmul.mubr.msk.bf16.gmra.mxu1 %vm124_vm4, %v1128_v32  ;;  %v1166_v32 = vld [vmem:[#allocation4 + $0x40] sm:$0xff] }
0x114e   :  { %1354 = vmatprep.mubr.bf16.mxu1 %v2646_v0 }
0x11f5   :  { %v1065_v48 = vpop.f32.mrf.mxu1 }
0x11f6   :  { %v1072_v44 = vadd.f32 %v1065_v48, %v2915_v4  ;;  %v1168_v48 = vld [vmem:[#allocation4 + $0x50] sm:$0xff] }
0x11f7   :  { %v1067_v50 = vpop.f32.mrf.mxu1 }
0x11f8   :  { %2468 = vtanh.f32 %v1072_v44  ;;  %v1073_v52 = vadd.f32 %v1067_v50, %v2890_v18  ;;  %v2287_v54 = vmul.f32 -1.442695, %v1072_v44  ;;  %v3117_v50 = vpack.c.bf16 %v1168_v48, %v1166_v32 }
0x11f9   :  { %v1069_v17 = vpop.f32.mrf.mxu1 }
0x11fa   :  { %2470 = vtanh.f32 %v1073_v52  ;;  %v2288_v59 = vmul.f32 -1.442695, %v1073_v52  ;;  %v1163_v52 = vld [vmem:[#allocation4 + $0x28] sm:$0xff]  ;;  %v1165_v17 = vld [vmem:[#allocation4 + $0x38] sm:$0xff]  ;;  %1502 = vmatpush1.bf16.msra.mxu1 %v3117_v50 }
0x11fb   :  { %v1070_v53 = vpop.f32.mrf.mxu1  ;;  %2472 = vpow2.f32 %v2287_v54  ;;  %v1132_v54 = vpack.c.bf16 %v2974_v31, %v2999_v16 }
0x11fc   :  { %2474 = vpow2.f32 %v2288_v59  ;;  %v3119_v53 = vpack.c.bf16 %v1165_v17, %v1163_v52  ;;  %v1162_v59 = vld [vmem:[#allocation4 + $0x20] sm:$0xff] }
0x11fe   :  { %1503 = vmatprep.subr.bf16.mxu1 %v3119_v53 }
0x1205   :  { %v2469_v45 = vpop.eup %2468 }
0x1206   :  { %1090 = vrot.lane.b32.xlu1 %v2469_v45, %s2648_s4 }
0x1207   :  { %v2471_v56 = vpop.eup %2470 }
0x1208   :  { %1101 = vrot.lane.b32.xlu0 %v2471_v56, %s2648_s4  ;;  %v2473_v62 = vpop.eup %2472 }
0x1209   :  { %v2475_v1 = vpop.eup %2474  ;;  %v1080_v4 = vadd.f32 1.0, %v2473_v62  ;;  %v1164_v62 = vld [vmem:[#allocation4 + $0x30] sm:$0xff] }
0x120a   :  { %v1081_v3 = vadd.f32 1.0, %v2475_v1  ;;  %v3131_v1 = vpack.c.bf16 %v1164_v62, %v1162_v59 }
0x120b   :  { %2476 = vrcp.f32 %v1080_v4  ;;  %v1161_v4 = vld [vmem:[#allocation4 + $0x18] sm:$0xff] }
0x120c   :  { %2478 = vrcp.f32 %v1081_v3  ;;  %1504 = vmatpush1.bf16.msra.mxu1 %v3131_v1 }
0x1218   :  { %v2477_v18 = vpop.eup %2476 }
0x1219   :  { %v2479_v41 = vpop.eup %2478  ;;  %v1088_v7 = vmul.f32 %v2477_v18, %v3060_v2  ;;  %v1143_v2 = vld [vmem:[#allocation2 + $0x48] sm:$0xff] }
0x121a   :  { %v1155_v57 = vpack.c.bf16 %v1145_v55, %v1143_v2  ;;  %v1099_v40 = vmul.f32 %v2479_v41, %v3065_v58 }
0x121c   :  { %1221 = vmatprep.subr.bf16.mxu0 %v1155_v57 }
0x121d   :  { %1222 = vmatpush1.bf16.msra.mxu0 %v1154_v42 }
0x121e   :  { %1400 = vmatprep.subr.bf16.mxu0 %v3104_v12 }
0x1278   :  { %v1091_v5 = vpop.permute.xlu1 %1090 }
0x1279   :  { %v1093_v63 = vmul.f32 %v2477_v18, %v1091_v5  ;;  %v1160_v5 = vld [vmem:[#allocation4 + $0x10] sm:$0xff] }
0x127a   :  { %v1102_v39 = vpop.permute.xlu0 %1101 }
0x127b   :  { %1095 = vrot.lane.b32.xlu1 %v1093_v63, %s2649_s19  ;;  %v1104_v6 = vmul.f32 %v2479_v41, %v1102_v39 }
0x127d   :  { %1106 = vrot.lane.b32.xlu0 %v1104_v6, %s2649_s19  ;;  %v1326_v6 = vpop.f32.mrf.mxu1 }
0x1281   :  { %1111 = vrot.lane.b32.xlu0 %v2477_v18, %s2649_s19  ;;  %v1158_v18 = vld [vmem:[#allocation4] sm:$0xff] }
0x1282   :  { %v3137_v63 = vpack.c.bf16 %v1160_v5, %v1158_v18 }
0x12ed   :  { %v1096_v60 = vpop.permute.xlu1 %1095 }
0x12ee   :  { %v1098_v9 = vadd.f32 %v1096_v60, %v1088_v7  ;;  %v1328_v7 = vpop.f32.mrf.mxu1 }
0x12ef   :  { %v1107_v47 = vpop.permute.xlu0 %1106 }
0x12f0   :  { %1120 = vrot.lane.b32.xlu1 %v1098_v9, %s2650_s20  ;;  %v1109_v15 = vadd.f32 %v1107_v47, %v1099_v40  ;;  %v1330_v60 = vpop.f32.mrf.mxu1 }
0x12f2   :  { %v1332_v9 = vpop.f32.mrf.mxu1 }
0x12f3   :  { %v1112_v29 = vpop.permute.xlu0 %1111 }
0x12f4   :  { %1115 = vrot.lane.b32.xlu1 %v2479_v41, %s2648_s4 }
0x12f8   :  { %1189 = vrot.lane.b32.xlu1 %v1131_v10, %s2650_s20  ;;  %v1336_v10 = vpop.f32.mrf.mxu1 }
0x12fc   :  { %1193 = vrot.lane.b32.xlu1 %v1133_v36, %s2650_s20  ;;  %v1338_v36 = vpop.f32.mrf.mxu1 }
0x12fe   :  { %v1340_v35 = vpop.f32.mrf.mxu1 }
0x1300   :  { %v1342_v38 = vpop.f32.mrf.mxu1 }
0x1302   :  { %v1346_v61 = vpop.f32.mrf.mxu1 }
0x1304   :  { %v1348_v40 = vpop.f32.mrf.mxu1 }
0x1306   :  { %v1350_v25 = vpop.f32.mrf.mxu1 }
0x1362   :  { %v1121_v19 = vpop.permute.xlu1 %1120 }
0x1363   :  { %v1123_v21 = vsel %vm124_vm4, %v1121_v19, %v1109_v15 }
0x1364   :  { %2480 = vtanh.f32 %v1123_v21 }
0x1366   :  { %v1116_v37 = vpop.permute.xlu1 %1115 }
0x1367   :  { %v1118_v51 = vsel %vm124_vm4, %v1112_v29, %v1116_v37 }
0x136a   :  { %v1190_v16 = vpop.permute.xlu1 %1189 }
0x136e   :  { %v1194_v39 = vpop.permute.xlu1 %1193 }
0x1371   :  { %v2481_v58 = vpop.eup %2480 }
0x1372   :  { %v1125_v44 = vmul.f32 %v2481_v58, %v1118_v51  ;;  %v1352_v51 = vpop.f32.mrf.mxu1 }
0x1374   :  { %v1129_v45 = vpack.c.bf16 %v1125_v44, %v3070_v27  ;;  %v1130_v56 = vpack.c.bf16 %v3070_v27, %v1125_v44  ;;  %v1159_v27 = vld [vmem:[#allocation4 + $0x8] sm:$0xff] }
0x1375   :  { %v3133_v3 = vpack.c.bf16 %v1161_v4, %v1159_v27 }
0x1376   :  { %1187 = vrot.lane.b32.xlu0 %v1130_v56, %s2650_s20  ;;  %2296 = vmatmul.mubr.msk.bf16.gmra.mxu1 %vm124_vm4, %v1129_v45 }
0x1377   :  { %1523 = vmatprep.mubr.bf16.mxu1 %v2646_v0  ;;  %1505 = vmatprep.subr.bf16.mxu1 %v3133_v3 }
0x1378   :  { %1506 = vmatpush1.bf16.msra.mxu1 %v3137_v63 }
0x1379   :  { %1697 = vmatprep.subr.bf16.mxu1 %v3104_v12 }
0x137a   :  { %1191 = vrot.lane.b32.xlu0 %v1132_v54, %s2650_s20 }
0x13e8   :  { %v1188_v31 = vpop.permute.xlu0 %1187 }
0x13e9   :  { %2289 = vmatmul.mubr.msk.bf16.vlgmr.msra.gmra.mxu0 %vm124_vm4, %v1188_v31 }
0x13ea   :  { %1401 = vmatpush1.bf16.msra.mxu0 %v3110_v20  ;;  %1249 = vmatprep.mubr.bf16.mxu0 %v2646_v0 }
0x13eb   :  { %1402 = vmatprep.subr.bf16.mxu0 %v3113_v34 }
0x13ec   :  { %v1192_v41 = vpop.permute.xlu0 %1191 }
0x13ee   :  { %1403 = vmatpush1.bf16.msra.mxu0 %v3117_v50 }
0x13ef   :  { %1404 = vmatprep.subr.bf16.mxu0 %v3119_v53 }
0x13f1   :  { %2290 = vmatmul.mubr.msk.bf16.gmra.mxu0 %vm124_vm4, %v1190_v16 }
0x13f2   :  { %1259 = vmatprep.mubr.bf16.mxu0 %v2646_v0  ;;  %1405 = vmatpush1.bf16.msra.mxu0 %v3131_v1 }
0x13f3   :  { %1406 = vmatprep.subr.bf16.mxu0 %v3133_v3 }
0x13f6   :  { %1407 = vmatpush1.bf16.msra.mxu0 %v3137_v63 }
0x13f7   :  { %1598 = vmatprep.subr.bf16.mxu0 %v3104_v12 }
0x13f9   :  { %2291 = vmatmul.mubr.msk.bf16.gmra.mxu0 %vm124_vm4, %v1192_v41 }
0x13fa   :  { %1269 = vmatprep.mubr.bf16.mxu0 %v2646_v0 }
0x1401   :  { %2292 = vmatmul.mubr.msk.bf16.gmra.mxu0 %vm124_vm4, %v1194_v39 }
0x1402   :  { %1424 = vmatprep.mubr.bf16.mxu0 %v2646_v0 }
0x1409   :  { %1425 = vmatmul.mubr.bf16.vlgmr.msra.gmra.mxu0 %v2646_v0 }
0x140a   :  { %1599 = vmatpush1.bf16.msra.mxu0 %v3110_v20  ;;  %1622 = vmatprep.mubr.bf16.mxu0 %v2646_v0 }
0x140b   :  { %1600 = vmatprep.subr.bf16.mxu0 %v3113_v34 }
0x140e   :  { %1601 = vmatpush1.bf16.msra.mxu0 %v3117_v50 }
0x140f   :  { %1602 = vmatprep.subr.bf16.mxu0 %v3119_v53 }
0x1412   :  { %1603 = vmatpush1.bf16.msra.mxu0 %v3131_v1 }
0x1413   :  { %1604 = vmatprep.subr.bf16.mxu0 %v3133_v3 }
0x1416   :  { %1605 = vmatpush1.bf16.msra.mxu0 %v3137_v63 }
0x1417   :  { %1796 = vmatprep.subr.bf16.mxu0 %v3104_v12 }
0x1436   :  { %v1356_v52 = vpop.f32.mrf.mxu1 }
0x1438   :  { %v1358_v27 = vpop.f32.mrf.mxu1 }
0x143a   :  { %v1360_v39 = vpop.f32.mrf.mxu1 }
0x143c   :  { %v1362_v46 = vpop.f32.mrf.mxu1 }
0x14a9   :  { %v1241_v11 = vpop.f32.mrf.mxu0 }
0x14ab   :  { %v1243_v2 = vpop.f32.mrf.mxu0 }
0x14ac   :  { %v1329_v55 = vadd.f32 %v1328_v7, %v1243_v2 }
0x14ad   :  { %v1245_v57 = vpop.f32.mrf.mxu0 }
0x14ae   :  { %v1331_v13 = vadd.f32 %v1330_v60, %v1245_v57  ;;  %v3174_v14 = vadd.f32 %v1373_v49, %v1329_v55  ;;  %v1327_v60 = vadd.f32 %v1326_v6, %v1241_v11 }
0x14af   :  { %v1247_v8 = vpop.f32.mrf.mxu0 }
0x14b0   :  { %v1333_v42 = vadd.f32 %v1332_v9, %v1247_v8  ;;  %v3176_v47 = vadd.f32 %v1369_v43, %v1331_v13 }
0x14b1   :  { %v1251_v15 = vpop.f32.mrf.mxu0 }
0x14b2   :  { %v1337_v19 = vadd.f32 %v1336_v10, %v1251_v15  ;;  %v3178_v21 = vadd.f32 %v1373_v49, %v1333_v42 }
0x14b3   :  { %v1253_v26 = vpop.f32.mrf.mxu0 }
0x14b4   :  { %v1339_v22 = vadd.f32 %v1338_v36, %v1253_v26  ;;  %v3180_v30 = vadd.f32 %v1369_v43, %v1337_v19 }
0x14b5   :  { %v1255_v33 = vpop.f32.mrf.mxu0 }
0x14b6   :  { %v1341_v37 = vadd.f32 %v1340_v35, %v1255_v33  ;;  %v3182_v23 = vadd.f32 %v1373_v49, %v1339_v22 }
0x14b7   :  { %v1257_v24 = vpop.f32.mrf.mxu0 }
0x14b8   :  { %v1343_v29 = vadd.f32 %v1342_v38, %v1257_v24  ;;  %v3184_v58 = vadd.f32 %v1369_v43, %v1341_v37 }
0x14b9   :  { %v1261_v32 = vpop.f32.mrf.mxu0 }
0x14ba   :  { %v1347_v48 = vadd.f32 %v1346_v61, %v1261_v32  ;;  %v3186_v44 = vadd.f32 %v1373_v49, %v1343_v29  ;;  %v1376_v61 = vadd.f32 %v1369_v43, %v1327_v60 }
0x14bb   :  { %v1263_v17 = vpop.f32.mrf.mxu0 }
0x14bc   :  { %v1349_v45 = vadd.f32 %v1348_v40, %v1263_v17  ;;  %v3188_v56 = vadd.f32 %v1369_v43, %v1347_v48 }
0x14bd   :  { %v1265_v54 = vpop.f32.mrf.mxu0 }
0x14be   :  { %v1351_v59 = vadd.f32 %v1350_v25, %v1265_v54  ;;  %v3190_v62 = vadd.f32 %v1373_v49, %v1349_v45 }
0x14bf   :  { %v1267_v4 = vpop.f32.mrf.mxu0 }
0x14c0   :  { %v1353_v18 = vadd.f32 %v1352_v51, %v1267_v4  ;;  %v3192_v5 = vadd.f32 %v1369_v43, %v1351_v59 }
0x14c1   :  { %v1271_v31 = vpop.f32.mrf.mxu0 }
0x14c2   :  { %v1357_v16 = vadd.f32 %v1356_v52, %v1271_v31  ;;  %v3194_v41 = vadd.f32 %v1373_v49, %v1353_v18 }
0x14c3   :  { %v1273_v7 = vpop.f32.mrf.mxu0 }
0x14c4   :  { %v1359_v9 = vadd.f32 %v1358_v27, %v1273_v7  ;;  %v3196_v10 = vadd.f32 %v1369_v43, %v1357_v16 }
0x14c5   :  { %v1275_v36 = vpop.f32.mrf.mxu0 }
0x14c6   :  { %v1361_v35 = vadd.f32 %v1360_v39, %v1275_v36  ;;  %v3198_v38 = vadd.f32 %v1373_v49, %v1359_v9 }
0x14c7   :  { %v1277_v2 = vpop.f32.mrf.mxu0 }
0x14c8   :  { %v1363_v55 = vadd.f32 %v1362_v46, %v1277_v2  ;;  %v3200_v57 = vadd.f32 %v1369_v43, %v1361_v35 }
0x14c9   :  { %v1426_v13 = vpop.f32.mrf.mxu0 }
0x14ca   :  { %v1433_v8 = vadd.f32 %v1426_v13, %v1376_v61  ;;  %v1391_v42 = vadd.f32 %v1373_v49, %v1363_v55 }
0x14cb   :  { %v1428_v40 = vpop.f32.mrf.mxu0 }
0x14cc   :  { %2482 = vtanh.f32 %v1433_v8  ;;  %v1434_v15 = vadd.f32 %v1428_v40, %v1391_v42  ;;  %v2297_v22 = vmul.f32 -1.442695, %v1433_v8 }
0x14cd   :  { %v1430_v6 = vpop.f32.mrf.mxu0 }
0x14ce   :  { %2484 = vtanh.f32 %v1434_v15  ;;  %v2298_v25 = vmul.f32 -1.442695, %v1434_v15 }
0x14cf   :  { %v1431_v11 = vpop.f32.mrf.mxu0  ;;  %2486 = vpow2.f32 %v2297_v22 }
0x14d0   :  { %2488 = vpow2.f32 %v2298_v25 }
0x14d9   :  { %v2483_v19 = vpop.eup %2482 }
0x14da   :  { %1451 = vrot.lane.b32.xlu0 %v2483_v19, %s2648_s4 }
0x14db   :  { %v2485_v26 = vpop.eup %2484 }
0x14dc   :  { %1462 = vrot.lane.b32.xlu1 %v2485_v26, %s2648_s4  ;;  %v2487_v43 = vpop.eup %2486 }
0x14dd   :  { %v2489_v33 = vpop.eup %2488  ;;  %v1441_v37 = vadd.f32 1.0, %v2487_v43 }
0x14de   :  { %v1442_v49 = vadd.f32 1.0, %v2489_v33 }
0x14df   :  { %2490 = vrcp.f32 %v1441_v37 }
0x14e0   :  { %2492 = vrcp.f32 %v1442_v49 }
0x14ec   :  { %v2491_v24 = vpop.eup %2490 }
0x14ed   :  { %v2493_v32 = vpop.eup %2492  ;;  %v1449_v17 = vmul.f32 0.0, %v2491_v24 }
0x14ee   :  { %v1460_v27 = vmul.f32 0.0, %v2493_v32 }
0x154c   :  { %v1452_v29 = vpop.permute.xlu0 %1451 }
0x154d   :  { %v1454_v51 = vmul.f32 %v2491_v24, %v1452_v29 }
0x154e   :  { %v1463_v48 = vpop.permute.xlu1 %1462 }
0x154f   :  { %1456 = vrot.lane.b32.xlu0 %v1454_v51, %s2649_s19  ;;  %v1465_v52 = vmul.f32 %v2493_v32, %v1463_v48 }
0x1551   :  { %1467 = vrot.lane.b32.xlu1 %v1465_v52, %s2649_s19 }
0x1555   :  { %1472 = vrot.lane.b32.xlu1 %v2491_v24, %s2649_s19 }
0x15c1   :  { %v1457_v45 = vpop.permute.xlu0 %1456 }
0x15c2   :  { %v1459_v54 = vadd.f32 %v1457_v45, %v1449_v17 }
0x15c3   :  { %v1468_v59 = vpop.permute.xlu1 %1467 }
0x15c4   :  { %1481 = vrot.lane.b32.xlu0 %v1459_v54, %s2650_s20  ;;  %v1470_v4 = vadd.f32 %v1468_v59, %v1460_v27 }
0x15c7   :  { %v1473_v39 = vpop.permute.xlu1 %1472 }
0x15c8   :  { %1476 = vrot.lane.b32.xlu0 %v2493_v32, %s2648_s4 }
0x1636   :  { %v1482_v18 = vpop.permute.xlu0 %1481 }
0x1637   :  { %v1484_v31 = vsel %vm124_vm4, %v1482_v18, %v1470_v4 }
0x1638   :  { %2494 = vtanh.f32 %v1484_v31 }
0x163a   :  { %v1477_v16 = vpop.permute.xlu0 %1476 }
0x163b   :  { %v1479_v60 = vsel %vm124_vm4, %v1473_v39, %v1477_v16 }
0x1645   :  { %v2495_v7 = vpop.eup %2494 }
0x1646   :  { %v3211_v9 = vmul.f32 %v2495_v7, %v1479_v60 }
0x1648   :  { %v1487_v36 = vpack.c.bf16 %v3211_v9, %v3211_v9 }
0x164a   :  { %2299 = vmatmul.mubr.msk.bf16.vlgmr.msra.gmra.mxu1 %vm334_vm10, %v1487_v36 }
0x164b   :  { %1698 = vmatpush1.bf16.msra.mxu1 %v3110_v20  ;;  %1721 = vmatprep.mubr.bf16.mxu1 %v2646_v0 }
0x164c   :  { %1699 = vmatprep.subr.bf16.mxu1 %v3113_v34 }
0x164f   :  { %1700 = vmatpush1.bf16.msra.mxu1 %v3117_v50 }
0x1650   :  { %1701 = vmatprep.subr.bf16.mxu1 %v3119_v53 }
0x1653   :  { %1702 = vmatpush1.bf16.msra.mxu1 %v3131_v1 }
0x1654   :  { %1703 = vmatprep.subr.bf16.mxu1 %v3133_v3 }
0x1657   :  { %1704 = vmatpush1.bf16.msra.mxu1 %v3137_v63 }
0x1658   :  { %1895 = vmatprep.subr.bf16.mxu1 %v3104_v12 }
0x170a   :  { %v1525_v35 = vpop.f32.mrf.mxu1 }
0x170b   :  { %v1532_v46 = vadd.f32 %v1525_v35, %v3176_v47 }
0x170c   :  { %v1527_v2 = vpop.f32.mrf.mxu1 }
0x170d   :  { %2496 = vtanh.f32 %v1532_v46  ;;  %v1533_v55 = vadd.f32 %v1527_v2, %v3198_v38  ;;  %v2300_v40 = vmul.f32 -1.442695, %v1532_v46 }
0x170e   :  { %v1529_v61 = vpop.f32.mrf.mxu1 }
0x170f   :  { %2498 = vtanh.f32 %v1533_v55  ;;  %v2301_v15 = vmul.f32 -1.442695, %v1533_v55 }
0x1710   :  { %v1530_v13 = vpop.f32.mrf.mxu1  ;;  %2500 = vpow2.f32 %v2300_v40 }
0x1711   :  { %2502 = vpow2.f32 %v2301_v15 }
0x171a   :  { %v2497_v8 = vpop.eup %2496 }
0x171b   :  { %1550 = vrot.lane.b32.xlu1 %v2497_v8, %s2648_s4 }
0x171c   :  { %v2499_v42 = vpop.eup %2498 }
0x171d   :  { %1561 = vrot.lane.b32.xlu0 %v2499_v42, %s2648_s4  ;;  %v2501_v6 = vpop.eup %2500 }
0x171e   :  { %v2503_v11 = vpop.eup %2502  ;;  %v1540_v47 = vadd.f32 1.0, %v2501_v6 }
0x171f   :  { %v1541_v19 = vadd.f32 1.0, %v2503_v11 }
0x1720   :  { %2504 = vrcp.f32 %v1540_v47 }
0x1721   :  { %2506 = vrcp.f32 %v1541_v19 }
0x172d   :  { %v2505_v38 = vpop.eup %2504 }
0x172e   :  { %v2507_v25 = vpop.eup %2506  ;;  %v1548_v37 = vmul.f32 %v2505_v38, %v1459_v54 }
0x172f   :  { %v1559_v51 = vmul.f32 %v2507_v25, %v1470_v4 }
0x178d   :  { %v1551_v26 = vpop.permute.xlu1 %1550 }
0x178e   :  { %v1553_v22 = vmul.f32 %v2505_v38, %v1551_v26 }
0x178f   :  { %v1562_v43 = vpop.permute.xlu0 %1561 }
0x1790   :  { %1555 = vrot.lane.b32.xlu1 %v1553_v22, %s2649_s19  ;;  %v1564_v33 = vmul.f32 %v2507_v25, %v1562_v43 }
0x1792   :  { %1566 = vrot.lane.b32.xlu0 %v1564_v33, %s2649_s19 }
0x1796   :  { %1571 = vrot.lane.b32.xlu0 %v2505_v38, %s2649_s19 }
0x1802   :  { %v1556_v49 = vpop.permute.xlu1 %1555 }
0x1803   :  { %v1558_v24 = vadd.f32 %v1556_v49, %v1548_v37 }
0x1804   :  { %v1567_v29 = vpop.permute.xlu0 %1566 }
0x1805   :  { %1580 = vrot.lane.b32.xlu1 %v1558_v24, %s2650_s20  ;;  %v1569_v32 = vadd.f32 %v1567_v29, %v1559_v51 }
0x1808   :  { %v1572_v45 = vpop.permute.xlu0 %1571 }
0x1809   :  { %1575 = vrot.lane.b32.xlu1 %v2507_v25, %s2648_s4 }
0x1877   :  { %v1581_v48 = vpop.permute.xlu1 %1580 }
0x1878   :  { %v1583_v52 = vsel %vm124_vm4, %v1581_v48, %v1569_v32 }
0x1879   :  { %2508 = vtanh.f32 %v1583_v52 }
0x187b   :  { %v1576_v17 = vpop.permute.xlu1 %1575 }
0x187c   :  { %v1578_v27 = vsel %vm124_vm4, %v1572_v45, %v1576_v17 }
0x1886   :  { %v2509_v59 = vpop.eup %2508 }
0x1887   :  { %v1585_v18 = vmul.f32 %v2509_v59, %v1578_v27 }
0x1889   :  { %v1586_v54 = vpack.c.bf16 %v1585_v18, %v1585_v18 }
0x188b   :  { %2302 = vmatmul.mubr.msk.bf16.vlgmr.msra.gmra.mxu0 %vm334_vm10, %v1586_v54 }
0x188c   :  { %1797 = vmatpush1.bf16.msra.mxu0 %v3110_v20  ;;  %1820 = vmatprep.mubr.bf16.mxu0 %v2646_v0 }
0x188d   :  { %1798 = vmatprep.subr.bf16.mxu0 %v3113_v34 }
0x1890   :  { %1799 = vmatpush1.bf16.msra.mxu0 %v3117_v50 }
0x1891   :  { %1800 = vmatprep.subr.bf16.mxu0 %v3119_v53 }
0x1894   :  { %1801 = vmatpush1.bf16.msra.mxu0 %v3131_v1 }
0x1895   :  { %1802 = vmatprep.subr.bf16.mxu0 %v3133_v3 }
0x1898   :  { %1803 = vmatpush1.bf16.msra.mxu0 %v3137_v63 }
0x1899   :  { %1994 = vmatprep.subr.bf16.mxu0 %v3104_v12 }
0x194b   :  { %v1624_v4 = vpop.f32.mrf.mxu0 }
0x194c   :  { %v1631_v31 = vadd.f32 %v1624_v4, %v3180_v30 }
0x194d   :  { %v1626_v16 = vpop.f32.mrf.mxu0 }
0x194e   :  { %2510 = vtanh.f32 %v1631_v31  ;;  %v1632_v39 = vadd.f32 %v1626_v16, %v3194_v41  ;;  %v2303_v46 = vmul.f32 -1.442695, %v1631_v31 }
0x194f   :  { %v1628_v7 = vpop.f32.mrf.mxu0 }
0x1950   :  { %2512 = vtanh.f32 %v1632_v39  ;;  %v2304_v2 = vmul.f32 -1.442695, %v1632_v39 }
0x1951   :  { %v1629_v60 = vpop.f32.mrf.mxu0  ;;  %2514 = vpow2.f32 %v2303_v46 }
0x1952   :  { %2516 = vpow2.f32 %v2304_v2 }
0x195b   :  { %v2511_v36 = vpop.eup %2510 }
0x195c   :  { %1649 = vrot.lane.b32.xlu0 %v2511_v36, %s2648_s4 }
0x195d   :  { %v2513_v35 = vpop.eup %2512 }
0x195e   :  { %1660 = vrot.lane.b32.xlu1 %v2513_v35, %s2648_s4  ;;  %v2515_v55 = vpop.eup %2514 }
0x195f   :  { %v2517_v61 = vpop.eup %2516  ;;  %v1639_v30 = vadd.f32 1.0, %v2515_v55 }
0x1960   :  { %v1640_v13 = vadd.f32 1.0, %v2517_v61 }
0x1961   :  { %2518 = vrcp.f32 %v1639_v30 }
0x1962   :  { %2520 = vrcp.f32 %v1640_v13 }
0x196e   :  { %v2519_v41 = vpop.eup %2518 }
0x196f   :  { %v2521_v40 = vpop.eup %2520  ;;  %v1647_v11 = vmul.f32 %v2519_v41, %v1558_v24 }
0x1970   :  { %v1658_v26 = vmul.f32 %v2521_v40, %v1569_v32 }
0x19ce   :  { %v1650_v8 = vpop.permute.xlu0 %1649 }
0x19cf   :  { %v1652_v42 = vmul.f32 %v2519_v41, %v1650_v8 }
0x19d0   :  { %v1661_v15 = vpop.permute.xlu1 %1660 }
0x19d1   :  { %1654 = vrot.lane.b32.xlu0 %v1652_v42, %s2649_s19  ;;  %v1663_v6 = vmul.f32 %v2521_v40, %v1661_v15 }
0x19d3   :  { %1665 = vrot.lane.b32.xlu1 %v1663_v6, %s2649_s19 }
0x19d7   :  { %1670 = vrot.lane.b32.xlu1 %v2519_v41, %s2649_s19 }
0x1a43   :  { %v1655_v47 = vpop.permute.xlu0 %1654 }
0x1a44   :  { %v1657_v19 = vadd.f32 %v1655_v47, %v1647_v11 }
0x1a45   :  { %v1666_v38 = vpop.permute.xlu1 %1665 }
0x1a46   :  { %1679 = vrot.lane.b32.xlu0 %v1657_v19, %s2650_s20  ;;  %v1668_v22 = vadd.f32 %v1666_v38, %v1658_v26 }
0x1a49   :  { %v1671_v37 = vpop.permute.xlu1 %1670 }
0x1a4a   :  { %1674 = vrot.lane.b32.xlu0 %v2521_v40, %s2648_s4 }
0x1ab8   :  { %v1680_v25 = vpop.permute.xlu0 %1679 }
0x1ab9   :  { %v1682_v43 = vsel %vm124_vm4, %v1680_v25, %v1668_v22 }
0x1aba   :  { %2522 = vtanh.f32 %v1682_v43 }
0x1abc   :  { %v1675_v33 = vpop.permute.xlu0 %1674 }
0x1abd   :  { %v1677_v29 = vsel %vm124_vm4, %v1671_v37, %v1675_v33 }
0x1ac7   :  { %v2523_v49 = vpop.eup %2522 }
0x1ac8   :  { %v1684_v51 = vmul.f32 %v2523_v49, %v1677_v29 }
0x1aca   :  { %v1685_v24 = vpack.c.bf16 %v1684_v51, %v1684_v51 }
0x1acc   :  { %2305 = vmatmul.mubr.msk.bf16.vlgmr.msra.gmra.mxu1 %vm334_vm10, %v1685_v24 }
0x1acd   :  { %1896 = vmatpush1.bf16.msra.mxu1 %v3110_v20  ;;  %1919 = vmatprep.mubr.bf16.mxu1 %v2646_v0 }
0x1ace   :  { %1897 = vmatprep.subr.bf16.mxu1 %v3113_v34 }
0x1ad1   :  { %1898 = vmatpush1.bf16.msra.mxu1 %v3117_v50 }
0x1ad2   :  { %1899 = vmatprep.subr.bf16.mxu1 %v3119_v53 }
0x1ad5   :  { %1900 = vmatpush1.bf16.msra.mxu1 %v3131_v1 }
0x1ad6   :  { %1901 = vmatprep.subr.bf16.mxu1 %v3133_v3 }
0x1ad9   :  { %1902 = vmatpush1.bf16.msra.mxu1 %v3137_v63 }
0x1ada   :  { %2093 = vmatprep.subr.bf16.mxu1 %v3104_v12 }
0x1b8c   :  { %v1723_v32 = vpop.f32.mrf.mxu1 }
0x1b8d   :  { %v1730_v48 = vadd.f32 %v1723_v32, %v3184_v58 }
0x1b8e   :  { %v1725_v52 = vpop.f32.mrf.mxu1 }
0x1b8f   :  { %2524 = vtanh.f32 %v1730_v48  ;;  %v1731_v17 = vadd.f32 %v1725_v52, %v3190_v62  ;;  %v2306_v54 = vmul.f32 -1.442695, %v1730_v48 }
0x1b90   :  { %v1727_v45 = vpop.f32.mrf.mxu1 }
0x1b91   :  { %2526 = vtanh.f32 %v1731_v17  ;;  %v2307_v4 = vmul.f32 -1.442695, %v1731_v17 }
0x1b92   :  { %v1728_v59 = vpop.f32.mrf.mxu1  ;;  %2528 = vpow2.f32 %v2306_v54 }
0x1b93   :  { %2530 = vpow2.f32 %v2307_v4 }
0x1b9c   :  { %v2525_v27 = vpop.eup %2524 }
0x1b9d   :  { %1748 = vrot.lane.b32.xlu1 %v2525_v27, %s2648_s4 }
0x1b9e   :  { %v2527_v18 = vpop.eup %2526 }
0x1b9f   :  { %1759 = vrot.lane.b32.xlu0 %v2527_v18, %s2648_s4  ;;  %v2529_v12 = vpop.eup %2528 }
0x1ba0   :  { %v2531_v31 = vpop.eup %2530  ;;  %v1738_v58 = vadd.f32 1.0, %v2529_v12 }
0x1ba1   :  { %v1739_v16 = vadd.f32 1.0, %v2531_v31 }
0x1ba2   :  { %2532 = vrcp.f32 %v1738_v58 }
0x1ba3   :  { %2534 = vrcp.f32 %v1739_v16 }
0x1baf   :  { %v2533_v62 = vpop.eup %2532 }
0x1bb0   :  { %v2535_v60 = vpop.eup %2534  ;;  %v1746_v46 = vmul.f32 %v2533_v62, %v1657_v19 }
0x1bb1   :  { %v1757_v30 = vmul.f32 %v2535_v60, %v1668_v22 }
0x1c0f   :  { %v1749_v39 = vpop.permute.xlu1 %1748 }
0x1c10   :  { %v1751_v7 = vmul.f32 %v2533_v62, %v1749_v39 }
0x1c11   :  { %v1760_v36 = vpop.permute.xlu0 %1759 }
0x1c12   :  { %1753 = vrot.lane.b32.xlu1 %v1751_v7, %s2649_s19  ;;  %v1762_v35 = vmul.f32 %v2535_v60, %v1760_v36 }
0x1c14   :  { %1764 = vrot.lane.b32.xlu0 %v1762_v35, %s2649_s19 }
0x1c18   :  { %1769 = vrot.lane.b32.xlu0 %v2533_v62, %s2649_s19 }
0x1c84   :  { %v1754_v2 = vpop.permute.xlu1 %1753 }
0x1c85   :  { %v1756_v55 = vadd.f32 %v1754_v2, %v1746_v46 }
0x1c86   :  { %v1765_v61 = vpop.permute.xlu0 %1764 }
0x1c87   :  { %1778 = vrot.lane.b32.xlu1 %v1756_v55, %s2650_s20  ;;  %v1767_v13 = vadd.f32 %v1765_v61, %v1757_v30 }
0x1c8a   :  { %v1770_v40 = vpop.permute.xlu0 %1769 }
0x1c8b   :  { %1773 = vrot.lane.b32.xlu1 %v2535_v60, %s2648_s4 }
0x1cf9   :  { %v1779_v41 = vpop.permute.xlu1 %1778 }
0x1cfa   :  { %v1781_v8 = vsel %vm124_vm4, %v1779_v41, %v1767_v13 }
0x1cfb   :  { %2536 = vtanh.f32 %v1781_v8 }
0x1cfd   :  { %v1774_v42 = vpop.permute.xlu1 %1773 }
0x1cfe   :  { %v1776_v6 = vsel %vm124_vm4, %v1770_v40, %v1774_v42 }
0x1d08   :  { %v2537_v15 = vpop.eup %2536 }
0x1d09   :  { %v1783_v11 = vmul.f32 %v2537_v15, %v1776_v6 }
0x1d0b   :  { %v1784_v47 = vpack.c.bf16 %v1783_v11, %v1783_v11 }
0x1d0d   :  { %2308 = vmatmul.mubr.msk.bf16.vlgmr.msra.gmra.mxu0 %vm334_vm10, %v1784_v47 }
0x1d0e   :  { %1995 = vmatpush1.bf16.msra.mxu0 %v3110_v20  ;;  %2018 = vmatprep.mubr.bf16.mxu0 %v2646_v0 }
0x1d0f   :  { %1996 = vmatprep.subr.bf16.mxu0 %v3113_v34 }
0x1d12   :  { %1997 = vmatpush1.bf16.msra.mxu0 %v3117_v50 }
0x1d13   :  { %1998 = vmatprep.subr.bf16.mxu0 %v3119_v53 }
0x1d16   :  { %1999 = vmatpush1.bf16.msra.mxu0 %v3131_v1 }
0x1d17   :  { %2000 = vmatprep.subr.bf16.mxu0 %v3133_v3 }
0x1d1a   :  { %2001 = vmatpush1.bf16.msra.mxu0 %v3137_v63 }
0x1d1b   :  { %2346 = vmatprep.subr.bf16.mxu0 %v2647_v28 }
0x1dcd   :  { %v1822_v19 = vpop.f32.mrf.mxu0 }
0x1dce   :  { %v1829_v38 = vadd.f32 %v1822_v19, %v3188_v56 }
0x1dcf   :  { %v1824_v26 = vpop.f32.mrf.mxu0 }
0x1dd0   :  { %2538 = vtanh.f32 %v1829_v38  ;;  %v1830_v22 = vadd.f32 %v1824_v26, %v3186_v44  ;;  %v2309_v49 = vmul.f32 -1.442695, %v1829_v38 }
0x1dd1   :  { %v1826_v25 = vpop.f32.mrf.mxu0 }
0x1dd2   :  { %2540 = vtanh.f32 %v1830_v22  ;;  %v2310_v29 = vmul.f32 -1.442695, %v1830_v22 }
0x1dd3   :  { %v1827_v43 = vpop.f32.mrf.mxu0  ;;  %2542 = vpow2.f32 %v2309_v49 }
0x1dd4   :  { %2544 = vpow2.f32 %v2310_v29 }
0x1ddd   :  { %v2539_v33 = vpop.eup %2538 }
0x1dde   :  { %1847 = vrot.lane.b32.xlu0 %v2539_v33, %s2648_s4 }
0x1ddf   :  { %v2541_v37 = vpop.eup %2540 }
0x1de0   :  { %1858 = vrot.lane.b32.xlu1 %v2541_v37, %s2648_s4  ;;  %v2543_v51 = vpop.eup %2542 }
0x1de1   :  { %v2545_v24 = vpop.eup %2544  ;;  %v1837_v56 = vadd.f32 1.0, %v2543_v51 }
0x1de2   :  { %v1838_v32 = vadd.f32 1.0, %v2545_v24 }
0x1de3   :  { %2546 = vrcp.f32 %v1837_v56 }
0x1de4   :  { %2548 = vrcp.f32 %v1838_v32 }
0x1df0   :  { %v2547_v44 = vpop.eup %2546 }
0x1df1   :  { %v2549_v17 = vpop.eup %2548  ;;  %v1845_v27 = vmul.f32 %v2547_v44, %v1756_v55 }
0x1df2   :  { %v1856_v12 = vmul.f32 %v2549_v17, %v1767_v13 }
0x1e50   :  { %v1848_v48 = vpop.permute.xlu0 %1847 }
0x1e51   :  { %v1850_v52 = vmul.f32 %v2547_v44, %v1848_v48 }
0x1e52   :  { %v1859_v45 = vpop.permute.xlu1 %1858 }
0x1e53   :  { %1852 = vrot.lane.b32.xlu0 %v1850_v52, %s2649_s19  ;;  %v1861_v59 = vmul.f32 %v2549_v17, %v1859_v45 }
0x1e55   :  { %1863 = vrot.lane.b32.xlu1 %v1861_v59, %s2649_s19 }
0x1e59   :  { %1868 = vrot.lane.b32.xlu1 %v2547_v44, %s2649_s19 }
0x1ec5   :  { %v1853_v18 = vpop.permute.xlu0 %1852 }
0x1ec6   :  { %v1855_v54 = vadd.f32 %v1853_v18, %v1845_v27 }
0x1ec7   :  { %v1864_v4 = vpop.permute.xlu1 %1863 }
0x1ec8   :  { %1877 = vrot.lane.b32.xlu0 %v1855_v54, %s2650_s20  ;;  %v1866_v31 = vadd.f32 %v1864_v4, %v1856_v12 }
0x1ecb   :  { %v1869_v39 = vpop.permute.xlu1 %1868 }
0x1ecc   :  { %1872 = vrot.lane.b32.xlu0 %v2549_v17, %s2648_s4 }
0x1f3a   :  { %v1878_v58 = vpop.permute.xlu0 %1877 }
0x1f3b   :  { %v1880_v16 = vsel %vm124_vm4, %v1878_v58, %v1866_v31 }
0x1f3c   :  { %2550 = vtanh.f32 %v1880_v16 }
0x1f3e   :  { %v1873_v62 = vpop.permute.xlu0 %1872 }
0x1f3f   :  { %v1875_v60 = vsel %vm124_vm4, %v1869_v39, %v1873_v62 }
0x1f49   :  { %v2551_v7 = vpop.eup %2550 }
0x1f4a   :  { %v1882_v36 = vmul.f32 %v2551_v7, %v1875_v60 }
0x1f4c   :  { %v1883_v35 = vpack.c.bf16 %v1882_v36, %v1882_v36 }
0x1f4e   :  { %2311 = vmatmul.mubr.msk.bf16.vlgmr.msra.gmra.mxu1 %vm334_vm10, %v1883_v35 }
0x1f4f   :  { %2094 = vmatpush1.bf16.msra.mxu1 %v3110_v20  ;;  %2117 = vmatprep.mubr.bf16.mxu1 %v2646_v0 }
0x1f50   :  { %2095 = vmatprep.subr.bf16.mxu1 %v3113_v34 }
0x1f53   :  { %2096 = vmatpush1.bf16.msra.mxu1 %v3117_v50 }
0x1f54   :  { %2097 = vmatprep.subr.bf16.mxu1 %v3119_v53 }
0x1f57   :  { %2098 = vmatpush1.bf16.msra.mxu1 %v3131_v1 }
0x1f58   :  { %2099 = vmatprep.subr.bf16.mxu1 %v3133_v3 }
0x1f5b   :  { %2100 = vmatpush1.bf16.msra.mxu1 %v3137_v63 }
0x200e   :  { %v1921_v46 = vpop.f32.mrf.mxu1 }
0x200f   :  { %v1928_v2 = vadd.f32 %v1921_v46, %v3192_v5 }
0x2010   :  { %v1923_v55 = vpop.f32.mrf.mxu1 }
0x2011   :  { %2552 = vtanh.f32 %v1928_v2  ;;  %v1929_v20 = vadd.f32 %v1923_v55, %v3182_v23  ;;  %v2312_v53 = vmul.f32 -1.442695, %v1928_v2 }
0x2012   :  { %v1925_v0 = vpop.f32.mrf.mxu1 }
0x2013   :  { %2554 = vtanh.f32 %v1929_v20  ;;  %v2313_v1 = vmul.f32 -1.442695, %v1929_v20 }
0x2014   :  { %v1926_v34 = vpop.f32.mrf.mxu1  ;;  %2556 = vpow2.f32 %v2312_v53 }
0x2015   :  { %2558 = vpow2.f32 %v2313_v1 }
0x201e   :  { %v2553_v61 = vpop.eup %2552 }
0x201f   :  { %1946 = vrot.lane.b32.xlu1 %v2553_v61, %s2648_s4 }
0x2020   :  { %v2555_v50 = vpop.eup %2554 }
0x2021   :  { %1957 = vrot.lane.b32.xlu0 %v2555_v50, %s2648_s4  ;;  %v2557_v3 = vpop.eup %2556 }
0x2022   :  { %v2559_v63 = vpop.eup %2558  ;;  %v1936_v5 = vadd.f32 1.0, %v2557_v3 }
0x2023   :  { %v1937_v30 = vadd.f32 1.0, %v2559_v63 }
0x2024   :  { %2560 = vrcp.f32 %v1936_v5 }
0x2025   :  { %2562 = vrcp.f32 %v1937_v30 }
0x2031   :  { %v2561_v23 = vpop.eup %2560 }
0x2032   :  { %v2563_v8 = vpop.eup %2562  ;;  %v1944_v15 = vmul.f32 %v2561_v23, %v1855_v54 }
0x2033   :  { %v1955_v19 = vmul.f32 %v2563_v8, %v1866_v31 }
0x2091   :  { %v1947_v13 = vpop.permute.xlu1 %1946 }
0x2092   :  { %v1949_v41 = vmul.f32 %v2561_v23, %v1947_v13 }
0x2093   :  { %v1958_v42 = vpop.permute.xlu0 %1957 }
0x2094   :  { %1951 = vrot.lane.b32.xlu1 %v1949_v41, %s2649_s19  ;;  %v1960_v40 = vmul.f32 %v2563_v8, %v1958_v42 }
0x2096   :  { %1962 = vrot.lane.b32.xlu0 %v1960_v40, %s2649_s19 }
0x209a   :  { %1967 = vrot.lane.b32.xlu0 %v2561_v23, %s2649_s19 }
0x2106   :  { %v1952_v6 = vpop.permute.xlu1 %1951 }
0x2107   :  { %v1954_v11 = vadd.f32 %v1952_v6, %v1944_v15 }
0x2108   :  { %v1963_v47 = vpop.permute.xlu0 %1962 }
0x2109   :  { %1976 = vrot.lane.b32.xlu1 %v1954_v11, %s2650_s20  ;;  %v1965_v38 = vadd.f32 %v1963_v47, %v1955_v19 }
0x210c   :  { %v1968_v43 = vpop.permute.xlu0 %1967 }
0x210d   :  { %1971 = vrot.lane.b32.xlu1 %v2563_v8, %s2648_s4 }
0x217b   :  { %v1977_v26 = vpop.permute.xlu1 %1976 }
0x217c   :  { %v1979_v22 = vsel %vm124_vm4, %v1977_v26, %v1965_v38  ;;  %v2188_v26 = vld [vmem:[%s3392_s8 + $0x30] sm:$0xff] }
0x217d   :  { %2564 = vtanh.f32 %v1979_v22  ;;  %v2189_v22 = vld [vmem:[%s3392_s8 + $0x38] sm:$0xff] }
0x217f   :  { %v1972_v25 = vpop.permute.xlu1 %1971 }
0x2180   :  { %v1974_v37 = vsel %vm124_vm4, %v1968_v43, %v1972_v25  ;;  %v2193_v25 = vpack.c.bf16 %v2189_v22, %v2188_v26  ;;  %v2186_v43 = vld [vmem:[%s3392_s8 + $0x20] sm:$0xff] }
0x218a   :  { %v2565_v33 = vpop.eup %2564 }
0x218b   :  { %v1981_v49 = vmul.f32 %v2565_v33, %v1974_v37  ;;  %v2187_v33 = vld [vmem:[%s3392_s8 + $0x28] sm:$0xff] }
0x218c   :  { %v2192_v37 = vpack.c.bf16 %v2187_v33, %v2186_v43 }
0x218d   :  { %v1982_v29 = vpack.c.bf16 %v1981_v49, %v1981_v49 }
0x218f   :  { %2314 = vmatmul.mubr.msk.bf16.vlgmr.msra.gmra.mxu0 %vm334_vm10, %v1982_v29 }
0x2190   :  { %2347 = vmatpush3.bf16.msra.mxu0 %v2193_v25  ;;  %2354 = vmatprep.mubr.msk.bf16.mxu0 %vm2651_vm11, %v2647_v28 }
0x2191   :  { %2348 = vmatprep.subr.bf16.mxu0 %v2647_v28 }
0x2194   :  { %2349 = vmatpush3.bf16.msra.mxu0 %v2192_v37 }
0x2195   :  { %2350 = vmatprep.subr.bf16.mxu0 %v2647_v28 }
0x224f   :  { %v2020_v51 = vpop.f32.mrf.mxu0 }
0x2250   :  { %v2027_v24 = vadd.f32 %v2020_v51, %v3196_v10 }
0x2251   :  { %v2022_v56 = vpop.f32.mrf.mxu0 }
0x2252   :  { %2566 = vtanh.f32 %v2027_v24  ;;  %v2028_v32 = vadd.f32 %v2022_v56, %v3178_v21  ;;  %v2315_v45 = vmul.f32 -1.442695, %v2027_v24  ;;  %v2184_v24 = vld [vmem:[%s3392_s8 + $0x10] sm:$0xff]  ;;  %v2185_v56 = vld [vmem:[%s3392_s8 + $0x18] sm:$0xff] }
0x2253   :  { %v2024_v44 = vpop.f32.mrf.mxu0 }
0x2254   :  { %2568 = vtanh.f32 %v2028_v32  ;;  %v2316_v59 = vmul.f32 -1.442695, %v2028_v32  ;;  %v2191_v32 = vpack.c.bf16 %v2185_v56, %v2184_v24  ;;  %v2182_v44 = vld [vmem:[%s3392_s8] sm:$0xff] }
0x2255   :  { %v2025_v48 = vpop.f32.mrf.mxu0  ;;  %2570 = vpow2.f32 %v2315_v45 }
0x2256   :  { %2572 = vpow2.f32 %v2316_v59  ;;  %2351 = vmatpush3.bf16.msra.mxu0 %v2191_v32  ;;  %v2183_v48 = vld [vmem:[%s3392_s8 + $0x8] sm:$0xff] }
0x2257   :  { %2352 = vmatprep.subr.bf16.mxu0 %v2647_v28  ;;  %v2320_v28 = vld [vmem:[%s3393_s9] ss:$0 sm:$0xff] }
0x225f   :  { %v2567_v52 = vpop.eup %2566 }
0x2260   :  { %2045 = vrot.lane.b32.xlu0 %v2567_v52, %s2648_s4  ;;  %v2190_v52 = vpack.c.bf16 %v2183_v48, %v2182_v44 }
0x2261   :  { %v2569_v17 = vpop.eup %2568 }
0x2262   :  { %2056 = vrot.lane.b32.xlu1 %v2569_v17, %s2648_s4  ;;  %v2571_v27 = vpop.eup %2570  ;;  %2353 = vmatpush3.bf16.msra.mxu0 %v2190_v52 }
0x2263   :  { %v2573_v18 = vpop.eup %2572  ;;  %v2035_v10 = vadd.f32 1.0, %v2571_v27 }
0x2264   :  { %v2036_v54 = vadd.f32 1.0, %v2573_v18 }
0x2265   :  { %2574 = vrcp.f32 %v2035_v10 }
0x2266   :  { %2576 = vrcp.f32 %v2036_v54 }
0x2272   :  { %v2575_v21 = vpop.eup %2574 }
0x2273   :  { %v2577_v31 = vpop.eup %2576  ;;  %v2043_v62 = vmul.f32 %v2575_v21, %v1954_v11 }
0x2274   :  { %v2054_v36 = vmul.f32 %v2577_v31, %v1965_v38 }
0x22d2   :  { %v2046_v4 = vpop.permute.xlu0 %2045 }
0x22d3   :  { %v2048_v12 = vmul.f32 %v2575_v21, %v2046_v4 }
0x22d4   :  { %v2057_v58 = vpop.permute.xlu1 %2056 }
0x22d5   :  { %2050 = vrot.lane.b32.xlu0 %v2048_v12, %s2649_s19  ;;  %v2059_v16 = vmul.f32 %v2577_v31, %v2057_v58 }
0x22d7   :  { %2061 = vrot.lane.b32.xlu1 %v2059_v16, %s2649_s19 }
0x22db   :  { %2066 = vrot.lane.b32.xlu1 %v2575_v21, %s2649_s19 }
0x2347   :  { %v2051_v39 = vpop.permute.xlu0 %2050 }
0x2348   :  { %v2053_v7 = vadd.f32 %v2051_v39, %v2043_v62 }
0x2349   :  { %v2062_v60 = vpop.permute.xlu1 %2061 }
0x234a   :  { %2075 = vrot.lane.b32.xlu0 %v2053_v7, %s2650_s20  ;;  %v3329_v35 = vadd.f32 %v2062_v60, %v2054_v36 }
0x234d   :  { %v2067_v20 = vpop.permute.xlu1 %2066 }
0x234e   :  { %2070 = vrot.lane.b32.xlu0 %v2577_v31, %s2648_s4 }
0x23bc   :  { %v2076_v46 = vpop.permute.xlu0 %2075 }
0x23bd   :  { %v2078_v2 = vsel %vm124_vm4, %v2076_v46, %v3329_v35 }
0x23be   :  { %2578 = vtanh.f32 %v2078_v2 }
0x23c0   :  { %v2071_v55 = vpop.permute.xlu0 %2070 }
0x23c1   :  { %v2073_v34 = vsel %vm124_vm4, %v2067_v20, %v2071_v55 }
0x23cb   :  { %v2579_v0 = vpop.eup %2578 }
0x23cc   :  { %v2080_v61 = vmul.f32 %v2579_v0, %v2073_v34 }
0x23ce   :  { %v2081_v50 = vpack.c.bf16 %v2080_v61, %v2080_v61 }
0x23d0   :  { %2317 = vmatmul.mubr.msk.bf16.vlgmr.msra.gmra.mxu1 %vm334_vm10, %v2081_v50 }
0x2490   :  { %v2119_v53 = vpop.f32.mrf.mxu1 }
0x2491   :  { %v2126_v1 = vadd.f32 %v2119_v53, %v3200_v57 }
0x2492   :  { %v2121_v3 = vpop.f32.mrf.mxu1 }
0x2493   :  { %2580 = vtanh.f32 %v2126_v1  ;;  %v2127_v63 = vadd.f32 %v2121_v3, %v3174_v14  ;;  %v2318_v41 = vmul.f32 -1.442695, %v2126_v1 }
0x2494   :  { %v2123_v5 = vpop.f32.mrf.mxu1 }
0x2495   :  { %2582 = vtanh.f32 %v2127_v63  ;;  %v2319_v8 = vmul.f32 -1.442695, %v2127_v63 }
0x2496   :  { %v2124_v30 = vpop.f32.mrf.mxu1  ;;  %2584 = vpow2.f32 %v2318_v41 }
0x2497   :  { %2586 = vpow2.f32 %v2319_v8 }
0x24a0   :  { %v2581_v23 = vpop.eup %2580 }
0x24a1   :  { %2144 = vrot.lane.b32.xlu1 %v2581_v23, %s2648_s4 }
0x24a2   :  { %v2583_v13 = vpop.eup %2582 }
0x24a3   :  { %2155 = vrot.lane.b32.xlu0 %v2583_v13, %s2648_s4  ;;  %v2585_v42 = vpop.eup %2584 }
0x24a4   :  { %v2587_v40 = vpop.eup %2586  ;;  %v2134_v57 = vadd.f32 1.0, %v2585_v42 }
0x24a5   :  { %v2135_v15 = vadd.f32 1.0, %v2587_v40 }
0x24a6   :  { %2588 = vrcp.f32 %v2134_v57 }
0x24a7   :  { %2590 = vrcp.f32 %v2135_v15 }
0x24b3   :  { %v2589_v14 = vpop.eup %2588 }
0x24b4   :  { %v2591_v47 = vpop.eup %2590  ;;  %v2142_v49 = vmul.f32 %v2589_v14, %v2053_v7 }
0x24b5   :  { %v2153_v45 = vmul.f32 %v2591_v47, %v3329_v35 }
0x2513   :  { %v2145_v6 = vpop.permute.xlu1 %2144 }
0x2514   :  { %v2147_v11 = vmul.f32 %v2589_v14, %v2145_v6 }
0x2515   :  { %v2156_v19 = vpop.permute.xlu0 %2155 }
0x2516   :  { %2149 = vrot.lane.b32.xlu1 %v2147_v11, %s2649_s19  ;;  %v2158_v38 = vmul.f32 %v2591_v47, %v2156_v19 }
0x2518   :  { %2160 = vrot.lane.b32.xlu0 %v2158_v38, %s2649_s19 }
0x251c   :  { %2165 = vrot.lane.b32.xlu0 %v2589_v14, %s2649_s19 }
0x2588   :  { %v2150_v29 = vpop.permute.xlu1 %2149 }
0x2589   :  { %v2152_v51 = vadd.f32 %v2150_v29, %v2142_v49 }
0x258a   :  { %v2161_v17 = vpop.permute.xlu0 %2160 }
0x258b   :  { %2174 = vrot.lane.b32.xlu1 %v2152_v51, %s2650_s20  ;;  %v2163_v59 = vadd.f32 %v2161_v17, %v2153_v45 }
0x258e   :  { %v2166_v54 = vpop.permute.xlu0 %2165 }
0x258f   :  { %2169 = vrot.lane.b32.xlu1 %v2591_v47, %s2648_s4 }
0x25fd   :  { %v2175_v27 = vpop.permute.xlu1 %2174 }
0x25fe   :  { %v2177_v18 = vsel %vm124_vm4, %v2175_v27, %v2163_v59 }
0x25ff   :  { %2592 = vtanh.f32 %v2177_v18 }
0x2601   :  { %v2170_v10 = vpop.permute.xlu1 %2169 }
0x2602   :  { %v2172_v4 = vsel %vm124_vm4, %v2166_v54, %v2170_v10 }
0x260c   :  { %v2593_v21 = vpop.eup %2592 }
0x260d   :  { %v2179_v12 = vmul.f32 %v2593_v21, %v2172_v4 }
0x260f   :  { %v2180_v31 = vsel %vm124_vm4, %v2179_v12, %v3211_v9 }
0x2610   :  { %v2181_v58 = vpack.c.bf16 %v2180_v31, %v2180_v31 }
0x2612   :  { %2355 = vmatmul.mubr.msk.bf16.vlgmr.msra.gmra.mxu0 %vm334_vm10, %v2181_v58 }
0x26d2   :  { %v2238_v16 = vpop.f32.mrf.mxu0 }
0x26d3   :  { %v2239_v62 = vadd.f32 %v2320_v28, %v2238_v16 }
0x26d4   :  { %v2356_v39 = vpop.f32.mrf.mxu0 }
0x26d5   :  { %v2322_v7 = vmul.f32 -1.442695, %v2239_v62 }
0x26d6   :  { %v2241_v60 = vpop.f32.mrf.mxu0 }
0x26d7   :  { %2594 = vpow2.f32 %v2322_v7 }
0x26d8   :  { %v2357_v36 = vpop.f32.mrf.mxu0 }
0x26e4   :  { %v2595_v35 = vpop.eup %2594 }
0x26e5   :  { %v2247_v46 = vadd.f32 1.0, %v2595_v35 }
0x26e7   :  { %2596 = vrcp.f32 %v2247_v46 }
0x26f4   :  { %v2597_v2 = vpop.eup %2596 }
0x26f5   :  { %2251 = vst.msk [vmem:[%s3394_s10] sm:$0xff] %vm2250_vm12, %v2597_v2 }
0x26f6   :  { %2256 = vsyncpa [#allocation3], 1 }
0x26f7   :  { %2257 = vsyncpa [#allocation5], 1 }

</bundles_post_ra>
